<compile_context>
chip_gen: v6e
topology: v6e:2x2x1
jax: 0.10.0
libtpu: 0.0.40
codegen_flags: <defaults>
</compile_context>

<pallas_src>
import functools

import jax
import jax.numpy as jnp
from jax.experimental import pallas as pl
from jax.experimental.pallas import tpu as pltpu


def _sigmoid_eup(x):
    # sigmoid(x) == 0.5 * tanh(0.5 * x) + 0.5 exactly; keeps the gate
    # nonlinearity on the EUP slot instead of exp + VPU reciprocal.
    return 0.5 * jnp.tanh(0.5 * x) + 0.5


def _encoder_lstm_kernel(t_valid_ref, x_ref, w_ih_ref, w_hh_ref, b_ref,
                         h0_ref, c0_ref, y_ref, h_ref, c_ref):
    """Runs `tq` LSTM time steps per grid block.

    h/c state is carried across grid blocks in the VMEM-resident h_ref/c_ref
    outputs (constant out index_map => single writeback at grid end).
    Tail-padded steps (t >= t_valid) are masked so they do not alter state.
    """
    blk = pl.program_id(0)
    tq = x_ref.shape[0]
    H = h0_ref.shape[-1]

    @pl.when(blk == 0)
    def _():
        h_ref[...] = h0_ref[...]
        c_ref[...] = c0_ref[...]

    # Batched input projection for the whole time tile (MXU sees M=tq, not 1):
    #   (tq, H) @ (H, 4H) -> (tq, 4H), f32 accumulation, bias folded in once.
    x_proj = jnp.dot(x_ref[...], w_ih_ref[...],
                     preferred_element_type=jnp.float32) + b_ref[...]

    w_hh = w_hh_ref[...]            # hoisted: one load per grid block
    t_valid = t_valid_ref[0]        # SMEM scalar
    h = h_ref[...]                  # (1, H) f32 carried state
    c = c_ref[...]

    # Short static inner loop: the recurrent matmul is inherently sequential.
    for s in range(tq):
        gates = x_proj[s:s + 1, :] + jnp.dot(
            h.astype(jnp.bfloat16), w_hh, preferred_element_type=jnp.float32)
        i_g = _sigmoid_eup(gates[:, 0 * H:1 * H])
        f_g = _sigmoid_eup(gates[:, 1 * H:2 * H])
        g_g = jnp.tanh(gates[:, 2 * H:3 * H])
        o_g = _sigmoid_eup(gates[:, 3 * H:4 * H])
        c_new = f_g * c + i_g * g_g
        h_new = o_g * jnp.tanh(c_new)
        valid = (blk * tq + s) < t_valid      # mask tail-padded steps
        h = jnp.where(valid, h_new, h)
        c = jnp.where(valid, c_new, c)
        y_ref[s:s + 1, :] = h                 # lane-dense (tq, H) output slab

    h_ref[...] = h
    c_ref[...] = c


@functools.partial(jax.jit, static_argnames=("tq",))
def encoder_rnn_encode(tokens, h0, c0, emb, w_ih_t, w_hh_t, bias, *, tq=8):
    """Encodes a whole token sequence with a single pallas_call.

    Args:
      tokens:  int32[T] token indices.
      h0, c0:  float32[1, 1, H] initial hidden / cell state.
      emb:     bfloat16[V, H] embedding table.
      w_ih_t:  bfloat16[H, 4H] = W_ih^T, gate order i,f,g,o.
      w_hh_t:  bfloat16[H, 4H] = W_hh^T.
      bias:    float32[1, 4H] combined bias (b_ih + b_hh).
      tq:      time steps per grid block (multiple of 8).

    Returns:
      (outputs float32[T, H], h float32[1,1,H], c float32[1,1,H]).
    """
    T = tokens.shape[0]
    V, H = emb.shape
    assert H % 128 == 0, "hidden size must be a multiple of 128 (lane tile)"
    assert tq % 8 == 0, "tq must be a multiple of 8 (sublane tile)"

    # Clamp untrusted token ids (VMEM OOB reads are unchecked).
    tok = jnp.clip(tokens.astype(jnp.int32), 0, V - 1)

    # Pre-gather embeddings outside the kernel -> (T, H) bf16, streamed in
    # full-tile (tq, H) blocks instead of per-token sub-tile row gathers.
    x = jnp.take(emb, tok, axis=0)
    n_blocks = (T + tq - 1) // tq
    T_pad = n_blocks * tq
    if T_pad != T:
        x = jnp.pad(x, ((0, T_pad - T), (0, 0)))

    h0_2d = h0.reshape(1, H).astype(jnp.float32)
    c0_2d = c0.reshape(1, H).astype(jnp.float32)
    t_valid = jnp.array([T], jnp.int32)

    w_bytes = (int(w_ih_t.size) * w_ih_t.dtype.itemsize
               + int(w_hh_t.size) * w_hh_t.dtype.itemsize)
    # Explicit VMEM budget (single-buffered resident weights, double-buffered
    # streaming tiles); comfortably below v7x's 64 MiB physical VMEM.
    vmem_budget = (
        w_bytes                       # W_ih^T + W_hh^T (Buffered(1))
        + 4 * H * 4                   # bias
        + 2 * tq * H * 2              # x tiles, double-buffered bf16
        + 2 * tq * H * 4              # y tiles, double-buffered f32
        + 4 * 8 * H * 4               # h0/c0/h/c, sublane-padded
        + tq * 4 * H * 4              # x_proj temporary
    )
    vmem_limit = int(vmem_budget) + (4 << 20)   # headroom for temporaries

    cost = pl.CostEstimate(
        flops=16 * T_pad * H * H,                 # input proj + recurrent matmuls
        transcendentals=5 * T_pad * H,            # 3 sigmoid(as tanh) + 2 tanh / step
        bytes_accessed=int(w_bytes + 4 * 4 * H + T_pad * H * 2
                           + T_pad * H * 4 + 4 * H * 4 * 2),
    )

    resident = dict(pipeline_mode=pl.Buffered(1))   # constant blocks: 1 buffer

    y, h, c = pl.pallas_call(
        _encoder_lstm_kernel,
        out_shape=(
            jax.ShapeDtypeStruct((T_pad, H), jnp.float32),   # per-step outputs
            jax.ShapeDtypeStruct((1, H), jnp.float32),       # final h
            jax.ShapeDtypeStruct((1, H), jnp.float32),       # final c
        ),
        grid_spec=pltpu.PrefetchScalarGridSpec(
            num_scalar_prefetch=1,               # t_valid lands in SMEM
            grid=(n_blocks,),
            in_specs=[
                pl.BlockSpec((tq, H), lambda i, tv: (i, 0)),              # x tile
                pl.BlockSpec((H, 4 * H), lambda i, tv: (0, 0), **resident),  # W_ih^T
                pl.BlockSpec((H, 4 * H), lambda i, tv: (0, 0), **resident),  # W_hh^T
                pl.BlockSpec((1, 4 * H), lambda i, tv: (0, 0), **resident),  # bias
                pl.BlockSpec((1, H), lambda i, tv: (0, 0)),               # h0
                pl.BlockSpec((1, H), lambda i, tv: (0, 0)),               # c0
            ],
            out_specs=[
                pl.BlockSpec((tq, H), lambda i, tv: (i, 0)),              # y slab
                pl.BlockSpec((1, H), lambda i, tv: (0, 0)),               # h
                pl.BlockSpec((1, H), lambda i, tv: (0, 0)),               # c
            ],
        ),
        compiler_params=pltpu.CompilerParams(
            # The time axis is a true recurrence -> sequential ("arbitrary").
            # TODO(synk): with batch > 1, add a leading "parallel" batch axis
            # (v7x dual TensorCore) and int8/fp8 weight compression per chip.
            dimension_semantics=("arbitrary",),
            vmem_limit_bytes=vmem_limit,
        ),
        cost_estimate=cost,
    )(t_valid, x, w_ih_t, w_hh_t, bias, h0_2d, c0_2d)

    return y[:T], h.reshape(1, 1, H), c.reshape(1, 1, H)


def encoder_rnn_forward(token, hidden, emb, w_ih_t, w_hh_t, bias):
    """EncoderRNN.forward(input, hidden) equivalent: one token, batch=1."""
    h0, c0 = hidden
    y, h, c = encoder_rnn_encode(token.reshape(-1), h0, c0,
                                 emb, w_ih_t, w_hh_t, bias, tq=8)
    out = y[:1].reshape(1, 1, -1)   # output == h for 1-layer, 1-dir, seq-len-1
    return out, (h, c)


def _reference_encode(tokens, h0, c0, emb, w_ih_t, w_hh_t, bias):
    """Pure-JAX reference with the same bf16-operand / f32-accumulate contract."""
    T = tokens.shape[0]
    H = h0.shape[-1]
    h = h0.reshape(1, H).astype(jnp.float32)
    c = c0.reshape(1, H).astype(jnp.float32)
    ys = []
    for t in range(T):
        x = emb[tokens[t]][None, :]
        gates = (jnp.dot(x, w_ih_t, preferred_element_type=jnp.float32)
                 + jnp.dot(h.astype(jnp.bfloat16), w_hh_t,
                           preferred_element_type=jnp.float32)
                 + bias)
        i_g = jax.nn.sigmoid(gates[:, 0 * H:1 * H])
        f_g = jax.nn.sigmoid(gates[:, 1 * H:2 * H])
        g_g = jnp.tanh(gates[:, 2 * H:3 * H])
        o_g = jax.nn.sigmoid(gates[:, 3 * H:4 * H])
        c = f_g * c + i_g * g_g
        h = o_g * jnp.tanh(c)
        ys.append(h)
    return jnp.concatenate(ys, axis=0), h, c


if __name__ == "__main__":
    # Small shapes consistent with the module: hidden_size=256 (module default),
    # n_layers=1, bidirectional=False; small vocab and a short demo sequence.
    V = 512     # input_size (vocab)
    H = 256     # hidden_size (multiple of 128)
    T = 20      # demo sequence length (3 grid blocks of tq=8, 4 masked tail steps)

    key = jax.random.PRNGKey(0)
    k_emb, k_wih, k_whh, k_bih, k_bhh, k_tok, k_seq = jax.random.split(key, 7)

    bound = 1.0 / jnp.sqrt(jnp.float32(H))
    emb_f32 = jax.random.normal(k_emb, (V, H), dtype=jnp.float32)   # nn.Embedding ~ N(0,1)
    w_ih = jax.random.uniform(k_wih, (4 * H, H), jnp.float32, -bound, bound)
    w_hh = jax.random.uniform(k_whh, (4 * H, H), jnp.float32, -bound, bound)
    b_ih = jax.random.uniform(k_bih, (4 * H,), jnp.float32, -bound, bound)
    b_hh = jax.random.uniform(k_bhh, (4 * H,), jnp.float32, -bound, bound)

    # Host-side layout prep: bf16 MXU operands, f32 gate math / bias / states.
    emb = emb_f32.astype(jnp.bfloat16)                        # (V, H)
    w_ih_t = w_ih.T.astype(jnp.bfloat16)                      # (H, 4H) gates i,f,g,o
    w_hh_t = w_hh.T.astype(jnp.bfloat16)                      # (H, 4H)
    bias = (b_ih + b_hh)[None, :].astype(jnp.float32)         # (1, 4H)

    h0 = jnp.zeros((1, 1, H), jnp.float32)                    # initHidden()
    c0 = jnp.zeros((1, 1, H), jnp.float32)

    # --- Module-equivalent single-token forward ------------------------------
    token = jax.random.randint(k_tok, (1,), 0, V, dtype=jnp.int32)
    out, (h1, c1) = encoder_rnn_forward(token, (h0, c0), emb, w_ih_t, w_hh_t, bias)
    jax.block_until_ready((out, h1, c1))

    y_ref1, h_ref1, c_ref1 = _reference_encode(token, h0, c0, emb, w_ih_t, w_hh_t, bias)
    assert jnp.allclose(out.reshape(1, H), h_ref1, atol=3e-3, rtol=3e-3)
    assert jnp.allclose(h1.reshape(1, H), h_ref1, atol=3e-3, rtol=3e-3)
    assert jnp.allclose(c1.reshape(1, H), c_ref1, atol=3e-3, rtol=3e-3)

    # --- Full-sequence encoding (time loop inside one pallas_call) -----------
    tokens = jax.random.randint(k_seq, (T,), 0, V, dtype=jnp.int32)
    ys, hT, cT = encoder_rnn_encode(tokens, h0, c0, emb, w_ih_t, w_hh_t, bias, tq=8)
    jax.block_until_ready((ys, hT, cT))

    ys_ref, h_refT, c_refT = _reference_encode(tokens, h0, c0, emb, w_ih_t, w_hh_t, bias)
    assert jnp.allclose(ys, ys_ref, atol=5e-3, rtol=5e-3)
    assert jnp.allclose(hT.reshape(1, H), h_refT, atol=5e-3, rtol=5e-3)
    assert jnp.allclose(cT.reshape(1, H), c_refT, atol=5e-3, rtol=5e-3)

    print("KERNEL_OK")
</pallas_src>

<mosaic_0001>
module attributes {stable_mosaic.version = 11 : i64} {
  func.func @_encoder_lstm_kernel(%arg0: i32, %arg1: memref<1xi32, #tpu.memory_space<smem>>, %arg2: memref<8x256xbf16, #tpu.memory_space<vmem>>, %arg3: memref<256x1024xbf16, #tpu.memory_space<vmem>>, %arg4: memref<256x1024xbf16, #tpu.memory_space<vmem>>, %arg5: memref<1x1024xf32, #tpu.memory_space<vmem>>, %arg6: memref<1x256xf32, #tpu.memory_space<vmem>>, %arg7: memref<1x256xf32, #tpu.memory_space<vmem>>, %arg8: memref<8x256xf32, #tpu.memory_space<vmem>>, %arg9: memref<1x256xf32, #tpu.memory_space<vmem>>, %arg10: memref<1x256xf32, #tpu.memory_space<vmem>>) attributes {dimension_semantics = [#tpu.dimension_semantics<arbitrary>], iteration_bounds = array<i64: 1>, scalar_prefetch = 1 : i64, scratch_operands = 0 : i64, tpu.core_type = #tpu.core_type<tc>, window_params = [{transform_indices = @transform_0, window_bounds = array<i64: 8, 256>}, {pipeline_mode = #tpu.pipeline_mode<synchronous>, transform_indices = @transform_1, window_bounds = array<i64: 256, 1024>}, {pipeline_mode = #tpu.pipeline_mode<synchronous>, transform_indices = @transform_2, window_bounds = array<i64: 256, 1024>}, {pipeline_mode = #tpu.pipeline_mode<synchronous>, transform_indices = @transform_3, window_bounds = array<i64: 1, 1024>}, {pipeline_mode = #tpu.pipeline_mode<synchronous>, transform_indices = @transform_4, window_bounds = array<i64: 1, 256>}, {pipeline_mode = #tpu.pipeline_mode<synchronous>, transform_indices = @transform_5, window_bounds = array<i64: 1, 256>}, {transform_indices = @transform_6, window_bounds = array<i64: 8, 256>}, {pipeline_mode = #tpu.pipeline_mode<synchronous>, transform_indices = @transform_7, window_bounds = array<i64: 1, 256>}, {pipeline_mode = #tpu.pipeline_mode<synchronous>, transform_indices = @transform_8, window_bounds = array<i64: 1, 256>}]} {
    %c0_i32 = arith.constant 0 : i32
    %0 = arith.cmpi eq, %arg0, %c0_i32 : i32
    %1 = arith.extui %0 : i1 to i32
    %c0_i32_0 = arith.constant 0 : i32
    %2 = arith.cmpi ne, %1, %c0_i32_0 : i32
    scf.if %2 {
      %c0_114 = arith.constant 0 : index
      %c0_115 = arith.constant 0 : index
      %343 = vector.load %arg6[%c0_114, %c0_115] : memref<1x256xf32, #tpu.memory_space<vmem>>, vector<1x256xf32>
      %c0_116 = arith.constant 0 : index
      %c0_117 = arith.constant 0 : index
      %344 = vector.load %arg9[%c0_116, %c0_117] : memref<1x256xf32, #tpu.memory_space<vmem>>, vector<1x256xf32>
      tpu.vector_store %arg9[%c0_116, %c0_117], %343 {strides = array<i32>} : memref<1x256xf32, #tpu.memory_space<vmem>>, vector<1x256xf32>,
      %c0_118 = arith.constant 0 : index
      %c0_119 = arith.constant 0 : index
      %345 = vector.load %arg7[%c0_118, %c0_119] : memref<1x256xf32, #tpu.memory_space<vmem>>, vector<1x256xf32>
      %c0_120 = arith.constant 0 : index
      %c0_121 = arith.constant 0 : index
      %346 = vector.load %arg10[%c0_120, %c0_121] : memref<1x256xf32, #tpu.memory_space<vmem>>, vector<1x256xf32>
      tpu.vector_store %arg10[%c0_120, %c0_121], %345 {strides = array<i32>} : memref<1x256xf32, #tpu.memory_space<vmem>>, vector<1x256xf32>,
    } else {
    }
    %c0 = arith.constant 0 : index
    %c0_1 = arith.constant 0 : index
    %3 = vector.load %arg2[%c0, %c0_1] : memref<8x256xbf16, #tpu.memory_space<vmem>>, vector<8x256xbf16>
    %c0_2 = arith.constant 0 : index
    %c0_3 = arith.constant 0 : index
    %4 = vector.load %arg3[%c0_2, %c0_3] : memref<256x1024xbf16, #tpu.memory_space<vmem>>, vector<256x1024xbf16>
    %cst = arith.constant dense<0.000000e+00> : vector<8x1024xf32>
    %5 = tpu.matmul %3, %4, %cst {dimension_numbers = #tpu.dot_dimension_numbers<[1], [0], [0], [1], [0, 0, 1, 1], [], []>} : vector<8x256xbf16>, vector<256x1024xbf16>, vector<8x1024xf32> -> vector<8x1024xf32>
    %c0_4 = arith.constant 0 : index
    %c0_5 = arith.constant 0 : index
    %6 = vector.load %arg5[%c0_4, %c0_5] : memref<1x1024xf32, #tpu.memory_space<vmem>>, vector<1x1024xf32>
    %7 = vector.broadcast %6 : vector<1x1024xf32> to vector<8x1024xf32>
    %8 = arith.addf %5, %7 : vector<8x1024xf32>
    %c0_6 = arith.constant 0 : index
    %c0_7 = arith.constant 0 : index
    %9 = vector.load %arg4[%c0_6, %c0_7] : memref<256x1024xbf16, #tpu.memory_space<vmem>>, vector<256x1024xbf16>
    %c0_8 = arith.constant 0 : index
    %10 = memref.load %arg1[%c0_8] : memref<1xi32, #tpu.memory_space<smem>>
    %c0_9 = arith.constant 0 : index
    %c0_10 = arith.constant 0 : index
    %11 = vector.load %arg9[%c0_9, %c0_10] : memref<1x256xf32, #tpu.memory_space<vmem>>, vector<1x256xf32>
    %c0_11 = arith.constant 0 : index
    %c0_12 = arith.constant 0 : index
    %12 = vector.load %arg10[%c0_11, %c0_12] : memref<1x256xf32, #tpu.memory_space<vmem>>, vector<1x256xf32>
    %13 = vector.extract_strided_slice %8 {offsets = [0, 0], sizes = [1, 1024], strides = [1, 1]} : vector<8x1024xf32> to vector<1x1024xf32>
    %14 = arith.truncf %11 : vector<1x256xf32> to vector<1x256xbf16>
    %cst_13 = arith.constant dense<0.000000e+00> : vector<1x1024xf32>
    %15 = tpu.matmul %14, %9, %cst_13 {dimension_numbers = #tpu.dot_dimension_numbers<[1], [0], [0], [1], [0, 0, 1, 1], [], []>} : vector<1x256xbf16>, vector<256x1024xbf16>, vector<1x1024xf32> -> vector<1x1024xf32>
    %16 = arith.addf %13, %15 : vector<1x1024xf32>
    %17 = vector.extract_strided_slice %16 {offsets = [0, 0], sizes = [1, 256], strides = [1, 1]} : vector<1x1024xf32> to vector<1x256xf32>
    %cst_14 = arith.constant 5.000000e-01 : f32
    %18 = vector.broadcast %cst_14 : f32 to vector<1x256xf32>
    %19 = arith.mulf %18, %17 : vector<1x256xf32>
    %20 = math.tanh %19 : vector<1x256xf32>
    %cst_15 = arith.constant 5.000000e-01 : f32
    %21 = vector.broadcast %cst_15 : f32 to vector<1x256xf32>
    %22 = arith.mulf %21, %20 : vector<1x256xf32>
    %cst_16 = arith.constant 5.000000e-01 : f32
    %23 = vector.broadcast %cst_16 : f32 to vector<1x256xf32>
    %24 = arith.addf %22, %23 : vector<1x256xf32>
    %25 = vector.extract_strided_slice %16 {offsets = [0, 256], sizes = [1, 256], strides = [1, 1]} : vector<1x1024xf32> to vector<1x256xf32>
    %cst_17 = arith.constant 5.000000e-01 : f32
    %26 = vector.broadcast %cst_17 : f32 to vector<1x256xf32>
    %27 = arith.mulf %26, %25 : vector<1x256xf32>
    %28 = math.tanh %27 : vector<1x256xf32>
    %cst_18 = arith.constant 5.000000e-01 : f32
    %29 = vector.broadcast %cst_18 : f32 to vector<1x256xf32>
    %30 = arith.mulf %29, %28 : vector<1x256xf32>
    %cst_19 = arith.constant 5.000000e-01 : f32
    %31 = vector.broadcast %cst_19 : f32 to vector<1x256xf32>
    %32 = arith.addf %30, %31 : vector<1x256xf32>
    %33 = vector.extract_strided_slice %16 {offsets = [0, 512], sizes = [1, 256], strides = [1, 1]} : vector<1x1024xf32> to vector<1x256xf32>
    %34 = math.tanh %33 : vector<1x256xf32>
    %35 = vector.extract_strided_slice %16 {offsets = [0, 768], sizes = [1, 256], strides = [1, 1]} : vector<1x1024xf32> to vector<1x256xf32>
    %cst_20 = arith.constant 5.000000e-01 : f32
    %36 = vector.broadcast %cst_20 : f32 to vector<1x256xf32>
    %37 = arith.mulf %36, %35 : vector<1x256xf32>
    %38 = math.tanh %37 : vector<1x256xf32>
    %cst_21 = arith.constant 5.000000e-01 : f32
    %39 = vector.broadcast %cst_21 : f32 to vector<1x256xf32>
    %40 = arith.mulf %39, %38 : vector<1x256xf32>
    %cst_22 = arith.constant 5.000000e-01 : f32
    %41 = vector.broadcast %cst_22 : f32 to vector<1x256xf32>
    %42 = arith.addf %40, %41 : vector<1x256xf32>
    %43 = arith.mulf %32, %12 : vector<1x256xf32>
    %44 = arith.mulf %24, %34 : vector<1x256xf32>
    %45 = arith.addf %43, %44 : vector<1x256xf32>
    %46 = math.tanh %45 : vector<1x256xf32>
    %47 = arith.mulf %42, %46 : vector<1x256xf32>
    %c8_i32 = arith.constant 8 : i32
    %48 = arith.muli %arg0, %c8_i32 : i32
    %c0_i32_23 = arith.constant 0 : i32
    %49 = arith.addi %48, %c0_i32_23 : i32
    %50 = arith.cmpi slt, %49, %10 : i32
    %51 = arith.select %50, %47, %11 : vector<1x256xf32>
    %52 = arith.select %50, %45, %12 : vector<1x256xf32>
    %c0_24 = arith.constant 0 : index
    %c0_25 = arith.constant 0 : index
    %53 = vector.load %arg8[%c0_24, %c0_25] : memref<8x256xf32, #tpu.memory_space<vmem>>, vector<1x256xf32>
    tpu.vector_store %arg8[%c0_24, %c0_25], %51 {strides = array<i32>} : memref<8x256xf32, #tpu.memory_space<vmem>>, vector<1x256xf32>,
    %54 = vector.extract_strided_slice %8 {offsets = [1, 0], sizes = [1, 1024], strides = [1, 1]} : vector<8x1024xf32> to vector<1x1024xf32>
    %55 = arith.truncf %51 : vector<1x256xf32> to vector<1x256xbf16>
    %cst_26 = arith.constant dense<0.000000e+00> : vector<1x1024xf32>
    %56 = tpu.matmul %55, %9, %cst_26 {dimension_numbers = #tpu.dot_dimension_numbers<[1], [0], [0], [1], [0, 0, 1, 1], [], []>} : vector<1x256xbf16>, vector<256x1024xbf16>, vector<1x1024xf32> -> vector<1x1024xf32>
    %57 = arith.addf %54, %56 : vector<1x1024xf32>
    %58 = vector.extract_strided_slice %57 {offsets = [0, 0], sizes = [1, 256], strides = [1, 1]} : vector<1x1024xf32> to vector<1x256xf32>
    %cst_27 = arith.constant 5.000000e-01 : f32
    %59 = vector.broadcast %cst_27 : f32 to vector<1x256xf32>
    %60 = arith.mulf %59, %58 : vector<1x256xf32>
    %61 = math.tanh %60 : vector<1x256xf32>
    %cst_28 = arith.constant 5.000000e-01 : f32
    %62 = vector.broadcast %cst_28 : f32 to vector<1x256xf32>
    %63 = arith.mulf %62, %61 : vector<1x256xf32>
    %cst_29 = arith.constant 5.000000e-01 : f32
    %64 = vector.broadcast %cst_29 : f32 to vector<1x256xf32>
    %65 = arith.addf %63, %64 : vector<1x256xf32>
    %66 = vector.extract_strided_slice %57 {offsets = [0, 256], sizes = [1, 256], strides = [1, 1]} : vector<1x1024xf32> to vector<1x256xf32>
    %cst_30 = arith.constant 5.000000e-01 : f32
    %67 = vector.broadcast %cst_30 : f32 to vector<1x256xf32>
    %68 = arith.mulf %67, %66 : vector<1x256xf32>
    %69 = math.tanh %68 : vector<1x256xf32>
    %cst_31 = arith.constant 5.000000e-01 : f32
    %70 = vector.broadcast %cst_31 : f32 to vector<1x256xf32>
    %71 = arith.mulf %70, %69 : vector<1x256xf32>
    %cst_32 = arith.constant 5.000000e-01 : f32
    %72 = vector.broadcast %cst_32 : f32 to vector<1x256xf32>
    %73 = arith.addf %71, %72 : vector<1x256xf32>
    %74 = vector.extract_strided_slice %57 {offsets = [0, 512], sizes = [1, 256], strides = [1, 1]} : vector<1x1024xf32> to vector<1x256xf32>
    %75 = math.tanh %74 : vector<1x256xf32>
    %76 = vector.extract_strided_slice %57 {offsets = [0, 768], sizes = [1, 256], strides = [1, 1]} : vector<1x1024xf32> to vector<1x256xf32>
    %cst_33 = arith.constant 5.000000e-01 : f32
    %77 = vector.broadcast %cst_33 : f32 to vector<1x256xf32>
    %78 = arith.mulf %77, %76 : vector<1x256xf32>
    %79 = math.tanh %78 : vector<1x256xf32>
    %cst_34 = arith.constant 5.000000e-01 : f32
    %80 = vector.broadcast %cst_34 : f32 to vector<1x256xf32>
    %81 = arith.mulf %80, %79 : vector<1x256xf32>
    %cst_35 = arith.constant 5.000000e-01 : f32
    %82 = vector.broadcast %cst_35 : f32 to vector<1x256xf32>
    %83 = arith.addf %81, %82 : vector<1x256xf32>
    %84 = arith.mulf %73, %52 : vector<1x256xf32>
    %85 = arith.mulf %65, %75 : vector<1x256xf32>
    %86 = arith.addf %84, %85 : vector<1x256xf32>
    %87 = math.tanh %86 : vector<1x256xf32>
    %88 = arith.mulf %83, %87 : vector<1x256xf32>
    %c8_i32_36 = arith.constant 8 : i32
    %89 = arith.muli %arg0, %c8_i32_36 : i32
    %c1_i32 = arith.constant 1 : i32
    %90 = arith.addi %89, %c1_i32 : i32
    %91 = arith.cmpi slt, %90, %10 : i32
    %92 = arith.select %91, %88, %51 : vector<1x256xf32>
    %93 = arith.select %91, %86, %52 : vector<1x256xf32>
    %c1 = arith.constant 1 : index
    %c0_37 = arith.constant 0 : index
    %94 = vector.load %arg8[%c1, %c0_37] : memref<8x256xf32, #tpu.memory_space<vmem>>, vector<1x256xf32>
    tpu.vector_store %arg8[%c1, %c0_37], %92 {strides = array<i32>} : memref<8x256xf32, #tpu.memory_space<vmem>>, vector<1x256xf32>,
    %95 = vector.extract_strided_slice %8 {offsets = [2, 0], sizes = [1, 1024], strides = [1, 1]} : vector<8x1024xf32> to vector<1x1024xf32>
    %96 = arith.truncf %92 : vector<1x256xf32> to vector<1x256xbf16>
    %cst_38 = arith.constant dense<0.000000e+00> : vector<1x1024xf32>
    %97 = tpu.matmul %96, %9, %cst_38 {dimension_numbers = #tpu.dot_dimension_numbers<[1], [0], [0], [1], [0, 0, 1, 1], [], []>} : vector<1x256xbf16>, vector<256x1024xbf16>, vector<1x1024xf32> -> vector<1x1024xf32>
    %98 = arith.addf %95, %97 : vector<1x1024xf32>
    %99 = vector.extract_strided_slice %98 {offsets = [0, 0], sizes = [1, 256], strides = [1, 1]} : vector<1x1024xf32> to vector<1x256xf32>
    %cst_39 = arith.constant 5.000000e-01 : f32
    %100 = vector.broadcast %cst_39 : f32 to vector<1x256xf32>
    %101 = arith.mulf %100, %99 : vector<1x256xf32>
    %102 = math.tanh %101 : vector<1x256xf32>
    %cst_40 = arith.constant 5.000000e-01 : f32
    %103 = vector.broadcast %cst_40 : f32 to vector<1x256xf32>
    %104 = arith.mulf %103, %102 : vector<1x256xf32>
    %cst_41 = arith.constant 5.000000e-01 : f32
    %105 = vector.broadcast %cst_41 : f32 to vector<1x256xf32>
    %106 = arith.addf %104, %105 : vector<1x256xf32>
    %107 = vector.extract_strided_slice %98 {offsets = [0, 256], sizes = [1, 256], strides = [1, 1]} : vector<1x1024xf32> to vector<1x256xf32>
    %cst_42 = arith.constant 5.000000e-01 : f32
    %108 = vector.broadcast %cst_42 : f32 to vector<1x256xf32>
    %109 = arith.mulf %108, %107 : vector<1x256xf32>
    %110 = math.tanh %109 : vector<1x256xf32>
    %cst_43 = arith.constant 5.000000e-01 : f32
    %111 = vector.broadcast %cst_43 : f32 to vector<1x256xf32>
    %112 = arith.mulf %111, %110 : vector<1x256xf32>
    %cst_44 = arith.constant 5.000000e-01 : f32
    %113 = vector.broadcast %cst_44 : f32 to vector<1x256xf32>
    %114 = arith.addf %112, %113 : vector<1x256xf32>
    %115 = vector.extract_strided_slice %98 {offsets = [0, 512], sizes = [1, 256], strides = [1, 1]} : vector<1x1024xf32> to vector<1x256xf32>
    %116 = math.tanh %115 : vector<1x256xf32>
    %117 = vector.extract_strided_slice %98 {offsets = [0, 768], sizes = [1, 256], strides = [1, 1]} : vector<1x1024xf32> to vector<1x256xf32>
    %cst_45 = arith.constant 5.000000e-01 : f32
    %118 = vector.broadcast %cst_45 : f32 to vector<1x256xf32>
    %119 = arith.mulf %118, %117 : vector<1x256xf32>
    %120 = math.tanh %119 : vector<1x256xf32>
    %cst_46 = arith.constant 5.000000e-01 : f32
    %121 = vector.broadcast %cst_46 : f32 to vector<1x256xf32>
    %122 = arith.mulf %121, %120 : vector<1x256xf32>
    %cst_47 = arith.constant 5.000000e-01 : f32
    %123 = vector.broadcast %cst_47 : f32 to vector<1x256xf32>
    %124 = arith.addf %122, %123 : vector<1x256xf32>
    %125 = arith.mulf %114, %93 : vector<1x256xf32>
    %126 = arith.mulf %106, %116 : vector<1x256xf32>
    %127 = arith.addf %125, %126 : vector<1x256xf32>
    %128 = math.tanh %127 : vector<1x256xf32>
    %129 = arith.mulf %124, %128 : vector<1x256xf32>
    %c8_i32_48 = arith.constant 8 : i32
    %130 = arith.muli %arg0, %c8_i32_48 : i32
    %c2_i32 = arith.constant 2 : i32
    %131 = arith.addi %130, %c2_i32 : i32
    %132 = arith.cmpi slt, %131, %10 : i32
    %133 = arith.select %132, %129, %92 : vector<1x256xf32>
    %134 = arith.select %132, %127, %93 : vector<1x256xf32>
    %c2 = arith.constant 2 : index
    %c0_49 = arith.constant 0 : index
    %135 = vector.load %arg8[%c2, %c0_49] : memref<8x256xf32, #tpu.memory_space<vmem>>, vector<1x256xf32>
    tpu.vector_store %arg8[%c2, %c0_49], %133 {strides = array<i32>} : memref<8x256xf32, #tpu.memory_space<vmem>>, vector<1x256xf32>,
    %136 = vector.extract_strided_slice %8 {offsets = [3, 0], sizes = [1, 1024], strides = [1, 1]} : vector<8x1024xf32> to vector<1x1024xf32>
    %137 = arith.truncf %133 : vector<1x256xf32> to vector<1x256xbf16>
    %cst_50 = arith.constant dense<0.000000e+00> : vector<1x1024xf32>
    %138 = tpu.matmul %137, %9, %cst_50 {dimension_numbers = #tpu.dot_dimension_numbers<[1], [0], [0], [1], [0, 0, 1, 1], [], []>} : vector<1x256xbf16>, vector<256x1024xbf16>, vector<1x1024xf32> -> vector<1x1024xf32>
    %139 = arith.addf %136, %138 : vector<1x1024xf32>
    %140 = vector.extract_strided_slice %139 {offsets = [0, 0], sizes = [1, 256], strides = [1, 1]} : vector<1x1024xf32> to vector<1x256xf32>
    %cst_51 = arith.constant 5.000000e-01 : f32
    %141 = vector.broadcast %cst_51 : f32 to vector<1x256xf32>
    %142 = arith.mulf %141, %140 : vector<1x256xf32>
    %143 = math.tanh %142 : vector<1x256xf32>
    %cst_52 = arith.constant 5.000000e-01 : f32
    %144 = vector.broadcast %cst_52 : f32 to vector<1x256xf32>
    %145 = arith.mulf %144, %143 : vector<1x256xf32>
    %cst_53 = arith.constant 5.000000e-01 : f32
    %146 = vector.broadcast %cst_53 : f32 to vector<1x256xf32>
    %147 = arith.addf %145, %146 : vector<1x256xf32>
    %148 = vector.extract_strided_slice %139 {offsets = [0, 256], sizes = [1, 256], strides = [1, 1]} : vector<1x1024xf32> to vector<1x256xf32>
    %cst_54 = arith.constant 5.000000e-01 : f32
    %149 = vector.broadcast %cst_54 : f32 to vector<1x256xf32>
    %150 = arith.mulf %149, %148 : vector<1x256xf32>
    %151 = math.tanh %150 : vector<1x256xf32>
    %cst_55 = arith.constant 5.000000e-01 : f32
    %152 = vector.broadcast %cst_55 : f32 to vector<1x256xf32>
    %153 = arith.mulf %152, %151 : vector<1x256xf32>
    %cst_56 = arith.constant 5.000000e-01 : f32
    %154 = vector.broadcast %cst_56 : f32 to vector<1x256xf32>
    %155 = arith.addf %153, %154 : vector<1x256xf32>
    %156 = vector.extract_strided_slice %139 {offsets = [0, 512], sizes = [1, 256], strides = [1, 1]} : vector<1x1024xf32> to vector<1x256xf32>
    %157 = math.tanh %156 : vector<1x256xf32>
    %158 = vector.extract_strided_slice %139 {offsets = [0, 768], sizes = [1, 256], strides = [1, 1]} : vector<1x1024xf32> to vector<1x256xf32>
    %cst_57 = arith.constant 5.000000e-01 : f32
    %159 = vector.broadcast %cst_57 : f32 to vector<1x256xf32>
    %160 = arith.mulf %159, %158 : vector<1x256xf32>
    %161 = math.tanh %160 : vector<1x256xf32>
    %cst_58 = arith.constant 5.000000e-01 : f32
    %162 = vector.broadcast %cst_58 : f32 to vector<1x256xf32>
    %163 = arith.mulf %162, %161 : vector<1x256xf32>
    %cst_59 = arith.constant 5.000000e-01 : f32
    %164 = vector.broadcast %cst_59 : f32 to vector<1x256xf32>
    %165 = arith.addf %163, %164 : vector<1x256xf32>
    %166 = arith.mulf %155, %134 : vector<1x256xf32>
    %167 = arith.mulf %147, %157 : vector<1x256xf32>
    %168 = arith.addf %166, %167 : vector<1x256xf32>
    %169 = math.tanh %168 : vector<1x256xf32>
    %170 = arith.mulf %165, %169 : vector<1x256xf32>
    %c8_i32_60 = arith.constant 8 : i32
    %171 = arith.muli %arg0, %c8_i32_60 : i32
    %c3_i32 = arith.constant 3 : i32
    %172 = arith.addi %171, %c3_i32 : i32
    %173 = arith.cmpi slt, %172, %10 : i32
    %174 = arith.select %173, %170, %133 : vector<1x256xf32>
    %175 = arith.select %173, %168, %134 : vector<1x256xf32>
    %c3 = arith.constant 3 : index
    %c0_61 = arith.constant 0 : index
    %176 = vector.load %arg8[%c3, %c0_61] : memref<8x256xf32, #tpu.memory_space<vmem>>, vector<1x256xf32>
    tpu.vector_store %arg8[%c3, %c0_61], %174 {strides = array<i32>} : memref<8x256xf32, #tpu.memory_space<vmem>>, vector<1x256xf32>,
    %177 = vector.extract_strided_slice %8 {offsets = [4, 0], sizes = [1, 1024], strides = [1, 1]} : vector<8x1024xf32> to vector<1x1024xf32>
    %178 = arith.truncf %174 : vector<1x256xf32> to vector<1x256xbf16>
    %cst_62 = arith.constant dense<0.000000e+00> : vector<1x1024xf32>
    %179 = tpu.matmul %178, %9, %cst_62 {dimension_numbers = #tpu.dot_dimension_numbers<[1], [0], [0], [1], [0, 0, 1, 1], [], []>} : vector<1x256xbf16>, vector<256x1024xbf16>, vector<1x1024xf32> -> vector<1x1024xf32>
    %180 = arith.addf %177, %179 : vector<1x1024xf32>
    %181 = vector.extract_strided_slice %180 {offsets = [0, 0], sizes = [1, 256], strides = [1, 1]} : vector<1x1024xf32> to vector<1x256xf32>
    %cst_63 = arith.constant 5.000000e-01 : f32
    %182 = vector.broadcast %cst_63 : f32 to vector<1x256xf32>
    %183 = arith.mulf %182, %181 : vector<1x256xf32>
    %184 = math.tanh %183 : vector<1x256xf32>
    %cst_64 = arith.constant 5.000000e-01 : f32
    %185 = vector.broadcast %cst_64 : f32 to vector<1x256xf32>
    %186 = arith.mulf %185, %184 : vector<1x256xf32>
    %cst_65 = arith.constant 5.000000e-01 : f32
    %187 = vector.broadcast %cst_65 : f32 to vector<1x256xf32>
    %188 = arith.addf %186, %187 : vector<1x256xf32>
    %189 = vector.extract_strided_slice %180 {offsets = [0, 256], sizes = [1, 256], strides = [1, 1]} : vector<1x1024xf32> to vector<1x256xf32>
    %cst_66 = arith.constant 5.000000e-01 : f32
    %190 = vector.broadcast %cst_66 : f32 to vector<1x256xf32>
    %191 = arith.mulf %190, %189 : vector<1x256xf32>
    %192 = math.tanh %191 : vector<1x256xf32>
    %cst_67 = arith.constant 5.000000e-01 : f32
    %193 = vector.broadcast %cst_67 : f32 to vector<1x256xf32>
    %194 = arith.mulf %193, %192 : vector<1x256xf32>
    %cst_68 = arith.constant 5.000000e-01 : f32
    %195 = vector.broadcast %cst_68 : f32 to vector<1x256xf32>
    %196 = arith.addf %194, %195 : vector<1x256xf32>
    %197 = vector.extract_strided_slice %180 {offsets = [0, 512], sizes = [1, 256], strides = [1, 1]} : vector<1x1024xf32> to vector<1x256xf32>
    %198 = math.tanh %197 : vector<1x256xf32>
    %199 = vector.extract_strided_slice %180 {offsets = [0, 768], sizes = [1, 256], strides = [1, 1]} : vector<1x1024xf32> to vector<1x256xf32>
    %cst_69 = arith.constant 5.000000e-01 : f32
    %200 = vector.broadcast %cst_69 : f32 to vector<1x256xf32>
    %201 = arith.mulf %200, %199 : vector<1x256xf32>
    %202 = math.tanh %201 : vector<1x256xf32>
    %cst_70 = arith.constant 5.000000e-01 : f32
    %203 = vector.broadcast %cst_70 : f32 to vector<1x256xf32>
    %204 = arith.mulf %203, %202 : vector<1x256xf32>
    %cst_71 = arith.constant 5.000000e-01 : f32
    %205 = vector.broadcast %cst_71 : f32 to vector<1x256xf32>
    %206 = arith.addf %204, %205 : vector<1x256xf32>
    %207 = arith.mulf %196, %175 : vector<1x256xf32>
    %208 = arith.mulf %188, %198 : vector<1x256xf32>
    %209 = arith.addf %207, %208 : vector<1x256xf32>
    %210 = math.tanh %209 : vector<1x256xf32>
    %211 = arith.mulf %206, %210 : vector<1x256xf32>
    %c8_i32_72 = arith.constant 8 : i32
    %212 = arith.muli %arg0, %c8_i32_72 : i32
    %c4_i32 = arith.constant 4 : i32
    %213 = arith.addi %212, %c4_i32 : i32
    %214 = arith.cmpi slt, %213, %10 : i32
    %215 = arith.select %214, %211, %174 : vector<1x256xf32>
    %216 = arith.select %214, %209, %175 : vector<1x256xf32>
    %c4 = arith.constant 4 : index
    %c0_73 = arith.constant 0 : index
    %217 = vector.load %arg8[%c4, %c0_73] : memref<8x256xf32, #tpu.memory_space<vmem>>, vector<1x256xf32>
    tpu.vector_store %arg8[%c4, %c0_73], %215 {strides = array<i32>} : memref<8x256xf32, #tpu.memory_space<vmem>>, vector<1x256xf32>,
    %218 = vector.extract_strided_slice %8 {offsets = [5, 0], sizes = [1, 1024], strides = [1, 1]} : vector<8x1024xf32> to vector<1x1024xf32>
    %219 = arith.truncf %215 : vector<1x256xf32> to vector<1x256xbf16>
    %cst_74 = arith.constant dense<0.000000e+00> : vector<1x1024xf32>
    %220 = tpu.matmul %219, %9, %cst_74 {dimension_numbers = #tpu.dot_dimension_numbers<[1], [0], [0], [1], [0, 0, 1, 1], [], []>} : vector<1x256xbf16>, vector<256x1024xbf16>, vector<1x1024xf32> -> vector<1x1024xf32>
    %221 = arith.addf %218, %220 : vector<1x1024xf32>
    %222 = vector.extract_strided_slice %221 {offsets = [0, 0], sizes = [1, 256], strides = [1, 1]} : vector<1x1024xf32> to vector<1x256xf32>
    %cst_75 = arith.constant 5.000000e-01 : f32
    %223 = vector.broadcast %cst_75 : f32 to vector<1x256xf32>
    %224 = arith.mulf %223, %222 : vector<1x256xf32>
    %225 = math.tanh %224 : vector<1x256xf32>
    %cst_76 = arith.constant 5.000000e-01 : f32
    %226 = vector.broadcast %cst_76 : f32 to vector<1x256xf32>
    %227 = arith.mulf %226, %225 : vector<1x256xf32>
    %cst_77 = arith.constant 5.000000e-01 : f32
    %228 = vector.broadcast %cst_77 : f32 to vector<1x256xf32>
    %229 = arith.addf %227, %228 : vector<1x256xf32>
    %230 = vector.extract_strided_slice %221 {offsets = [0, 256], sizes = [1, 256], strides = [1, 1]} : vector<1x1024xf32> to vector<1x256xf32>
    %cst_78 = arith.constant 5.000000e-01 : f32
    %231 = vector.broadcast %cst_78 : f32 to vector<1x256xf32>
    %232 = arith.mulf %231, %230 : vector<1x256xf32>
    %233 = math.tanh %232 : vector<1x256xf32>
    %cst_79 = arith.constant 5.000000e-01 : f32
    %234 = vector.broadcast %cst_79 : f32 to vector<1x256xf32>
    %235 = arith.mulf %234, %233 : vector<1x256xf32>
    %cst_80 = arith.constant 5.000000e-01 : f32
    %236 = vector.broadcast %cst_80 : f32 to vector<1x256xf32>
    %237 = arith.addf %235, %236 : vector<1x256xf32>
    %238 = vector.extract_strided_slice %221 {offsets = [0, 512], sizes = [1, 256], strides = [1, 1]} : vector<1x1024xf32> to vector<1x256xf32>
    %239 = math.tanh %238 : vector<1x256xf32>
    %240 = vector.extract_strided_slice %221 {offsets = [0, 768], sizes = [1, 256], strides = [1, 1]} : vector<1x1024xf32> to vector<1x256xf32>
    %cst_81 = arith.constant 5.000000e-01 : f32
    %241 = vector.broadcast %cst_81 : f32 to vector<1x256xf32>
    %242 = arith.mulf %241, %240 : vector<1x256xf32>
    %243 = math.tanh %242 : vector<1x256xf32>
    %cst_82 = arith.constant 5.000000e-01 : f32
    %244 = vector.broadcast %cst_82 : f32 to vector<1x256xf32>
    %245 = arith.mulf %244, %243 : vector<1x256xf32>
    %cst_83 = arith.constant 5.000000e-01 : f32
    %246 = vector.broadcast %cst_83 : f32 to vector<1x256xf32>
    %247 = arith.addf %245, %246 : vector<1x256xf32>
    %248 = arith.mulf %237, %216 : vector<1x256xf32>
    %249 = arith.mulf %229, %239 : vector<1x256xf32>
    %250 = arith.addf %248, %249 : vector<1x256xf32>
    %251 = math.tanh %250 : vector<1x256xf32>
    %252 = arith.mulf %247, %251 : vector<1x256xf32>
    %c8_i32_84 = arith.constant 8 : i32
    %253 = arith.muli %arg0, %c8_i32_84 : i32
    %c5_i32 = arith.constant 5 : i32
    %254 = arith.addi %253, %c5_i32 : i32
    %255 = arith.cmpi slt, %254, %10 : i32
    %256 = arith.select %255, %252, %215 : vector<1x256xf32>
    %257 = arith.select %255, %250, %216 : vector<1x256xf32>
    %c5 = arith.constant 5 : index
    %c0_85 = arith.constant 0 : index
    %258 = vector.load %arg8[%c5, %c0_85] : memref<8x256xf32, #tpu.memory_space<vmem>>, vector<1x256xf32>
    tpu.vector_store %arg8[%c5, %c0_85], %256 {strides = array<i32>} : memref<8x256xf32, #tpu.memory_space<vmem>>, vector<1x256xf32>,
    %259 = vector.extract_strided_slice %8 {offsets = [6, 0], sizes = [1, 1024], strides = [1, 1]} : vector<8x1024xf32> to vector<1x1024xf32>
    %260 = arith.truncf %256 : vector<1x256xf32> to vector<1x256xbf16>
    %cst_86 = arith.constant dense<0.000000e+00> : vector<1x1024xf32>
    %261 = tpu.matmul %260, %9, %cst_86 {dimension_numbers = #tpu.dot_dimension_numbers<[1], [0], [0], [1], [0, 0, 1, 1], [], []>} : vector<1x256xbf16>, vector<256x1024xbf16>, vector<1x1024xf32> -> vector<1x1024xf32>
    %262 = arith.addf %259, %261 : vector<1x1024xf32>
    %263 = vector.extract_strided_slice %262 {offsets = [0, 0], sizes = [1, 256], strides = [1, 1]} : vector<1x1024xf32> to vector<1x256xf32>
    %cst_87 = arith.constant 5.000000e-01 : f32
    %264 = vector.broadcast %cst_87 : f32 to vector<1x256xf32>
    %265 = arith.mulf %264, %263 : vector<1x256xf32>
    %266 = math.tanh %265 : vector<1x256xf32>
    %cst_88 = arith.constant 5.000000e-01 : f32
    %267 = vector.broadcast %cst_88 : f32 to vector<1x256xf32>
    %268 = arith.mulf %267, %266 : vector<1x256xf32>
    %cst_89 = arith.constant 5.000000e-01 : f32
    %269 = vector.broadcast %cst_89 : f32 to vector<1x256xf32>
    %270 = arith.addf %268, %269 : vector<1x256xf32>
    %271 = vector.extract_strided_slice %262 {offsets = [0, 256], sizes = [1, 256], strides = [1, 1]} : vector<1x1024xf32> to vector<1x256xf32>
    %cst_90 = arith.constant 5.000000e-01 : f32
    %272 = vector.broadcast %cst_90 : f32 to vector<1x256xf32>
    %273 = arith.mulf %272, %271 : vector<1x256xf32>
    %274 = math.tanh %273 : vector<1x256xf32>
    %cst_91 = arith.constant 5.000000e-01 : f32
    %275 = vector.broadcast %cst_91 : f32 to vector<1x256xf32>
    %276 = arith.mulf %275, %274 : vector<1x256xf32>
    %cst_92 = arith.constant 5.000000e-01 : f32
    %277 = vector.broadcast %cst_92 : f32 to vector<1x256xf32>
    %278 = arith.addf %276, %277 : vector<1x256xf32>
    %279 = vector.extract_strided_slice %262 {offsets = [0, 512], sizes = [1, 256], strides = [1, 1]} : vector<1x1024xf32> to vector<1x256xf32>
    %280 = math.tanh %279 : vector<1x256xf32>
    %281 = vector.extract_strided_slice %262 {offsets = [0, 768], sizes = [1, 256], strides = [1, 1]} : vector<1x1024xf32> to vector<1x256xf32>
    %cst_93 = arith.constant 5.000000e-01 : f32
    %282 = vector.broadcast %cst_93 : f32 to vector<1x256xf32>
    %283 = arith.mulf %282, %281 : vector<1x256xf32>
    %284 = math.tanh %283 : vector<1x256xf32>
    %cst_94 = arith.constant 5.000000e-01 : f32
    %285 = vector.broadcast %cst_94 : f32 to vector<1x256xf32>
    %286 = arith.mulf %285, %284 : vector<1x256xf32>
    %cst_95 = arith.constant 5.000000e-01 : f32
    %287 = vector.broadcast %cst_95 : f32 to vector<1x256xf32>
    %288 = arith.addf %286, %287 : vector<1x256xf32>
    %289 = arith.mulf %278, %257 : vector<1x256xf32>
    %290 = arith.mulf %270, %280 : vector<1x256xf32>
    %291 = arith.addf %289, %290 : vector<1x256xf32>
    %292 = math.tanh %291 : vector<1x256xf32>
    %293 = arith.mulf %288, %292 : vector<1x256xf32>
    %c8_i32_96 = arith.constant 8 : i32
    %294 = arith.muli %arg0, %c8_i32_96 : i32
    %c6_i32 = arith.constant 6 : i32
    %295 = arith.addi %294, %c6_i32 : i32
    %296 = arith.cmpi slt, %295, %10 : i32
    %297 = arith.select %296, %293, %256 : vector<1x256xf32>
    %298 = arith.select %296, %291, %257 : vector<1x256xf32>
    %c6 = arith.constant 6 : index
    %c0_97 = arith.constant 0 : index
    %299 = vector.load %arg8[%c6, %c0_97] : memref<8x256xf32, #tpu.memory_space<vmem>>, vector<1x256xf32>
    tpu.vector_store %arg8[%c6, %c0_97], %297 {strides = array<i32>} : memref<8x256xf32, #tpu.memory_space<vmem>>, vector<1x256xf32>,
    %300 = vector.extract_strided_slice %8 {offsets = [7, 0], sizes = [1, 1024], strides = [1, 1]} : vector<8x1024xf32> to vector<1x1024xf32>
    %301 = arith.truncf %297 : vector<1x256xf32> to vector<1x256xbf16>
    %cst_98 = arith.constant dense<0.000000e+00> : vector<1x1024xf32>
    %302 = tpu.matmul %301, %9, %cst_98 {dimension_numbers = #tpu.dot_dimension_numbers<[1], [0], [0], [1], [0, 0, 1, 1], [], []>} : vector<1x256xbf16>, vector<256x1024xbf16>, vector<1x1024xf32> -> vector<1x1024xf32>
    %303 = arith.addf %300, %302 : vector<1x1024xf32>
    %304 = vector.extract_strided_slice %303 {offsets = [0, 0], sizes = [1, 256], strides = [1, 1]} : vector<1x1024xf32> to vector<1x256xf32>
    %cst_99 = arith.constant 5.000000e-01 : f32
    %305 = vector.broadcast %cst_99 : f32 to vector<1x256xf32>
    %306 = arith.mulf %305, %304 : vector<1x256xf32>
    %307 = math.tanh %306 : vector<1x256xf32>
    %cst_100 = arith.constant 5.000000e-01 : f32
    %308 = vector.broadcast %cst_100 : f32 to vector<1x256xf32>
    %309 = arith.mulf %308, %307 : vector<1x256xf32>
    %cst_101 = arith.constant 5.000000e-01 : f32
    %310 = vector.broadcast %cst_101 : f32 to vector<1x256xf32>
    %311 = arith.addf %309, %310 : vector<1x256xf32>
    %312 = vector.extract_strided_slice %303 {offsets = [0, 256], sizes = [1, 256], strides = [1, 1]} : vector<1x1024xf32> to vector<1x256xf32>
    %cst_102 = arith.constant 5.000000e-01 : f32
    %313 = vector.broadcast %cst_102 : f32 to vector<1x256xf32>
    %314 = arith.mulf %313, %312 : vector<1x256xf32>
    %315 = math.tanh %314 : vector<1x256xf32>
    %cst_103 = arith.constant 5.000000e-01 : f32
    %316 = vector.broadcast %cst_103 : f32 to vector<1x256xf32>
    %317 = arith.mulf %316, %315 : vector<1x256xf32>
    %cst_104 = arith.constant 5.000000e-01 : f32
    %318 = vector.broadcast %cst_104 : f32 to vector<1x256xf32>
    %319 = arith.addf %317, %318 : vector<1x256xf32>
    %320 = vector.extract_strided_slice %303 {offsets = [0, 512], sizes = [1, 256], strides = [1, 1]} : vector<1x1024xf32> to vector<1x256xf32>
    %321 = math.tanh %320 : vector<1x256xf32>
    %322 = vector.extract_strided_slice %303 {offsets = [0, 768], sizes = [1, 256], strides = [1, 1]} : vector<1x1024xf32> to vector<1x256xf32>
    %cst_105 = arith.constant 5.000000e-01 : f32
    %323 = vector.broadcast %cst_105 : f32 to vector<1x256xf32>
    %324 = arith.mulf %323, %322 : vector<1x256xf32>
    %325 = math.tanh %324 : vector<1x256xf32>
    %cst_106 = arith.constant 5.000000e-01 : f32
    %326 = vector.broadcast %cst_106 : f32 to vector<1x256xf32>
    %327 = arith.mulf %326, %325 : vector<1x256xf32>
    %cst_107 = arith.constant 5.000000e-01 : f32
    %328 = vector.broadcast %cst_107 : f32 to vector<1x256xf32>
    %329 = arith.addf %327, %328 : vector<1x256xf32>
    %330 = arith.mulf %319, %298 : vector<1x256xf32>
    %331 = arith.mulf %311, %321 : vector<1x256xf32>
    %332 = arith.addf %330, %331 : vector<1x256xf32>
    %333 = math.tanh %332 : vector<1x256xf32>
    %334 = arith.mulf %329, %333 : vector<1x256xf32>
    %c8_i32_108 = arith.constant 8 : i32
    %335 = arith.muli %arg0, %c8_i32_108 : i32
    %c7_i32 = arith.constant 7 : i32
    %336 = arith.addi %335, %c7_i32 : i32
    %337 = arith.cmpi slt, %336, %10 : i32
    %338 = arith.select %337, %334, %297 : vector<1x256xf32>
    %339 = arith.select %337, %332, %298 : vector<1x256xf32>
    %c7 = arith.constant 7 : index
    %c0_109 = arith.constant 0 : index
    %340 = vector.load %arg8[%c7, %c0_109] : memref<8x256xf32, #tpu.memory_space<vmem>>, vector<1x256xf32>
    tpu.vector_store %arg8[%c7, %c0_109], %338 {strides = array<i32>} : memref<8x256xf32, #tpu.memory_space<vmem>>, vector<1x256xf32>,
    %c0_110 = arith.constant 0 : index
    %c0_111 = arith.constant 0 : index
    %341 = vector.load %arg9[%c0_110, %c0_111] : memref<1x256xf32, #tpu.memory_space<vmem>>, vector<1x256xf32>
    tpu.vector_store %arg9[%c0_110, %c0_111], %338 {strides = array<i32>} : memref<1x256xf32, #tpu.memory_space<vmem>>, vector<1x256xf32>,
    %c0_112 = arith.constant 0 : index
    %c0_113 = arith.constant 0 : index
    %342 = vector.load %arg10[%c0_112, %c0_113] : memref<1x256xf32, #tpu.memory_space<vmem>>, vector<1x256xf32>
    tpu.vector_store %arg10[%c0_112, %c0_113], %339 {strides = array<i32>} : memref<1x256xf32, #tpu.memory_space<vmem>>, vector<1x256xf32>,
    return
  }
  func.func @transform_0(%arg0: i32, %arg1: memref<1xi32, #tpu.memory_space<smem>>) -> (i32, i32) {
    %c0_i32 = arith.constant 0 : i32
    %c0_i32_0 = arith.constant 0 : i32
    return %arg0, %c0_i32 : i32, i32
  }
  func.func @transform_1(%arg0: i32, %arg1: memref<1xi32, #tpu.memory_space<smem>>) -> (i32, i32) {
    %c0_i32 = arith.constant 0 : i32
    %c0_i32_0 = arith.constant 0 : i32
    %c0_i32_1 = arith.constant 0 : i32
    return %c0_i32, %c0_i32_0 : i32, i32
  }
  func.func @transform_2(%arg0: i32, %arg1: memref<1xi32, #tpu.memory_space<smem>>) -> (i32, i32) {
    %c0_i32 = arith.constant 0 : i32
    %c0_i32_0 = arith.constant 0 : i32
    %c0_i32_1 = arith.constant 0 : i32
    return %c0_i32, %c0_i32_0 : i32, i32
  }
  func.func @transform_3(%arg0: i32, %arg1: memref<1xi32, #tpu.memory_space<smem>>) -> (i32, i32) {
    %c0_i32 = arith.constant 0 : i32
    %c0_i32_0 = arith.constant 0 : i32
    %c0_i32_1 = arith.constant 0 : i32
    return %c0_i32, %c0_i32_0 : i32, i32
  }
  func.func @transform_4(%arg0: i32, %arg1: memref<1xi32, #tpu.memory_space<smem>>) -> (i32, i32) {
    %c0_i32 = arith.constant 0 : i32
    %c0_i32_0 = arith.constant 0 : i32
    %c0_i32_1 = arith.constant 0 : i32
    return %c0_i32, %c0_i32_0 : i32, i32
  }
  func.func @transform_5(%arg0: i32, %arg1: memref<1xi32, #tpu.memory_space<smem>>) -> (i32, i32) {
    %c0_i32 = arith.constant 0 : i32
    %c0_i32_0 = arith.constant 0 : i32
    %c0_i32_1 = arith.constant 0 : i32
    return %c0_i32, %c0_i32_0 : i32, i32
  }
  func.func @transform_6(%arg0: i32, %arg1: memref<1xi32, #tpu.memory_space<smem>>) -> (i32, i32) {
    %c0_i32 = arith.constant 0 : i32
    %c0_i32_0 = arith.constant 0 : i32
    return %arg0, %c0_i32 : i32, i32
  }
  func.func @transform_7(%arg0: i32, %arg1: memref<1xi32, #tpu.memory_space<smem>>) -> (i32, i32) {
    %c0_i32 = arith.constant 0 : i32
    %c0_i32_0 = arith.constant 0 : i32
    %c0_i32_1 = arith.constant 0 : i32
    return %c0_i32, %c0_i32_0 : i32, i32
  }
  func.func @transform_8(%arg0: i32, %arg1: memref<1xi32, #tpu.memory_space<smem>>) -> (i32, i32) {
    %c0_i32 = arith.constant 0 : i32
    %c0_i32_0 = arith.constant 0 : i32
    %c0_i32_1 = arith.constant 0 : i32
    return %c0_i32, %c0_i32_0 : i32, i32
  }
}

</mosaic_0001>

<bundles_post_ra>
// kernel: encoder_rnn_encode.1
= control target key start
LH: loop header
LB: loop body
LE: loop exit
PB: predicated region body
PF: predicated region fallthrough
CT: control target
= control target key end

     0   :  { %16 = vsyncpa [#allocation5], 0  ;;  %s6666_s0 = inlined_call_operand.<no memory space> [shape: s32[1], index: 0, kind: input, shape index: {}]   ;;  %s6667_s1 = inlined_call_operand.vmem [shape: bf16[8,256], index: 1, kind: input, shape index: {}]   ;;  %s6668_s2 = inlined_call_operand.hbm [shape: bf16[256,1024], index: 2, kind: input, shape index: {}]   ;;  %s6669_s3 = inlined_call_operand.hbm [shape: bf16[256,1024], index: 3, kind: input, shape index: {}]   ;;  %s6670_s4 = inlined_call_operand.vmem [shape: f32[1,1024], index: 4, kind: input, shape index: {}]   ;;  %s6671_s5 = inlined_call_operand.vmem [shape: f32[1,256], index: 5, kind: input, shape index: {}]   ;;  %s6672_s6 = inlined_call_operand.vmem [shape: f32[1,256], index: 6, kind: input, shape index: {}]   ;;  %s6673_s7 = inlined_call_operand.vmem [shape: f32[8,256], index: 7, kind: output, shape index: {0}]   ;;  %s6674_s8 = inlined_call_operand.hbm [shape: f32[1,256], index: 8, kind: output, shape index: {1}]   ;;  %s6675_s9 = inlined_call_operand.hbm [shape: f32[1,256], index: 9, kind: output, shape index: {2}]  }
   0x1   :  { %17 = vsyncpa [#allocation8], 0 }
   0x2   :  { %18 = vsyncpa [#allocation6], 0 }
   0x3   :  { %19 = vsyncpa [#allocation11], 0  ;;  %s4646_s30 = smov [#allocation4]  }
   0x4   :  { %s27_s10 = sshll.u32 %s4646_s30, 4  ;;  %s28_s10 = int_to_ptr.vmem [resolvable:$true] %s27_s10 }
   0x5   :  { %s4566_s11 = scalar_lea.vmem %s28_s10, 16384  ;;  %p4571_p1 = scmp.lt.s32.totalorder %s28_s10, %s28_s10 }
   0x6   :  { %p4567_p0 = scmp.ne.s32.totalorder %s28_s10, %s4566_s11  ;;  %p4572_p2 = scmp.lt.s32.totalorder %s4566_s11, %s4566_s11 }
   0x8   :  { %p4573_p3 = por %p4572_p2, %p4571_p1 }
   0xa   :  { %p4574_p4 = pnand %p4573_p3, %p4567_p0 }
   0xc   :  { %4577 = shalt.err (!%p4574_p4)
}
   0xd   :  { %s4647_s12 = smov 512   ;;  %s4648_s13 = smov 32  }
   0xe   :  { %33 = dma.hbm_to_vmem [thread:$0]  %s6668_s2, 16384, %s28_s10, [#allocation5], %s4647_s12, %s4647_s12, %s4648_s13  }
   0xf   :  { %s4649_s16 = smov [#allocation7]  }
  0x10   :  { %s39_s17 = sshll.u32 %s4649_s16, 4  ;;  %s40_s17 = int_to_ptr.vmem [resolvable:$true] %s39_s17 }
  0x11   :  { %s4586_s18 = scalar_lea.vmem %s40_s17, 16384  ;;  %p4591_p6 = scmp.lt.s32.totalorder %s40_s17, %s40_s17 }
  0x12   :  { %p4587_p5 = scmp.ne.s32.totalorder %s40_s17, %s4586_s18  ;;  %p4592_p7 = scmp.lt.s32.totalorder %s4586_s18, %s4586_s18 }
  0x14   :  { %p4593_p8 = por %p4592_p7, %p4591_p6 }
  0x16   :  { %p4594_p9 = pnand %p4593_p8, %p4587_p5 }
  0x18   :  { %4597 = shalt.err (!%p4594_p9)
}
  0x19   :  { %45 = dma.hbm_to_vmem [thread:$0]  %s6669_s3, 16384, %s40_s17, [#allocation8], %s4647_s12, %s4647_s12, %s4648_s13  }
  0x1a   :  { %4638 = dma.done.wait [#allocation5], 16384  }
  0x1b   :  { %4639 = vsyncadd [#allocation5], 4294950912 }
  0x1c   :  { %4640 = dma.done.wait [#allocation8], 16384  }
  0x1d   :  { %4641 = vsyncadd [#allocation8], 4294950912  ;;  %v127_v0 = vld [vmem:[#allocation4 + $0x1c0] sm:$0xff]  ;;  %v128_v2 = vld [vmem:[#allocation4 + $0x1c8] sm:$0xff]  ;;  %p4374_p10 = scmp.gt.s32.totalorder %s6666_s0, 0  ;;  %p4375_p11 = scmp.gt.s32.totalorder %s6666_s0, 1 }
  0x1e   :  { %v131_v1 = vld [vmem:[#allocation4 + $0x1e0] sm:$0xff]  ;;  %v132_v4 = vld [vmem:[#allocation4 + $0x1e8] sm:$0xff]  ;;  %p4377_p12 = scmp.gt.s32.totalorder %s6666_s0, 2  ;;  %p4379_p13 = scmp.gt.s32.totalorder %s6666_s0, 3 }
  0x1f   :  { %v4175_v3 = vcombine.high %v127_v0, %v131_v1  ;;  %v4174_v5 = vcombine.low %v127_v0, %v131_v1  ;;  %v119_v6 = vld [vmem:[#allocation4 + $0x180] sm:$0xff]  ;;  %v4177_v8 = vcombine.high %v128_v2, %v132_v4  ;;  %v4176_v9 = vcombine.low %v128_v2, %v132_v4  ;;  %v120_v11 = vld [vmem:[#allocation4 + $0x188] sm:$0xff]  ;;  %s2057_s25 = scalar_select %p4374_p10, 1, 0 }
  0x20   :  { %v123_v7 = vld [vmem:[#allocation4 + $0x1a0] sm:$0xff]  ;;  %v124_v12 = vld [vmem:[#allocation4 + $0x1a8] sm:$0xff]  ;;  %s2330_s30 = scalar_select %p4375_p11, 1, 0 }
  0x21   :  { %v4167_v10 = vcombine.high %v119_v6, %v123_v7  ;;  %v111_v13 = vld [vmem:[#allocation4 + $0x140] sm:$0xff]  ;;  %888 = vmatprep.subr.bf16.mxu0 %v4175_v3  ;;  %v4169_v14 = vcombine.high %v120_v11, %v124_v12  ;;  %v112_v16 = vld [vmem:[#allocation4 + $0x148] sm:$0xff]  ;;  %929 = vmatprep.subr.bf16.mxu1 %v4177_v8  ;;  %v4166_v18 = vcombine.low %v119_v6, %v123_v7  ;;  %s2613_s14 = scalar_select %p4377_p12, 1, 0 }
  0x22   :  { %v115_v15 = vld [vmem:[#allocation4 + $0x160] sm:$0xff]  ;;  %v116_v17 = vld [vmem:[#allocation4 + $0x168] sm:$0xff]  ;;  %889 = vmatpush1.bf16.msra.mxu0 %v4174_v5  ;;  %930 = vmatpush1.bf16.msra.mxu1 %v4176_v9  ;;  %v4168_v19 = vcombine.low %v120_v11, %v124_v12  ;;  %s2894_s19 = scalar_select %p4379_p13, 1, 0 }
  0x23   :  { %890 = vmatprep.subr.bf16.mxu0 %v4167_v10  ;;  %v4159_v20 = vcombine.high %v111_v13, %v115_v15  ;;  %931 = vmatprep.subr.bf16.mxu1 %v4169_v14  ;;  %v4161_v21 = vcombine.high %v112_v16, %v116_v17  ;;  %v103_v22 = vld [vmem:[#allocation4 + $0x100] sm:$0xff]  ;;  %v104_v24 = vld [vmem:[#allocation4 + $0x108] sm:$0xff]  ;;  %v4158_v26 = vcombine.low %v111_v13, %v115_v15  ;;  %p4381_p0 = scmp.gt.s32.totalorder %s6666_s0, 4  ;;  %p4383_p1 = scmp.gt.s32.totalorder %s6666_s0, 5 }
  0x24   :  { %v107_v23 = vld [vmem:[#allocation4 + $0x120] sm:$0xff]  ;;  %v108_v25 = vld [vmem:[#allocation4 + $0x128] sm:$0xff]  ;;  %v4160_v27 = vcombine.low %v112_v16, %v116_v17  ;;  %p4385_p2 = scmp.gt.s32.totalorder %s6666_s0, 6  ;;  %p4387_p3 = scmp.gt.s32.totalorder %s6666_s0, 7 }
  0x25   :  { %v4151_v28 = vcombine.high %v103_v22, %v107_v23  ;;  %v4153_v29 = vcombine.high %v104_v24, %v108_v25  ;;  %v95_v30 = vld [vmem:[#allocation4 + $0xc0] sm:$0xff]  ;;  %v96_v32 = vld [vmem:[#allocation4 + $0xc8] sm:$0xff]  ;;  %v4150_v34 = vcombine.low %v103_v22, %v107_v23  ;;  %v4152_v35 = vcombine.low %v104_v24, %v108_v25  ;;  %s3180_s21 = scalar_select %p4381_p0, 1, 0 }
  0x26   :  { %891 = vmatpush1.bf16.msra.mxu0 %v4166_v18  ;;  %932 = vmatpush1.bf16.msra.mxu1 %v4168_v19  ;;  %v99_v31 = vld [vmem:[#allocation4 + $0xe0] sm:$0xff]  ;;  %v100_v33 = vld [vmem:[#allocation4 + $0xe8] sm:$0xff]  ;;  %s3745_s28 = scalar_select %p4385_p2, 1, 0 }
  0x27   :  { %892 = vmatprep.subr.bf16.mxu0 %v4159_v20  ;;  %933 = vmatprep.subr.bf16.mxu1 %v4161_v21  ;;  %v4143_v36 = vcombine.high %v95_v30, %v99_v31  ;;  %v4145_v37 = vcombine.high %v96_v32, %v100_v33  ;;  %v87_v38 = vld [vmem:[#allocation4 + $0x80] sm:$0xff]  ;;  %v88_v40 = vld [vmem:[#allocation4 + $0x88] sm:$0xff]  ;;  %v4142_v42 = vcombine.low %v95_v30, %v99_v31  ;;  %s4026_s12 = scalar_select %p4387_p3, 1, 0 }
  0x28   :  { %v91_v39 = vld [vmem:[#allocation4 + $0xa0] sm:$0xff]  ;;  %v92_v41 = vld [vmem:[#allocation4 + $0xa8] sm:$0xff]  ;;  %v4144_v43 = vcombine.low %v96_v32, %v100_v33  ;;  %s4651_s0 = smov [#allocation10]  }
  0x29   :  { %v4135_v44 = vcombine.high %v87_v38, %v91_v39  ;;  %v4137_v45 = vcombine.high %v88_v40, %v92_v41  ;;  %v79_v46 = vld [vmem:[#allocation4 + $0x40] sm:$0xff]  ;;  %v80_v48 = vld [vmem:[#allocation4 + $0x48] sm:$0xff]  ;;  %v4134_v50 = vcombine.low %v87_v38, %v91_v39  ;;  %v4136_v51 = vcombine.low %v88_v40, %v92_v41  ;;  %s4100_s13 = sshll.u32 %s4651_s0, 4  ;;  %s4101_s13 = int_to_ptr.vmem [resolvable:$true] %s4100_s13 }
  0x2a   :  { %893 = vmatpush1.bf16.msra.mxu0 %v4158_v26  ;;  %934 = vmatpush1.bf16.msra.mxu1 %v4160_v27  ;;  %v83_v47 = vld [vmem:[#allocation4 + $0x60] sm:$0xff]  ;;  %v84_v49 = vld [vmem:[#allocation4 + $0x68] sm:$0xff]  ;;  %p4603_p5 = scmp.lt.s32.totalorder %s4101_s13, %s4101_s13 }
  0x2b   :  { %894 = vmatprep.subr.bf16.mxu0 %v4151_v28  ;;  %935 = vmatprep.subr.bf16.mxu1 %v4153_v29  ;;  %v4127_v52 = vcombine.high %v79_v46, %v83_v47  ;;  %v4712_v53 = vld [vmem:[%s6667_s1] sm:$0xff]  ;;  %v4129_v54 = vcombine.high %v80_v48, %v84_v49  ;;  %v72_v58 = vld [vmem:[#allocation4 + $0x8] sm:$0xff]  ;;  %v4126_v60 = vcombine.low %v79_v46, %v83_v47 }
  0x2c   :  { %v71_v55 = vld [vmem:[#allocation4] sm:$0xff]  ;;  %v4716_v57 = vcombine.high %v4712_v53, %v4712_v53  ;;  %v76_v59 = vld [vmem:[#allocation4 + $0x28] sm:$0xff]  ;;  %v4128_v61 = vcombine.low %v80_v48, %v84_v49 }
  0x2d   :  { %v75_v56 = vld [vmem:[#allocation4 + $0x20] sm:$0xff]  ;;  %v4121_v63 = vcombine.high %v72_v58, %v76_v59  ;;  %v192_v2 = vld [vmem:[#allocation4 + $0x3c8] sm:$0xff]  ;;  %v4120_v5 = vcombine.low %v72_v58, %v76_v59 }
  0x2e   :  { %895 = vmatpush1.bf16.msra.mxu0 %v4150_v34  ;;  %936 = vmatpush1.bf16.msra.mxu1 %v4152_v35  ;;  %v4119_v62 = vcombine.high %v71_v55, %v75_v56  ;;  %v191_v0 = vld [vmem:[#allocation4 + $0x3c0] sm:$0xff]  ;;  %v196_v3 = vld [vmem:[#allocation4 + $0x3e8] sm:$0xff]  ;;  %v4118_v4 = vcombine.low %v71_v55, %v75_v56 }
  0x2f   :  { %896 = vmatprep.subr.bf16.mxu0 %v4143_v36  ;;  %937 = vmatprep.subr.bf16.mxu1 %v4145_v37  ;;  %v195_v1 = vld [vmem:[#allocation4 + $0x3e0] sm:$0xff]  ;;  %v4241_v7 = vcombine.high %v192_v2, %v196_v3  ;;  %v184_v10 = vld [vmem:[#allocation4 + $0x388] sm:$0xff]  ;;  %v4240_v13 = vcombine.low %v192_v2, %v196_v3  ;;  %v129_v2 = vld [vmem:[#allocation4 + $0x1d0] sm:$0xff] }
  0x30   :  { %920 = vmatprep.mubr.bf16.mxu0 %v4716_v57  ;;  %961 = vmatprep.mubr.bf16.mxu1 %v4716_v57  ;;  %v4239_v6 = vcombine.high %v191_v0, %v195_v1  ;;  %v183_v8 = vld [vmem:[#allocation4 + $0x380] sm:$0xff]  ;;  %v188_v11 = vld [vmem:[#allocation4 + $0x3a8] sm:$0xff]  ;;  %v4238_v12 = vcombine.low %v191_v0, %v195_v1  ;;  %v133_v3 = vld [vmem:[#allocation4 + $0x1f0] sm:$0xff] }
  0x31   :  { %v187_v9 = vld [vmem:[#allocation4 + $0x3a0] sm:$0xff]  ;;  %v4233_v15 = vcombine.high %v184_v10, %v188_v11  ;;  %v176_v18 = vld [vmem:[#allocation4 + $0x348] sm:$0xff]  ;;  %v4232_v21 = vcombine.low %v184_v10, %v188_v11  ;;  %v121_v11 = vld [vmem:[#allocation4 + $0x190] sm:$0xff] }
  0x32   :  { %897 = vmatpush1.bf16.msra.mxu0 %v4142_v42  ;;  %938 = vmatpush1.bf16.msra.mxu1 %v4144_v43  ;;  %v4231_v14 = vcombine.high %v183_v8, %v187_v9  ;;  %v175_v16 = vld [vmem:[#allocation4 + $0x340] sm:$0xff]  ;;  %v180_v19 = vld [vmem:[#allocation4 + $0x368] sm:$0xff]  ;;  %v4230_v20 = vcombine.low %v183_v8, %v187_v9  ;;  %v4179_v9 = vcombine.high %v129_v2, %v133_v3 }
  0x33   :  { %898 = vmatprep.subr.bf16.mxu0 %v4135_v44  ;;  %939 = vmatprep.subr.bf16.mxu1 %v4137_v45  ;;  %v179_v17 = vld [vmem:[#allocation4 + $0x360] sm:$0xff]  ;;  %v4225_v23 = vcombine.high %v176_v18, %v180_v19  ;;  %v168_v26 = vld [vmem:[#allocation4 + $0x308] sm:$0xff]  ;;  %v4224_v29 = vcombine.low %v176_v18, %v180_v19 }
  0x34   :  { %v4223_v22 = vcombine.high %v175_v16, %v179_v17  ;;  %v167_v24 = vld [vmem:[#allocation4 + $0x300] sm:$0xff]  ;;  %v172_v27 = vld [vmem:[#allocation4 + $0x328] sm:$0xff]  ;;  %v4222_v28 = vcombine.low %v175_v16, %v179_v17  ;;  %v126_v16 = vld [vmem:[#allocation4 + $0x1b8] sm:$0xff]  ;;  %v4178_v17 = vcombine.low %v129_v2, %v133_v3 }
  0x35   :  { %v171_v25 = vld [vmem:[#allocation4 + $0x320] sm:$0xff]  ;;  %v4217_v31 = vcombine.high %v168_v26, %v172_v27  ;;  %v160_v34 = vld [vmem:[#allocation4 + $0x2c8] sm:$0xff]  ;;  %v4216_v37 = vcombine.low %v168_v26, %v172_v27 }
  0x36   :  { %899 = vmatpush1.bf16.msra.mxu0 %v4134_v50  ;;  %940 = vmatpush1.bf16.msra.mxu1 %v4136_v51  ;;  %v4215_v30 = vcombine.high %v167_v24, %v171_v25  ;;  %v159_v32 = vld [vmem:[#allocation4 + $0x2c0] sm:$0xff]  ;;  %v164_v35 = vld [vmem:[#allocation4 + $0x2e8] sm:$0xff]  ;;  %v4214_v36 = vcombine.low %v167_v24, %v171_v25  ;;  %v118_v24 = vld [vmem:[#allocation4 + $0x178] sm:$0xff] }
  0x37   :  { %900 = vmatprep.subr.bf16.mxu0 %v4127_v52  ;;  %941 = vmatprep.subr.bf16.mxu1 %v4129_v54  ;;  %v163_v33 = vld [vmem:[#allocation4 + $0x2e0] sm:$0xff]  ;;  %v4209_v39 = vcombine.high %v160_v34, %v164_v35  ;;  %v152_v42 = vld [vmem:[#allocation4 + $0x288] sm:$0xff]  ;;  %v4208_v45 = vcombine.low %v160_v34, %v164_v35 }
  0x38   :  { %v4207_v38 = vcombine.high %v159_v32, %v163_v33  ;;  %v151_v40 = vld [vmem:[#allocation4 + $0x280] sm:$0xff]  ;;  %v156_v43 = vld [vmem:[#allocation4 + $0x2a8] sm:$0xff]  ;;  %v4206_v44 = vcombine.low %v159_v32, %v163_v33  ;;  %v110_v32 = vld [vmem:[#allocation4 + $0x138] sm:$0xff] }
  0x39   :  { %v155_v41 = vld [vmem:[#allocation4 + $0x2a0] sm:$0xff]  ;;  %v4201_v47 = vcombine.high %v152_v42, %v156_v43  ;;  %v144_v50 = vld [vmem:[#allocation4 + $0x248] sm:$0xff]  ;;  %v4200_v54 = vcombine.low %v152_v42, %v156_v43 }
  0x3a   :  { %901 = vmatpush1.bf16.msra.mxu0 %v4126_v60  ;;  %942 = vmatpush1.bf16.msra.mxu1 %v4128_v61  ;;  %v4199_v46 = vcombine.high %v151_v40, %v155_v41  ;;  %v143_v48 = vld [vmem:[#allocation4 + $0x240] sm:$0xff]  ;;  %v148_v51 = vld [vmem:[#allocation4 + $0x268] sm:$0xff]  ;;  %v4198_v52 = vcombine.low %v151_v40, %v155_v41  ;;  %v102_v40 = vld [vmem:[#allocation4 + $0xf8] sm:$0xff] }
  0x3b   :  { %902 = vmatprep.subr.bf16.mxu0 %v4119_v62  ;;  %943 = vmatprep.subr.bf16.mxu1 %v4121_v63  ;;  %v147_v49 = vld [vmem:[#allocation4 + $0x260] sm:$0xff]  ;;  %v4193_v56 = vcombine.high %v144_v50, %v148_v51  ;;  %v136_v60 = vld [vmem:[#allocation4 + $0x208] sm:$0xff]  ;;  %v4192_v63 = vcombine.low %v144_v50, %v148_v51 }
  0x3c   :  { %v4191_v55 = vcombine.high %v143_v48, %v147_v49  ;;  %v135_v58 = vld [vmem:[#allocation4 + $0x200] sm:$0xff]  ;;  %v140_v61 = vld [vmem:[#allocation4 + $0x228] sm:$0xff]  ;;  %v4190_v62 = vcombine.low %v143_v48, %v147_v49 }
  0x3d   :  { %v139_v59 = vld [vmem:[#allocation4 + $0x220] sm:$0xff]  ;;  %v4185_v1 = vcombine.high %v136_v60, %v140_v61  ;;  %v4184_v8 = vcombine.low %v136_v60, %v140_v61 }
  0x3e   :  { %903 = vmatpush1.bf16.msra.mxu0 %v4118_v4  ;;  %944 = vmatpush1.bf16.msra.mxu1 %v4120_v5  ;;  %v4183_v0 = vcombine.high %v135_v58, %v139_v59  ;;  %v63_v4 = vlaneseq  ;;  %v130_v5 = vld [vmem:[#allocation4 + $0x1d8] sm:$0xff]  ;;  %v62_v18 = vld [vmem:[%s6671_s5] sm:$0x3] }
  0x3f   :  { %904 = vmatprep.subr.bf16.mxu0 %v4239_v6  ;;  %945 = vmatprep.subr.bf16.mxu1 %v4241_v7  ;;  %v134_v6 = vld [vmem:[#allocation4 + $0x1f8] sm:$0xff]  ;;  %v4182_v7 = vcombine.low %v135_v58, %v139_v59 }
  0x40   :  { %v4181_v10 = vcombine.high %v130_v5, %v134_v6  ;;  %vm4721_vm0 = vcmp.lt.s32.totalorder %v63_v4, 256  ;;  %v4180_v19 = vcombine.low %v130_v5, %v134_v6 }
  0x41   :  { %67 = vst.msk [vmem:[#allocation9] sm:$0x3] %vm4721_vm0, %v62_v18  ;;  %v189_v18 = vld [vmem:[#allocation4 + $0x3b0] sm:$0xff] }
  0x42   :  { %905 = vmatpush2.bf16.msra.mxu0 %v4238_v12  ;;  %946 = vmatpush2.bf16.msra.mxu1 %v4240_v13  ;;  %v125_v12 = vld [vmem:[#allocation4 + $0x1b0] sm:$0xff] }
  0x43   :  { %906 = vmatprep.subr.bf16.mxu0 %v4231_v14  ;;  %947 = vmatprep.subr.bf16.mxu1 %v4233_v15  ;;  %v4727_v14 = vcombine.low %v4712_v53, %v4712_v53  ;;  %v122_v15 = vld [vmem:[#allocation4 + $0x198] sm:$0xff]  ;;  %v117_v53 = vld [vmem:[#allocation4 + $0x170] sm:$0xff]  ;;  %v4170_v25 = vcombine.low %v121_v11, %v125_v12 }
  0x44   :  { %v4172_v26 = vcombine.low %v122_v15, %v126_v16 }
  0x46   :  { %907 = vmatpush2.bf16.msra.mxu0 %v4230_v20  ;;  %948 = vmatpush2.bf16.msra.mxu1 %v4232_v21  ;;  %v4171_v20 = vcombine.high %v121_v11, %v125_v12  ;;  %v4173_v21 = vcombine.high %v122_v15, %v126_v16 }
  0x47   :  { %908 = vmatprep.subr.bf16.mxu0 %v4223_v22  ;;  %949 = vmatprep.subr.bf16.mxu1 %v4225_v23  ;;  %v113_v22 = vld [vmem:[#allocation4 + $0x150] sm:$0xff]  ;;  %v114_v23 = vld [vmem:[#allocation4 + $0x158] sm:$0xff] }
  0x48   :  { %v4163_v27 = vcombine.high %v113_v22, %v117_v53  ;;  %v4162_v33 = vcombine.low %v113_v22, %v117_v53  ;;  %v4164_v34 = vcombine.low %v114_v23, %v118_v24 }
  0x4a   :  { %909 = vmatpush2.bf16.msra.mxu0 %v4222_v28  ;;  %950 = vmatpush2.bf16.msra.mxu1 %v4224_v29  ;;  %v4165_v28 = vcombine.high %v114_v23, %v118_v24  ;;  %v105_v29 = vld [vmem:[#allocation4 + $0x110] sm:$0xff] }
  0x4b   :  { %910 = vmatprep.subr.bf16.mxu0 %v4215_v30  ;;  %951 = vmatprep.subr.bf16.mxu1 %v4217_v31  ;;  %v109_v30 = vld [vmem:[#allocation4 + $0x130] sm:$0xff]  ;;  %v106_v31 = vld [vmem:[#allocation4 + $0x118] sm:$0xff] }
  0x4c   :  { %v4155_v35 = vcombine.high %v105_v29, %v109_v30  ;;  %v4154_v41 = vcombine.low %v105_v29, %v109_v30  ;;  %v4156_v42 = vcombine.low %v106_v31, %v110_v32  ;;  %v177_v24 = vld [vmem:[#allocation4 + $0x350] sm:$0xff] }
  0x4e   :  { %911 = vmatpush2.bf16.msra.mxu0 %v4214_v36  ;;  %952 = vmatpush2.bf16.msra.mxu1 %v4216_v37  ;;  %v4157_v36 = vcombine.high %v106_v31, %v110_v32  ;;  %v97_v37 = vld [vmem:[#allocation4 + $0xd0] sm:$0xff] }
  0x4f   :  { %912 = vmatprep.subr.bf16.mxu0 %v4207_v38  ;;  %953 = vmatprep.subr.bf16.mxu1 %v4209_v39  ;;  %v101_v38 = vld [vmem:[#allocation4 + $0xf0] sm:$0xff]  ;;  %v98_v39 = vld [vmem:[#allocation4 + $0xd8] sm:$0xff] }
  0x50   :  { %v4147_v43 = vcombine.high %v97_v37, %v101_v38  ;;  %v4146_v48 = vcombine.low %v97_v37, %v101_v38  ;;  %v4148_v49 = vcombine.low %v98_v39, %v102_v40  ;;  %v169_v32 = vld [vmem:[#allocation4 + $0x310] sm:$0xff] }
  0x52   :  { %913 = vmatpush2.bf16.msra.mxu0 %v4206_v44  ;;  %954 = vmatpush2.bf16.msra.mxu1 %v4208_v45  ;;  %v89_v44 = vld [vmem:[#allocation4 + $0x90] sm:$0xff] }
  0x53   :  { %914 = vmatprep.subr.bf16.mxu0 %v4199_v46  ;;  %955 = vmatprep.subr.bf16.mxu1 %v4201_v47  ;;  %v93_v45 = vld [vmem:[#allocation4 + $0xb0] sm:$0xff]  ;;  %v90_v46 = vld [vmem:[#allocation4 + $0x98] sm:$0xff] }
  0x54   :  { %v94_v47 = vld [vmem:[#allocation4 + $0xb8] sm:$0xff]  ;;  %v4139_v50 = vcombine.high %v89_v44, %v93_v45  ;;  %v4138_v58 = vcombine.low %v89_v44, %v93_v45 }
  0x55   :  { %v4141_v51 = vcombine.high %v90_v46, %v94_v47  ;;  %v4140_v59 = vcombine.low %v90_v46, %v94_v47  ;;  %v153_v47 = vld [vmem:[#allocation4 + $0x290] sm:$0xff] }
  0x56   :  { %915 = vmatpush2.bf16.msra.mxu0 %v4198_v52  ;;  %956 = vmatpush2.bf16.msra.mxu1 %v4200_v54  ;;  %v81_v52 = vld [vmem:[#allocation4 + $0x50] sm:$0xff] }
  0x57   :  { %916 = vmatprep.subr.bf16.mxu0 %v4191_v55  ;;  %957 = vmatprep.subr.bf16.mxu1 %v4193_v56  ;;  %v85_v54 = vld [vmem:[#allocation4 + $0x70] sm:$0xff]  ;;  %v82_v55 = vld [vmem:[#allocation4 + $0x58] sm:$0xff] }
  0x58   :  { %v86_v56 = vld [vmem:[#allocation4 + $0x78] sm:$0xff]  ;;  %v4131_v60 = vcombine.high %v81_v52, %v85_v54  ;;  %v4130_v2 = vcombine.low %v81_v52, %v85_v54 }
  0x59   :  { %v4133_v61 = vcombine.high %v82_v55, %v86_v56  ;;  %v4132_v3 = vcombine.low %v82_v55, %v86_v56  ;;  %v145_v56 = vld [vmem:[#allocation4 + $0x250] sm:$0xff] }
  0x5a   :  { %917 = vmatpush2.bf16.msra.mxu0 %v4190_v62  ;;  %958 = vmatpush2.bf16.msra.mxu1 %v4192_v63  ;;  %v73_v62 = vld [vmem:[#allocation4 + $0x10] sm:$0xff] }
  0x5b   :  { %918 = vmatprep.subr.bf16.mxu0 %v4183_v0  ;;  %959 = vmatprep.subr.bf16.mxu1 %v4185_v1  ;;  %v77_v63 = vld [vmem:[#allocation4 + $0x30] sm:$0xff]  ;;  %v74_v0 = vld [vmem:[#allocation4 + $0x18] sm:$0xff] }
  0x5c   :  { %v78_v1 = vld [vmem:[#allocation4 + $0x38] sm:$0xff]  ;;  %v4123_v5 = vcombine.high %v73_v62, %v77_v63  ;;  %v4122_v11 = vcombine.low %v73_v62, %v77_v63 }
  0x5d   :  { %v4125_v6 = vcombine.high %v74_v0, %v78_v1  ;;  %v4124_v12 = vcombine.low %v74_v0, %v78_v1  ;;  %v137_v1 = vld [vmem:[#allocation4 + $0x210] sm:$0xff] }
  0x5e   :  { %919 = vmatpush2.bf16.msra.mxu0 %v4182_v7  ;;  %960 = vmatpush2.bf16.msra.mxu1 %v4184_v8  ;;  %v193_v7 = vld [vmem:[#allocation4 + $0x3d0] sm:$0xff] }
  0x5f   :  { %970 = vmatprep.subr.bf16.mxu0 %v4179_v9  ;;  %1011 = vmatprep.subr.bf16.mxu1 %v4181_v10  ;;  %v197_v8 = vld [vmem:[#allocation4 + $0x3f0] sm:$0xff]  ;;  %v194_v9 = vld [vmem:[#allocation4 + $0x3d8] sm:$0xff] }
  0x60   :  { %v198_v10 = vld [vmem:[#allocation4 + $0x3f8] sm:$0xff]  ;;  %v4243_v15 = vcombine.high %v193_v7, %v197_v8 }
  0x61   :  { %921 = vmatmul.mubr.bf16.vlgmr.msra.gmra.mxu0 %v4727_v14  ;;  %962 = vmatmul.mubr.bf16.vlgmr.msra.gmra.mxu1 %v4727_v14  ;;  %v4245_v16 = vcombine.high %v194_v9, %v198_v10  ;;  %v4244_v22 = vcombine.low %v194_v9, %v198_v10 }
  0x62   :  { %971 = vmatpush1.bf16.msra.mxu0 %v4178_v17  ;;  %1012 = vmatpush1.bf16.msra.mxu1 %v4180_v19  ;;  %v185_v17 = vld [vmem:[#allocation4 + $0x390] sm:$0xff]  ;;  %v186_v19 = vld [vmem:[#allocation4 + $0x398] sm:$0xff] }
  0x63   :  { %972 = vmatprep.subr.bf16.mxu0 %v4171_v20  ;;  %1013 = vmatprep.subr.bf16.mxu1 %v4173_v21  ;;  %v190_v20 = vld [vmem:[#allocation4 + $0x3b8] sm:$0xff]  ;;  %v4242_v21 = vcombine.low %v193_v7, %v197_v8  ;;  %v4235_v53 = vcombine.high %v185_v17, %v189_v18 }
  0x64   :  { %1002 = vmatprep.mubr.bf16.mxu0 %v4716_v57  ;;  %1043 = vmatprep.mubr.bf16.mxu1 %v4716_v57  ;;  %v4149_v57 = vcombine.high %v98_v39, %v102_v40  ;;  %v4237_v23 = vcombine.high %v186_v19, %v190_v20  ;;  %v4236_v29 = vcombine.low %v186_v19, %v190_v20  ;;  %v161_v40 = vld [vmem:[#allocation4 + $0x2d0] sm:$0xff] }
  0x66   :  { %973 = vmatpush1.bf16.msra.mxu0 %v4170_v25  ;;  %1014 = vmatpush1.bf16.msra.mxu1 %v4172_v26  ;;  %v181_v25 = vld [vmem:[#allocation4 + $0x370] sm:$0xff]  ;;  %v178_v26 = vld [vmem:[#allocation4 + $0x358] sm:$0xff] }
  0x67   :  { %974 = vmatprep.subr.bf16.mxu0 %v4163_v27  ;;  %1015 = vmatprep.subr.bf16.mxu1 %v4165_v28  ;;  %v182_v27 = vld [vmem:[#allocation4 + $0x378] sm:$0xff]  ;;  %v4234_v28 = vcombine.low %v185_v17, %v189_v18  ;;  %v4227_v30 = vcombine.high %v177_v24, %v181_v25  ;;  %v1113_v17 = vld [vmem:[#allocation7 + $0x1e8] sm:$0xff]  ;;  %v4744_v18 = vld [vmem:[#allocation9] sm:$0x3] }
  0x68   :  { %v4229_v31 = vcombine.high %v178_v26, %v182_v27  ;;  %v4228_v37 = vcombine.low %v178_v26, %v182_v27 }
  0x6a   :  { %975 = vmatpush1.bf16.msra.mxu0 %v4162_v33  ;;  %1016 = vmatpush1.bf16.msra.mxu1 %v4164_v34  ;;  %v173_v33 = vld [vmem:[#allocation4 + $0x330] sm:$0xff]  ;;  %v170_v34 = vld [vmem:[#allocation4 + $0x318] sm:$0xff] }
  0x6b   :  { %976 = vmatprep.subr.bf16.mxu0 %v4155_v35  ;;  %1017 = vmatprep.subr.bf16.mxu1 %v4157_v36  ;;  %v174_v35 = vld [vmem:[#allocation4 + $0x338] sm:$0xff]  ;;  %v4226_v36 = vcombine.low %v177_v24, %v181_v25  ;;  %v4219_v38 = vcombine.high %v169_v32, %v173_v33  ;;  %v1101_v24 = vld [vmem:[#allocation7 + $0x188] sm:$0xff] }
  0x6c   :  { %v4221_v39 = vcombine.high %v170_v34, %v174_v35  ;;  %v4220_v44 = vcombine.low %v170_v34, %v174_v35  ;;  %v1105_v25 = vld [vmem:[#allocation7 + $0x1a8] sm:$0xff] }
  0x6d   :  { %v1097_v34 = vld [vmem:[#allocation7 + $0x168] sm:$0xff] }
  0x6e   :  { %977 = vmatpush1.bf16.msra.mxu0 %v4154_v41  ;;  %1018 = vmatpush1.bf16.msra.mxu1 %v4156_v42  ;;  %v165_v41 = vld [vmem:[#allocation4 + $0x2f0] sm:$0xff]  ;;  %v162_v42 = vld [vmem:[#allocation4 + $0x2d8] sm:$0xff] }
  0x6f   :  { %978 = vmatprep.subr.bf16.mxu0 %v4147_v43  ;;  %1019 = vmatprep.subr.bf16.mxu1 %v4149_v57  ;;  %v166_v43 = vld [vmem:[#allocation4 + $0x2f8] sm:$0xff]  ;;  %v4218_v57 = vcombine.low %v169_v32, %v173_v33  ;;  %v4211_v45 = vcombine.high %v161_v40, %v165_v41  ;;  %v1093_v33 = vld [vmem:[#allocation7 + $0x148] sm:$0xff] }
  0x70   :  { %v4213_v46 = vcombine.high %v162_v42, %v166_v43  ;;  %v4212_v52 = vcombine.low %v162_v42, %v166_v43  ;;  %v4789_v43 = vcombine.low %v1093_v33, %v1097_v34 }
  0x72   :  { %979 = vmatpush1.bf16.msra.mxu0 %v4146_v48  ;;  %1020 = vmatpush1.bf16.msra.mxu1 %v4148_v49  ;;  %v157_v48 = vld [vmem:[#allocation4 + $0x2b0] sm:$0xff]  ;;  %v154_v49 = vld [vmem:[#allocation4 + $0x298] sm:$0xff]  ;;  %6979 = vst [vmem:[#allocation30_spill] sm:$0xff] %v4789_v43 }
  0x73   :  { %980 = vmatprep.subr.bf16.mxu0 %v4139_v50  ;;  %1021 = vmatprep.subr.bf16.mxu1 %v4141_v51  ;;  %v158_v50 = vld [vmem:[#allocation4 + $0x2b8] sm:$0xff]  ;;  %v4210_v51 = vcombine.low %v161_v40, %v165_v41  ;;  %v4203_v54 = vcombine.high %v153_v47, %v157_v48  ;;  %v1088_v40 = vld [vmem:[#allocation7 + $0x120] sm:$0xff]  ;;  %v1089_v41 = vld [vmem:[#allocation7 + $0x128] sm:$0xff] }
  0x74   :  { %v4205_v55 = vcombine.high %v154_v49, %v158_v50  ;;  %v4204_v62 = vcombine.low %v154_v49, %v158_v50 }
  0x76   :  { %981 = vmatpush1.bf16.msra.mxu0 %v4138_v58  ;;  %1022 = vmatpush1.bf16.msra.mxu1 %v4140_v59  ;;  %v149_v58 = vld [vmem:[#allocation4 + $0x270] sm:$0xff]  ;;  %v146_v59 = vld [vmem:[#allocation4 + $0x258] sm:$0xff] }
  0x77   :  { %982 = vmatprep.subr.bf16.mxu0 %v4131_v60  ;;  %1023 = vmatprep.subr.bf16.mxu1 %v4133_v61  ;;  %v150_v60 = vld [vmem:[#allocation4 + $0x278] sm:$0xff]  ;;  %v4202_v61 = vcombine.low %v153_v47, %v157_v48  ;;  %v4195_v63 = vcombine.high %v145_v56, %v149_v58  ;;  %v4194_v7 = vcombine.low %v145_v56, %v149_v58  ;;  %v1077_v47 = vld [vmem:[#allocation7 + $0xc8] sm:$0xff] }
  0x78   :  { %v4197_v0 = vcombine.high %v146_v59, %v150_v60  ;;  %v4196_v8 = vcombine.low %v146_v59, %v150_v60  ;;  %v1081_v48 = vld [vmem:[#allocation7 + $0xe8] sm:$0xff] }
  0x79   :  { %v1069_v56 = vld [vmem:[#allocation7 + $0x88] sm:$0xff]  ;;  %v4813_v60 = vcombine.low %v1077_v47, %v1081_v48 }
  0x7a   :  { %983 = vmatpush1.bf16.msra.mxu0 %v4130_v2  ;;  %1024 = vmatpush1.bf16.msra.mxu1 %v4132_v3  ;;  %v141_v2 = vld [vmem:[#allocation4 + $0x230] sm:$0xff]  ;;  %v4739_v3 = vshrl.u32 %v63_v4, 7  ;;  %v1073_v58 = vld [vmem:[#allocation7 + $0xa8] sm:$0xff] }
  0x7b   :  { %984 = vmatprep.subr.bf16.mxu0 %v4123_v5  ;;  %1025 = vmatprep.subr.bf16.mxu1 %v4125_v6  ;;  %v138_v5 = vld [vmem:[#allocation4 + $0x218] sm:$0xff]  ;;  %v4187_v9 = vcombine.high %v137_v1, %v141_v2  ;;  %v4186_v4 = vcombine.low %v137_v1, %v141_v2  ;;  %6987 = vst [vmem:[#allocation38_spill] sm:$0xff] %v4813_v60  ;;  %v1061_v1 = vld [vmem:[#allocation7 + $0x48] sm:$0xff] }
  0x7c   :  { %6965 = vst [vmem:[#allocation16_spill] sm:$0xff] %v4739_v3  ;;  %v142_v6 = vld [vmem:[#allocation4 + $0x238] sm:$0xff]  ;;  %v1065_v2 = vld [vmem:[#allocation7 + $0x68] sm:$0xff] }
  0x7d   :  { %v4189_v10 = vcombine.high %v138_v5, %v142_v6  ;;  %v4188_v19 = vcombine.low %v138_v5, %v142_v6  ;;  %v4825_v6 = vcombine.low %v1069_v56, %v1073_v58 }
  0x7e   :  { %985 = vmatpush1.bf16.msra.mxu0 %v4122_v11  ;;  %1026 = vmatpush1.bf16.msra.mxu1 %v4124_v12  ;;  %v1108_v11 = vld [vmem:[#allocation7 + $0x1c0] sm:$0xff] }
  0x7f   :  { %986 = vmatprep.subr.bf16.mxu0 %v4243_v15  ;;  %1027 = vmatprep.subr.bf16.mxu1 %v4245_v16  ;;  %v1112_v12 = vld [vmem:[#allocation7 + $0x1e0] sm:$0xff]  ;;  %v4742_v15 = vsub.s32 1, %v4739_v3  ;;  %v1109_v16 = vld [vmem:[#allocation7 + $0x1c8] sm:$0xff]  ;;  %6991 = vst [vmem:[#allocation42_spill] sm:$0xff] %v4825_v6 }
  0x80   :  { %v4746_v20 = vcombine.high %v1108_v11, %v1112_v12  ;;  %v4754_v26 = vcombine.low %v1108_v11, %v1112_v12  ;;  %v4757_v27 = vcombine.low %v1109_v16, %v1113_v17  ;;  %v1053_v11 = vld [vmem:[#allocation7 + $0x8] sm:$0xff] }
  0x81   :  { %6966 = vst [vmem:[#allocation17_spill] sm:$0xff] %v4742_v15  ;;  %v1057_v12 = vld [vmem:[#allocation7 + $0x28] sm:$0xff] }
  0x82   :  { %987 = vmatpush2.bf16.msra.mxu0 %v4242_v21  ;;  %1028 = vmatpush2.bf16.msra.mxu1 %v4244_v22  ;;  %6967 = vst [vmem:[#allocation18_spill] sm:$0xff] %v4746_v20  ;;  %v4748_v21 = vcombine.high %v1109_v16, %v1113_v17  ;;  %v1100_v22 = vld [vmem:[#allocation7 + $0x180] sm:$0xff]  ;;  %6970 = vst [vmem:[#allocation21_spill] sm:$0xff] %v4754_v26  ;;  %v4837_v17 = vcombine.low %v1061_v1, %v1065_v2 }
  0x83   :  { %988 = vmatprep.subr.bf16.mxu0 %v4235_v53  ;;  %1029 = vmatprep.subr.bf16.mxu1 %v4237_v23  ;;  %v1104_v53 = vld [vmem:[#allocation7 + $0x1a0] sm:$0xff]  ;;  %v4752_v23 = vrot.slane %v4744_v18, %v4742_v15  ;;  %6971 = vst [vmem:[#allocation22_spill] sm:$0xff] %v4757_v27 }
  0x84   :  { %6968 = vst [vmem:[#allocation19_spill] sm:$0xff] %v4748_v21  ;;  %v4771_v35 = vcombine.low %v1100_v22, %v1104_v53  ;;  %6995 = vst [vmem:[#allocation46_spill] sm:$0xff] %v4837_v17  ;;  %v1136_v15 = vld [vmem:[#allocation7 + $0x2a0] sm:$0xff] }
  0x85   :  { %6969 = vst [vmem:[#allocation20_spill] sm:$0xff] %v4752_v23  ;;  %v4766_v32 = vpack.c.bf16 %v4752_v23, %v4752_v23  ;;  %v1132_v23 = vld [vmem:[#allocation7 + $0x280] sm:$0xff] }
  0x86   :  { %989 = vmatpush2.bf16.msra.mxu0 %v4234_v28  ;;  %1030 = vmatpush2.bf16.msra.mxu1 %v4236_v29  ;;  %v4759_v28 = vcombine.high %v1100_v22, %v1104_v53  ;;  %v4762_v29 = vcombine.high %v1101_v24, %v1105_v25  ;;  %6974 = vst [vmem:[#allocation25_spill] sm:$0xff] %v4771_v35  ;;  %v1172_v22 = vld [vmem:[#allocation7 + $0x3c0] sm:$0xff] }
  0x87   :  { %990 = vmatprep.subr.bf16.mxu0 %v4227_v30  ;;  %1031 = vmatprep.subr.bf16.mxu1 %v4229_v31  ;;  %v1092_v30 = vld [vmem:[#allocation7 + $0x140] sm:$0xff] }
  0x88   :  { %6972 = vst [vmem:[#allocation23_spill] sm:$0xff] %v4759_v28  ;;  %6973 = vst [vmem:[#allocation24_spill] sm:$0xff] %v4762_v29  ;;  %v1096_v31 = vld [vmem:[#allocation7 + $0x160] sm:$0xff] }
  0x89   :  { %v4785_v42 = vcombine.low %v1092_v30, %v1096_v31  ;;  %v1176_v53 = vld [vmem:[#allocation7 + $0x3e0] sm:$0xff] }
  0x8a   :  { %991 = vmatpush2.bf16.msra.mxu0 %v4226_v36  ;;  %1032 = vmatpush2.bf16.msra.mxu1 %v4228_v37  ;;  %v4775_v36 = vcombine.low %v1101_v24, %v1105_v25  ;;  %v4777_v37 = vcombine.high %v1092_v30, %v1096_v31  ;;  %v1173_v24 = vld [vmem:[#allocation7 + $0x3c8] sm:$0xff]  ;;  %v4849_v31 = vcombine.low %v1053_v11, %v1057_v12 }
  0x8b   :  { %992 = vmatprep.subr.bf16.mxu0 %v4219_v38  ;;  %1033 = vmatprep.subr.bf16.mxu1 %v4221_v39  ;;  %v4780_v38 = vcombine.high %v1093_v33, %v1097_v34  ;;  %v1084_v39 = vld [vmem:[#allocation7 + $0x100] sm:$0xff]  ;;  %6978 = vst [vmem:[#allocation29_spill] sm:$0xff] %v4785_v42  ;;  %v1177_v25 = vld [vmem:[#allocation7 + $0x3e8] sm:$0xff]  ;;  %v4851_v33 = vcombine.high %v1172_v22, %v1176_v53 }
  0x8c   :  { %6975 = vst [vmem:[#allocation26_spill] sm:$0xff] %v4775_v36  ;;  %6976 = vst [vmem:[#allocation27_spill] sm:$0xff] %v4777_v37  ;;  %v4797_v49 = vcombine.low %v1084_v39, %v1088_v40  ;;  %v4854_v34 = vcombine.high %v1173_v24, %v1177_v25 }
  0x8d   :  { %6977 = vst [vmem:[#allocation28_spill] sm:$0xff] %v4780_v38  ;;  %6999 = vst [vmem:[#allocation50_spill] sm:$0xff] %v4849_v31 }
  0x8e   :  { %993 = vmatpush2.bf16.msra.mxu0 %v4218_v57  ;;  %1034 = vmatpush2.bf16.msra.mxu1 %v4220_v44  ;;  %v4791_v57 = vcombine.high %v1084_v39, %v1088_v40  ;;  %6982 = vst [vmem:[#allocation33_spill] sm:$0xff] %v4797_v49  ;;  %7000 = vst [vmem:[#allocation51_spill] sm:$0xff] %v4851_v33  ;;  %v1164_v39 = vld [vmem:[#allocation7 + $0x380] sm:$0xff] }
  0x8f   :  { %994 = vmatprep.subr.bf16.mxu0 %v4211_v45  ;;  %1035 = vmatprep.subr.bf16.mxu1 %v4213_v46  ;;  %v1076_v45 = vld [vmem:[#allocation7 + $0xc0] sm:$0xff]  ;;  %7001 = vst [vmem:[#allocation52_spill] sm:$0xff] %v4854_v34 }
  0x90   :  { %6980 = vst [vmem:[#allocation31_spill] sm:$0xff] %v4791_v57  ;;  %v1080_v46 = vld [vmem:[#allocation7 + $0xe0] sm:$0xff] }
  0x91   :  { %v4809_v59 = vcombine.low %v1076_v45, %v1080_v46  ;;  %v1168_v40 = vld [vmem:[#allocation7 + $0x3a0] sm:$0xff] }
  0x92   :  { %995 = vmatpush2.bf16.msra.mxu0 %v4210_v51  ;;  %1036 = vmatpush2.bf16.msra.mxu1 %v4212_v52  ;;  %v4803_v51 = vcombine.high %v1076_v45, %v1080_v46  ;;  %v4806_v52 = vcombine.high %v1077_v47, %v1081_v48  ;;  %v4857_v45 = vcombine.low %v1172_v22, %v1176_v53 }
  0x93   :  { %996 = vmatprep.subr.bf16.mxu0 %v4203_v54  ;;  %1037 = vmatprep.subr.bf16.mxu1 %v4205_v55  ;;  %v1068_v54 = vld [vmem:[#allocation7 + $0x80] sm:$0xff]  ;;  %6986 = vst [vmem:[#allocation37_spill] sm:$0xff] %v4809_v59  ;;  %v4861_v46 = vcombine.low %v1173_v24, %v1177_v25  ;;  %v4863_v47 = vcombine.high %v1164_v39, %v1168_v40 }
  0x94   :  { %6984 = vst [vmem:[#allocation35_spill] sm:$0xff] %v4803_v51  ;;  %6985 = vst [vmem:[#allocation36_spill] sm:$0xff] %v4806_v52  ;;  %v1072_v55 = vld [vmem:[#allocation7 + $0xa0] sm:$0xff] }
  0x95   :  { %v4821_v5 = vcombine.low %v1068_v54, %v1072_v55  ;;  %7002 = vst [vmem:[#allocation53_spill] sm:$0xff] %v4857_v45  ;;  %7003 = vst [vmem:[#allocation54_spill] sm:$0xff] %v4861_v46 }
  0x96   :  { %997 = vmatpush2.bf16.msra.mxu0 %v4202_v61  ;;  %1038 = vmatpush2.bf16.msra.mxu1 %v4204_v62  ;;  %v4815_v61 = vcombine.high %v1068_v54, %v1072_v55  ;;  %v4818_v62 = vcombine.high %v1069_v56, %v1073_v58  ;;  %7004 = vst [vmem:[#allocation55_spill] sm:$0xff] %v4863_v47  ;;  %v1156_v54 = vld [vmem:[#allocation7 + $0x340] sm:$0xff]  ;;  %v1157_v56 = vld [vmem:[#allocation7 + $0x348] sm:$0xff] }
  0x97   :  { %998 = vmatprep.subr.bf16.mxu0 %v4195_v63  ;;  %1039 = vmatprep.subr.bf16.mxu1 %v4197_v0  ;;  %v1060_v63 = vld [vmem:[#allocation7 + $0x40] sm:$0xff]  ;;  %6990 = vst [vmem:[#allocation41_spill] sm:$0xff] %v4821_v5  ;;  %v1161_v58 = vld [vmem:[#allocation7 + $0x368] sm:$0xff] }
  0x98   :  { %6988 = vst [vmem:[#allocation39_spill] sm:$0xff] %v4815_v61  ;;  %6989 = vst [vmem:[#allocation40_spill] sm:$0xff] %v4818_v62  ;;  %v1064_v0 = vld [vmem:[#allocation7 + $0x60] sm:$0xff]  ;;  %v4885_v53 = vcombine.low %v1157_v56, %v1161_v58 }
  0x99   :  { %v4833_v16 = vcombine.low %v1060_v63, %v1064_v0  ;;  %v1160_v55 = vld [vmem:[#allocation7 + $0x360] sm:$0xff] }
  0x9a   :  { %999 = vmatpush2.bf16.msra.mxu0 %v4194_v7  ;;  %1040 = vmatpush2.bf16.msra.mxu1 %v4196_v8  ;;  %v4827_v7 = vcombine.high %v1060_v63, %v1064_v0  ;;  %v4830_v8 = vcombine.high %v1061_v1, %v1065_v2  ;;  %v4869_v63 = vcombine.low %v1164_v39, %v1168_v40  ;;  %v1140_v39 = vld [vmem:[#allocation7 + $0x2c0] sm:$0xff] }
  0x9b   :  { %1000 = vmatprep.subr.bf16.mxu0 %v4187_v9  ;;  %1041 = vmatprep.subr.bf16.mxu1 %v4189_v10  ;;  %v1052_v9 = vld [vmem:[#allocation7] sm:$0xff]  ;;  %6994 = vst [vmem:[#allocation45_spill] sm:$0xff] %v4833_v16  ;;  %v4875_v1 = vcombine.high %v1156_v54, %v1160_v55  ;;  %v4878_v2 = vcombine.high %v1157_v56, %v1161_v58  ;;  %7011 = vst [vmem:[#allocation62_spill] sm:$0xff] %v4885_v53 }
  0x9c   :  { %6992 = vst [vmem:[#allocation43_spill] sm:$0xff] %v4827_v7  ;;  %6993 = vst [vmem:[#allocation44_spill] sm:$0xff] %v4830_v8  ;;  %v1056_v10 = vld [vmem:[#allocation7 + $0x20] sm:$0xff]  ;;  %v4881_v22 = vcombine.low %v1156_v54, %v1160_v55 }
  0x9d   :  { %v4845_v30 = vcombine.low %v1052_v9, %v1056_v10  ;;  %7006 = vst [vmem:[#allocation57_spill] sm:$0xff] %v4869_v63  ;;  %7008 = vst [vmem:[#allocation59_spill] sm:$0xff] %v4875_v1  ;;  %v1144_v40 = vld [vmem:[#allocation7 + $0x2e0] sm:$0xff] }
  0x9e   :  { %1001 = vmatpush2.bf16.msra.mxu0 %v4186_v4  ;;  %1042 = vmatpush2.bf16.msra.mxu1 %v4188_v19  ;;  %v4839_v4 = vcombine.high %v1052_v9, %v1056_v10  ;;  %v4842_v19 = vcombine.high %v1053_v11, %v1057_v12  ;;  %7009 = vst [vmem:[#allocation60_spill] sm:$0xff] %v4878_v2  ;;  %v1148_v9 = vld [vmem:[#allocation7 + $0x300] sm:$0xff]  ;;  %v1149_v11 = vld [vmem:[#allocation7 + $0x308] sm:$0xff]  ;;  %7010 = vst [vmem:[#allocation61_spill] sm:$0xff] %v4881_v22 }
  0x9f   :  { %1836 = vmatprep.subr.bf16.mxu0 %v4746_v20  ;;  %1877 = vmatprep.subr.bf16.mxu1 %v4748_v21  ;;  %6998 = vst [vmem:[#allocation49_spill] sm:$0xff] %v4845_v30  ;;  %v1152_v10 = vld [vmem:[#allocation7 + $0x320] sm:$0xff]  ;;  %v1153_v12 = vld [vmem:[#allocation7 + $0x328] sm:$0xff]  ;;  %v4899_v56 = vcombine.high %v1140_v39, %v1144_v40 }
  0xa0   :  { %6996 = vst [vmem:[#allocation47_spill] sm:$0xff] %v4839_v4  ;;  %6997 = vst [vmem:[#allocation48_spill] sm:$0xff] %v4842_v19  ;;  %v4887_v24 = vcombine.high %v1148_v9, %v1152_v10  ;;  %v4890_v25 = vcombine.high %v1149_v11, %v1153_v12  ;;  %v4893_v54 = vcombine.low %v1148_v9, %v1152_v10 }
  0xa1   :  { %1003 = vmatmul.mubr.bf16.vlgmr.msra.gmra.mxu0 %v4727_v14  ;;  %1044 = vmatmul.mubr.bf16.vlgmr.msra.gmra.mxu1 %v4727_v14  ;;  %v1085_v14 = vld [vmem:[#allocation7 + $0x108] sm:$0xff]  ;;  %v4897_v55 = vcombine.low %v1149_v11, %v1153_v12  ;;  %7016 = vst [vmem:[#allocation67_spill] sm:$0xff] %v4899_v56  ;;  %v4905_v9 = vcombine.low %v1140_v39, %v1144_v40 }
  0xa2   :  { %1837 = vmatpush1.bf16.msra.mxu0 %v4754_v26  ;;  %1878 = vmatpush1.bf16.msra.mxu1 %v4757_v27  ;;  %v4794_v44 = vcombine.high %v1085_v14, %v1089_v41  ;;  %v4801_v50 = vcombine.low %v1085_v14, %v1089_v41  ;;  %v1165_v14 = vld [vmem:[#allocation7 + $0x388] sm:$0xff]  ;;  %7012 = vst [vmem:[#allocation63_spill] sm:$0xff] %v4887_v24  ;;  %7013 = vst [vmem:[#allocation64_spill] sm:$0xff] %v4890_v25 }
  0xa3   :  { %1838 = vmatprep.subr.bf16.mxu0 %v4759_v28  ;;  %1879 = vmatprep.subr.bf16.mxu1 %v4762_v29  ;;  %v1169_v41 = vld [vmem:[#allocation7 + $0x3a8] sm:$0xff]  ;;  %7014 = vst [vmem:[#allocation65_spill] sm:$0xff] %v4893_v54  ;;  %7015 = vst [vmem:[#allocation66_spill] sm:$0xff] %v4897_v55  ;;  %v4911_v11 = vcombine.high %v1132_v23, %v1136_v15  ;;  %v4917_v39 = vcombine.low %v1132_v23, %v1136_v15 }
  0xa4   :  { %1868 = vmatprep.mubr.bf16.mxu0 %v4766_v32  ;;  %1909 = vmatprep.mubr.bf16.mxu1 %v4766_v32  ;;  %6981 = vst [vmem:[#allocation32_spill] sm:$0xff] %v4794_v44  ;;  %6983 = vst [vmem:[#allocation34_spill] sm:$0xff] %v4801_v50  ;;  %v4866_v48 = vcombine.high %v1165_v14, %v1169_v41  ;;  %v4873_v0 = vcombine.low %v1165_v14, %v1169_v41  ;;  %v1141_v14 = vld [vmem:[#allocation7 + $0x2c8] sm:$0xff] }
  0xa5   :  { %v1145_v41 = vld [vmem:[#allocation7 + $0x2e8] sm:$0xff]  ;;  %7018 = vst [vmem:[#allocation69_spill] sm:$0xff] %v4905_v9  ;;  %7020 = vst [vmem:[#allocation71_spill] sm:$0xff] %v4911_v11 }
  0xa6   :  { %1839 = vmatpush1.bf16.msra.mxu0 %v4771_v35  ;;  %1880 = vmatpush1.bf16.msra.mxu1 %v4775_v36  ;;  %7005 = vst [vmem:[#allocation56_spill] sm:$0xff] %v4866_v48  ;;  %7007 = vst [vmem:[#allocation58_spill] sm:$0xff] %v4873_v0  ;;  %v4902_v58 = vcombine.high %v1141_v14, %v1145_v41  ;;  %v4909_v10 = vcombine.low %v1141_v14, %v1145_v41 }
  0xa7   :  { %1840 = vmatprep.subr.bf16.mxu0 %v4777_v37  ;;  %1881 = vmatprep.subr.bf16.mxu1 %v4780_v38  ;;  %7022 = vst [vmem:[#allocation73_spill] sm:$0xff] %v4917_v39 }
  0xa8   :  { %7017 = vst [vmem:[#allocation68_spill] sm:$0xff] %v4902_v58  ;;  %7019 = vst [vmem:[#allocation70_spill] sm:$0xff] %v4909_v10 }
  0xaa   :  { %1841 = vmatpush1.bf16.msra.mxu0 %v4785_v42  ;;  %1882 = vmatpush1.bf16.msra.mxu1 %v4789_v43 }
  0xab   :  { %1842 = vmatprep.subr.bf16.mxu0 %v4791_v57  ;;  %1883 = vmatprep.subr.bf16.mxu1 %v4794_v44 }
  0xae   :  { %1843 = vmatpush1.bf16.msra.mxu0 %v4797_v49  ;;  %1884 = vmatpush1.bf16.msra.mxu1 %v4801_v50 }
  0xaf   :  { %1844 = vmatprep.subr.bf16.mxu0 %v4803_v51  ;;  %1885 = vmatprep.subr.bf16.mxu1 %v4806_v52 }
  0xb2   :  { %1845 = vmatpush1.bf16.msra.mxu0 %v4809_v59  ;;  %1886 = vmatpush1.bf16.msra.mxu1 %v4813_v60 }
  0xb3   :  { %1846 = vmatprep.subr.bf16.mxu0 %v4815_v61  ;;  %1887 = vmatprep.subr.bf16.mxu1 %v4818_v62 }
  0xb6   :  { %1847 = vmatpush1.bf16.msra.mxu0 %v4821_v5  ;;  %1888 = vmatpush1.bf16.msra.mxu1 %v4825_v6 }
  0xb7   :  { %1848 = vmatprep.subr.bf16.mxu0 %v4827_v7  ;;  %1889 = vmatprep.subr.bf16.mxu1 %v4830_v8 }
  0xba   :  { %1849 = vmatpush1.bf16.msra.mxu0 %v4833_v16  ;;  %1890 = vmatpush1.bf16.msra.mxu1 %v4837_v17 }
  0xbb   :  { %1850 = vmatprep.subr.bf16.mxu0 %v4839_v4  ;;  %1891 = vmatprep.subr.bf16.mxu1 %v4842_v19 }
  0xbe   :  { %1851 = vmatpush1.bf16.msra.mxu0 %v4845_v30  ;;  %1892 = vmatpush1.bf16.msra.mxu1 %v4849_v31 }
  0xbf   :  { %1852 = vmatprep.subr.bf16.mxu0 %v4851_v33  ;;  %1893 = vmatprep.subr.bf16.mxu1 %v4854_v34 }
  0xc2   :  { %1853 = vmatpush2.bf16.msra.mxu0 %v4857_v45  ;;  %1894 = vmatpush2.bf16.msra.mxu1 %v4861_v46 }
  0xc3   :  { %1854 = vmatprep.subr.bf16.mxu0 %v4863_v47  ;;  %1895 = vmatprep.subr.bf16.mxu1 %v4866_v48 }
  0xc6   :  { %1855 = vmatpush2.bf16.msra.mxu0 %v4869_v63  ;;  %1896 = vmatpush2.bf16.msra.mxu1 %v4873_v0 }
  0xc7   :  { %1856 = vmatprep.subr.bf16.mxu0 %v4875_v1  ;;  %1897 = vmatprep.subr.bf16.mxu1 %v4878_v2  ;;  %v1133_v2 = vld [vmem:[#allocation7 + $0x288] sm:$0xff] }
  0xc8   :  { %v1137_v1 = vld [vmem:[#allocation7 + $0x2a8] sm:$0xff] }
  0xc9   :  { %v4914_v12 = vcombine.high %v1133_v2, %v1137_v1  ;;  %v4921_v40 = vcombine.low %v1133_v2, %v1137_v1 }
  0xca   :  { %1857 = vmatpush2.bf16.msra.mxu0 %v4881_v22  ;;  %1898 = vmatpush2.bf16.msra.mxu1 %v4885_v53  ;;  %v1125_v53 = vld [vmem:[#allocation7 + $0x248] sm:$0xff] }
  0xcb   :  { %1858 = vmatprep.subr.bf16.mxu0 %v4887_v24  ;;  %1899 = vmatprep.subr.bf16.mxu1 %v4890_v25  ;;  %7021 = vst [vmem:[#allocation72_spill] sm:$0xff] %v4914_v12  ;;  %v1124_v25 = vld [vmem:[#allocation7 + $0x240] sm:$0xff]  ;;  %v1129_v22 = vld [vmem:[#allocation7 + $0x268] sm:$0xff]  ;;  %7023 = vst [vmem:[#allocation74_spill] sm:$0xff] %v4921_v40 }
  0xcc   :  { %v1128_v24 = vld [vmem:[#allocation7 + $0x260] sm:$0xff]  ;;  %v4926_v41 = vcombine.high %v1125_v53, %v1129_v22  ;;  %v4936_v23 = vcombine.low %v1125_v53, %v1129_v22 }
  0xcd   :  { %v4923_v14 = vcombine.high %v1124_v25, %v1128_v24  ;;  %v4932_v15 = vcombine.low %v1124_v25, %v1128_v24  ;;  %v1111_v24 = vld [vmem:[#allocation7 + $0x1d8] sm:$0xff] }
  0xce   :  { %1859 = vmatpush2.bf16.msra.mxu0 %v4893_v54  ;;  %1900 = vmatpush2.bf16.msra.mxu1 %v4897_v55  ;;  %7025 = vst [vmem:[#allocation76_spill] sm:$0xff] %v4926_v41  ;;  %v1117_v55 = vld [vmem:[#allocation7 + $0x208] sm:$0xff]  ;;  %7028 = vst [vmem:[#allocation79_spill] sm:$0xff] %v4936_v23  ;;  %v1115_v25 = vld [vmem:[#allocation7 + $0x1f8] sm:$0xff] }
  0xcf   :  { %1860 = vmatprep.subr.bf16.mxu0 %v4899_v56  ;;  %1901 = vmatprep.subr.bf16.mxu1 %v4902_v58  ;;  %7024 = vst [vmem:[#allocation75_spill] sm:$0xff] %v4923_v14  ;;  %v1116_v58 = vld [vmem:[#allocation7 + $0x200] sm:$0xff]  ;;  %v1121_v54 = vld [vmem:[#allocation7 + $0x228] sm:$0xff]  ;;  %7027 = vst [vmem:[#allocation78_spill] sm:$0xff] %v4932_v15 }
  0xd0   :  { %v1120_v56 = vld [vmem:[#allocation7 + $0x220] sm:$0xff]  ;;  %v4941_v2 = vcombine.high %v1117_v55, %v1121_v54  ;;  %v4952_v22 = vcombine.low %v1117_v55, %v1121_v54  ;;  %v4968_v54 = vcombine.low %v1111_v24, %v1115_v25 }
  0xd1   :  { %v4938_v1 = vcombine.high %v1116_v58, %v1120_v56 }
  0xd2   :  { %1861 = vmatpush2.bf16.msra.mxu0 %v4905_v9  ;;  %1902 = vmatpush2.bf16.msra.mxu1 %v4909_v10  ;;  %v4929_v9 = vsub.s32 0, %v4739_v3  ;;  %7030 = vst [vmem:[#allocation81_spill] sm:$0xff] %v4941_v2  ;;  %7033 = vst [vmem:[#allocation84_spill] sm:$0xff] %v4952_v22 }
  0xd3   :  { %1862 = vmatprep.subr.bf16.mxu0 %v4911_v11  ;;  %1903 = vmatprep.subr.bf16.mxu1 %v4914_v12  ;;  %7029 = vst [vmem:[#allocation80_spill] sm:$0xff] %v4938_v1  ;;  %v1110_v12 = vld [vmem:[#allocation7 + $0x1d0] sm:$0xff]  ;;  %7037 = vst [vmem:[#allocation88_spill] sm:$0xff] %v4968_v54 }
  0xd4   :  { %7026 = vst [vmem:[#allocation77_spill] sm:$0xff] %v4929_v9  ;;  %v1114_v11 = vld [vmem:[#allocation7 + $0x1f0] sm:$0xff]  ;;  %v4945_v3 = vrot.slane %v4744_v18, %v4929_v9 }
  0xd5   :  { %v4954_v53 = vcombine.high %v1110_v12, %v1114_v11  ;;  %v1102_v18 = vld [vmem:[#allocation7 + $0x190] sm:$0xff] }
  0xd6   :  { %1863 = vmatpush2.bf16.msra.mxu0 %v4917_v39  ;;  %1904 = vmatpush2.bf16.msra.mxu1 %v4921_v40  ;;  %7031 = vst [vmem:[#allocation82_spill] sm:$0xff] %v4945_v3  ;;  %v4948_v40 = vcombine.low %v1116_v58, %v1120_v56  ;;  %v1106_v9 = vld [vmem:[#allocation7 + $0x1b0] sm:$0xff]  ;;  %v1103_v56 = vld [vmem:[#allocation7 + $0x198] sm:$0xff] }
  0xd7   :  { %1864 = vmatprep.subr.bf16.mxu0 %v4923_v14  ;;  %1905 = vmatprep.subr.bf16.mxu1 %v4926_v41  ;;  %7034 = vst [vmem:[#allocation85_spill] sm:$0xff] %v4954_v53  ;;  %v4957_v41 = vcombine.high %v1111_v24, %v1115_v25  ;;  %v4961_v14 = vpack.c.bf16 %v4945_v3, %v4945_v3  ;;  %v1107_v58 = vld [vmem:[#allocation7 + $0x1b8] sm:$0xff]  ;;  %v1094_v3 = vld [vmem:[#allocation7 + $0x150] sm:$0xff] }
  0xd8   :  { %7032 = vst [vmem:[#allocation83_spill] sm:$0xff] %v4948_v40  ;;  %v4970_v55 = vcombine.high %v1102_v18, %v1106_v9 }
  0xd9   :  { %7035 = vst [vmem:[#allocation86_spill] sm:$0xff] %v4957_v41 }
  0xda   :  { %1865 = vmatpush2.bf16.msra.mxu0 %v4932_v15  ;;  %1906 = vmatpush2.bf16.msra.mxu1 %v4936_v23  ;;  %v4964_v23 = vcombine.low %v1110_v12, %v1114_v11  ;;  %7038 = vst [vmem:[#allocation89_spill] sm:$0xff] %v4970_v55  ;;  %v1095_v15 = vld [vmem:[#allocation7 + $0x158] sm:$0xff]  ;;  %v4978_v11 = vcombine.low %v1102_v18, %v1106_v9 }
  0xdb   :  { %1866 = vmatprep.subr.bf16.mxu0 %v4938_v1  ;;  %1907 = vmatprep.subr.bf16.mxu1 %v4941_v2  ;;  %v4973_v2 = vcombine.high %v1103_v56, %v1107_v58  ;;  %v1098_v1 = vld [vmem:[#allocation7 + $0x170] sm:$0xff]  ;;  %v4982_v12 = vcombine.low %v1103_v56, %v1107_v58 }
  0xdc   :  { %7036 = vst [vmem:[#allocation87_spill] sm:$0xff] %v4964_v23  ;;  %7040 = vst [vmem:[#allocation91_spill] sm:$0xff] %v4978_v11  ;;  %v4984_v24 = vcombine.high %v1094_v3, %v1098_v1  ;;  %v4992_v9 = vcombine.low %v1094_v3, %v1098_v1 }
  0xdd   :  { %7039 = vst [vmem:[#allocation90_spill] sm:$0xff] %v4973_v2  ;;  %7041 = vst [vmem:[#allocation92_spill] sm:$0xff] %v4982_v12 }
  0xde   :  { %1867 = vmatpush2.bf16.msra.mxu0 %v4948_v40  ;;  %1908 = vmatpush2.bf16.msra.mxu1 %v4952_v22  ;;  %v1099_v40 = vld [vmem:[#allocation7 + $0x178] sm:$0xff]  ;;  %7042 = vst [vmem:[#allocation93_spill] sm:$0xff] %v4984_v24  ;;  %7044 = vst [vmem:[#allocation95_spill] sm:$0xff] %v4992_v9 }
  0xdf   :  { %1918 = vmatprep.subr.bf16.mxu0 %v4954_v53  ;;  %1959 = vmatprep.subr.bf16.mxu1 %v4957_v41  ;;  %v4987_v25 = vcombine.high %v1095_v15, %v1099_v40  ;;  %v1086_v41 = vld [vmem:[#allocation7 + $0x110] sm:$0xff]  ;;  %v1087_v22 = vld [vmem:[#allocation7 + $0x118] sm:$0xff]  ;;  %v4996_v18 = vcombine.low %v1095_v15, %v1099_v40 }
  0xe0   :  { %v1090_v53 = vld [vmem:[#allocation7 + $0x130] sm:$0xff] }
  0xe1   :  { %1869 = vmatmul.mubr.bf16.vlgmr.msra.gmra.mxu0 %v4961_v14  ;;  %1910 = vmatmul.mubr.bf16.vlgmr.msra.gmra.mxu1 %v4961_v14  ;;  %7043 = vst [vmem:[#allocation94_spill] sm:$0xff] %v4987_v25  ;;  %7045 = vst [vmem:[#allocation96_spill] sm:$0xff] %v4996_v18  ;;  %v4998_v56 = vcombine.high %v1086_v41, %v1090_v53  ;;  %v5004_v3 = vcombine.low %v1086_v41, %v1090_v53 }
  0xe2   :  { %1919 = vmatpush1.bf16.msra.mxu0 %v4964_v23  ;;  %1960 = vmatpush1.bf16.msra.mxu1 %v4968_v54  ;;  %v1091_v23 = vld [vmem:[#allocation7 + $0x138] sm:$0xff] }
  0xe3   :  { %1920 = vmatprep.subr.bf16.mxu0 %v4970_v55  ;;  %1961 = vmatprep.subr.bf16.mxu1 %v4973_v2  ;;  %7046 = vst [vmem:[#allocation97_spill] sm:$0xff] %v4998_v56  ;;  %v5001_v58 = vcombine.high %v1087_v22, %v1091_v23  ;;  %v1078_v2 = vld [vmem:[#allocation7 + $0xd0] sm:$0xff]  ;;  %v1079_v54 = vld [vmem:[#allocation7 + $0xd8] sm:$0xff]  ;;  %7048 = vst [vmem:[#allocation99_spill] sm:$0xff] %v5004_v3  ;;  %v5008_v40 = vcombine.low %v1087_v22, %v1091_v23 }
  0xe4   :  { %1950 = vmatprep.mubr.bf16.mxu0 %v4766_v32  ;;  %1991 = vmatprep.mubr.bf16.mxu1 %v4766_v32  ;;  %v1082_v55 = vld [vmem:[#allocation7 + $0xf0] sm:$0xff]  ;;  %v1083_v32 = vld [vmem:[#allocation7 + $0xf8] sm:$0xff] }
  0xe5   :  { %7047 = vst [vmem:[#allocation98_spill] sm:$0xff] %v5001_v58  ;;  %7049 = vst [vmem:[#allocation100_spill] sm:$0xff] %v5008_v40  ;;  %v5010_v15 = vcombine.high %v1078_v2, %v1082_v55  ;;  %v5013_v1 = vcombine.high %v1079_v54, %v1083_v32  ;;  %v5016_v41 = vcombine.low %v1078_v2, %v1082_v55 }
  0xe6   :  { %1921 = vmatpush1.bf16.msra.mxu0 %v4978_v11  ;;  %1962 = vmatpush1.bf16.msra.mxu1 %v4982_v12  ;;  %v1071_v12 = vld [vmem:[#allocation7 + $0x98] sm:$0xff]  ;;  %v5020_v23 = vcombine.low %v1079_v54, %v1083_v32 }
  0xe7   :  { %1922 = vmatprep.subr.bf16.mxu0 %v4984_v24  ;;  %1963 = vmatprep.subr.bf16.mxu1 %v4987_v25  ;;  %7050 = vst [vmem:[#allocation101_spill] sm:$0xff] %v5010_v15  ;;  %7051 = vst [vmem:[#allocation102_spill] sm:$0xff] %v5013_v1  ;;  %v1070_v25 = vld [vmem:[#allocation7 + $0x90] sm:$0xff]  ;;  %v1075_v11 = vld [vmem:[#allocation7 + $0xb8] sm:$0xff] }
  0xe8   :  { %v1074_v24 = vld [vmem:[#allocation7 + $0xb0] sm:$0xff]  ;;  %7052 = vst [vmem:[#allocation103_spill] sm:$0xff] %v5016_v41  ;;  %7053 = vst [vmem:[#allocation104_spill] sm:$0xff] %v5020_v23  ;;  %v5025_v53 = vcombine.high %v1071_v12, %v1075_v11  ;;  %v5032_v54 = vcombine.low %v1071_v12, %v1075_v11 }
  0xe9   :  { %v5022_v22 = vcombine.high %v1070_v25, %v1074_v24  ;;  %v5028_v2 = vcombine.low %v1070_v25, %v1074_v24 }
  0xea   :  { %1923 = vmatpush1.bf16.msra.mxu0 %v4992_v9  ;;  %1964 = vmatpush1.bf16.msra.mxu1 %v4996_v18  ;;  %7055 = vst [vmem:[#allocation106_spill] sm:$0xff] %v5025_v53  ;;  %v1063_v18 = vld [vmem:[#allocation7 + $0x58] sm:$0xff]  ;;  %7057 = vst [vmem:[#allocation108_spill] sm:$0xff] %v5032_v54 }
  0xeb   :  { %1924 = vmatprep.subr.bf16.mxu0 %v4998_v56  ;;  %1965 = vmatprep.subr.bf16.mxu1 %v5001_v58  ;;  %7054 = vst [vmem:[#allocation105_spill] sm:$0xff] %v5022_v22  ;;  %v1062_v58 = vld [vmem:[#allocation7 + $0x50] sm:$0xff]  ;;  %v1067_v9 = vld [vmem:[#allocation7 + $0x78] sm:$0xff]  ;;  %7056 = vst [vmem:[#allocation107_spill] sm:$0xff] %v5028_v2 }
  0xec   :  { %v1066_v56 = vld [vmem:[#allocation7 + $0x70] sm:$0xff]  ;;  %v5037_v32 = vcombine.high %v1063_v18, %v1067_v9  ;;  %v5044_v11 = vcombine.low %v1063_v18, %v1067_v9 }
  0xed   :  { %v5034_v55 = vcombine.high %v1062_v58, %v1066_v56  ;;  %v5040_v24 = vcombine.low %v1062_v58, %v1066_v56 }
  0xee   :  { %1925 = vmatpush1.bf16.msra.mxu0 %v5004_v3  ;;  %1966 = vmatpush1.bf16.msra.mxu1 %v5008_v40  ;;  %7059 = vst [vmem:[#allocation110_spill] sm:$0xff] %v5037_v32  ;;  %v1055_v40 = vld [vmem:[#allocation7 + $0x18] sm:$0xff]  ;;  %7061 = vst [vmem:[#allocation112_spill] sm:$0xff] %v5044_v11 }
  0xef   :  { %1926 = vmatprep.subr.bf16.mxu0 %v5010_v15  ;;  %1967 = vmatprep.subr.bf16.mxu1 %v5013_v1  ;;  %7058 = vst [vmem:[#allocation109_spill] sm:$0xff] %v5034_v55  ;;  %v1054_v1 = vld [vmem:[#allocation7 + $0x10] sm:$0xff]  ;;  %v1059_v3 = vld [vmem:[#allocation7 + $0x38] sm:$0xff]  ;;  %7060 = vst [vmem:[#allocation111_spill] sm:$0xff] %v5040_v24 }
  0xf0   :  { %v1058_v15 = vld [vmem:[#allocation7 + $0x30] sm:$0xff]  ;;  %v5049_v25 = vcombine.high %v1055_v40, %v1059_v3  ;;  %v5056_v9 = vcombine.low %v1055_v40, %v1059_v3 }
  0xf1   :  { %v5046_v12 = vcombine.high %v1054_v1, %v1058_v15  ;;  %v5052_v56 = vcombine.low %v1054_v1, %v1058_v15 }
  0xf2   :  { %1927 = vmatpush1.bf16.msra.mxu0 %v5016_v41  ;;  %1968 = vmatpush1.bf16.msra.mxu1 %v5020_v23  ;;  %7063 = vst [vmem:[#allocation114_spill] sm:$0xff] %v5049_v25  ;;  %v1175_v23 = vld [vmem:[#allocation7 + $0x3d8] sm:$0xff]  ;;  %7065 = vst [vmem:[#allocation116_spill] sm:$0xff] %v5056_v9 }
  0xf3   :  { %1928 = vmatprep.subr.bf16.mxu0 %v5022_v22  ;;  %1969 = vmatprep.subr.bf16.mxu1 %v5025_v53  ;;  %7062 = vst [vmem:[#allocation113_spill] sm:$0xff] %v5046_v12  ;;  %v1174_v53 = vld [vmem:[#allocation7 + $0x3d0] sm:$0xff]  ;;  %v1179_v41 = vld [vmem:[#allocation7 + $0x3f8] sm:$0xff]  ;;  %7064 = vst [vmem:[#allocation115_spill] sm:$0xff] %v5052_v56 }
  0xf4   :  { %v1178_v22 = vld [vmem:[#allocation7 + $0x3f0] sm:$0xff]  ;;  %v5061_v58 = vcombine.high %v1175_v23, %v1179_v41  ;;  %v5068_v3 = vcombine.low %v1175_v23, %v1179_v41 }
  0xf5   :  { %v5058_v18 = vcombine.high %v1174_v53, %v1178_v22  ;;  %v5064_v15 = vcombine.low %v1174_v53, %v1178_v22 }
  0xf6   :  { %1929 = vmatpush1.bf16.msra.mxu0 %v5028_v2  ;;  %1970 = vmatpush1.bf16.msra.mxu1 %v5032_v54  ;;  %7067 = vst [vmem:[#allocation118_spill] sm:$0xff] %v5061_v58  ;;  %v1167_v54 = vld [vmem:[#allocation7 + $0x398] sm:$0xff]  ;;  %7069 = vst [vmem:[#allocation120_spill] sm:$0xff] %v5068_v3 }
  0xf7   :  { %1930 = vmatprep.subr.bf16.mxu0 %v5034_v55  ;;  %1971 = vmatprep.subr.bf16.mxu1 %v5037_v32  ;;  %7066 = vst [vmem:[#allocation117_spill] sm:$0xff] %v5058_v18  ;;  %v1166_v32 = vld [vmem:[#allocation7 + $0x390] sm:$0xff]  ;;  %v1171_v2 = vld [vmem:[#allocation7 + $0x3b8] sm:$0xff]  ;;  %7068 = vst [vmem:[#allocation119_spill] sm:$0xff] %v5064_v15 }
  0xf8   :  { %v1170_v55 = vld [vmem:[#allocation7 + $0x3b0] sm:$0xff]  ;;  %v5073_v1 = vcombine.high %v1167_v54, %v1171_v2  ;;  %v5080_v41 = vcombine.low %v1167_v54, %v1171_v2 }
  0xf9   :  { %v5070_v40 = vcombine.high %v1166_v32, %v1170_v55  ;;  %v5076_v22 = vcombine.low %v1166_v32, %v1170_v55 }
  0xfa   :  { %1931 = vmatpush1.bf16.msra.mxu0 %v5040_v24  ;;  %1972 = vmatpush1.bf16.msra.mxu1 %v5044_v11  ;;  %7071 = vst [vmem:[#allocation122_spill] sm:$0xff] %v5073_v1  ;;  %v1159_v11 = vld [vmem:[#allocation7 + $0x358] sm:$0xff]  ;;  %7073 = vst [vmem:[#allocation124_spill] sm:$0xff] %v5080_v41 }
  0xfb   :  { %1932 = vmatprep.subr.bf16.mxu0 %v5046_v12  ;;  %1973 = vmatprep.subr.bf16.mxu1 %v5049_v25  ;;  %7070 = vst [vmem:[#allocation121_spill] sm:$0xff] %v5070_v40  ;;  %v1158_v25 = vld [vmem:[#allocation7 + $0x350] sm:$0xff]  ;;  %v1163_v24 = vld [vmem:[#allocation7 + $0x378] sm:$0xff]  ;;  %7072 = vst [vmem:[#allocation123_spill] sm:$0xff] %v5076_v22 }
  0xfc   :  { %v1162_v12 = vld [vmem:[#allocation7 + $0x370] sm:$0xff]  ;;  %v5085_v53 = vcombine.high %v1159_v11, %v1163_v24  ;;  %v5092_v2 = vcombine.low %v1159_v11, %v1163_v24 }
  0xfd   :  { %v5082_v23 = vcombine.high %v1158_v25, %v1162_v12  ;;  %v5088_v55 = vcombine.low %v1158_v25, %v1162_v12 }
  0xfe   :  { %1933 = vmatpush1.bf16.msra.mxu0 %v5052_v56  ;;  %1974 = vmatpush1.bf16.msra.mxu1 %v5056_v9  ;;  %7075 = vst [vmem:[#allocation126_spill] sm:$0xff] %v5085_v53  ;;  %v1151_v9 = vld [vmem:[#allocation7 + $0x318] sm:$0xff]  ;;  %7077 = vst [vmem:[#allocation128_spill] sm:$0xff] %v5092_v2 }
  0xff   :  { %1934 = vmatprep.subr.bf16.mxu0 %v5058_v18  ;;  %1975 = vmatprep.subr.bf16.mxu1 %v5061_v58  ;;  %7074 = vst [vmem:[#allocation125_spill] sm:$0xff] %v5082_v23  ;;  %v1150_v58 = vld [vmem:[#allocation7 + $0x310] sm:$0xff]  ;;  %v1155_v56 = vld [vmem:[#allocation7 + $0x338] sm:$0xff]  ;;  %7076 = vst [vmem:[#allocation127_spill] sm:$0xff] %v5088_v55 }
 0x100   :  { %v1154_v18 = vld [vmem:[#allocation7 + $0x330] sm:$0xff]  ;;  %v5097_v32 = vcombine.high %v1151_v9, %v1155_v56  ;;  %v5104_v24 = vcombine.low %v1151_v9, %v1155_v56 }
 0x101   :  { %v5094_v54 = vcombine.high %v1150_v58, %v1154_v18  ;;  %v5100_v12 = vcombine.low %v1150_v58, %v1154_v18 }
 0x102   :  { %1935 = vmatpush2.bf16.msra.mxu0 %v5064_v15  ;;  %1976 = vmatpush2.bf16.msra.mxu1 %v5068_v3  ;;  %7079 = vst [vmem:[#allocation130_spill] sm:$0xff] %v5097_v32  ;;  %v1143_v3 = vld [vmem:[#allocation7 + $0x2d8] sm:$0xff]  ;;  %7081 = vst [vmem:[#allocation132_spill] sm:$0xff] %v5104_v24 }
 0x103   :  { %1936 = vmatprep.subr.bf16.mxu0 %v5070_v40  ;;  %1977 = vmatprep.subr.bf16.mxu1 %v5073_v1  ;;  %7078 = vst [vmem:[#allocation129_spill] sm:$0xff] %v5094_v54  ;;  %v1142_v1 = vld [vmem:[#allocation7 + $0x2d0] sm:$0xff]  ;;  %v1147_v15 = vld [vmem:[#allocation7 + $0x2f8] sm:$0xff]  ;;  %7080 = vst [vmem:[#allocation131_spill] sm:$0xff] %v5100_v12 }
 0x104   :  { %v1146_v40 = vld [vmem:[#allocation7 + $0x2f0] sm:$0xff]  ;;  %v5109_v25 = vcombine.high %v1143_v3, %v1147_v15  ;;  %v5116_v56 = vcombine.low %v1143_v3, %v1147_v15 }
 0x105   :  { %v5106_v11 = vcombine.high %v1142_v1, %v1146_v40  ;;  %v5112_v18 = vcombine.low %v1142_v1, %v1146_v40 }
 0x106   :  { %1937 = vmatpush2.bf16.msra.mxu0 %v5076_v22  ;;  %1978 = vmatpush2.bf16.msra.mxu1 %v5080_v41  ;;  %7083 = vst [vmem:[#allocation134_spill] sm:$0xff] %v5109_v25  ;;  %v1135_v41 = vld [vmem:[#allocation7 + $0x298] sm:$0xff]  ;;  %7085 = vst [vmem:[#allocation136_spill] sm:$0xff] %v5116_v56 }
 0x107   :  { %1938 = vmatprep.subr.bf16.mxu0 %v5082_v23  ;;  %1979 = vmatprep.subr.bf16.mxu1 %v5085_v53  ;;  %7082 = vst [vmem:[#allocation133_spill] sm:$0xff] %v5106_v11  ;;  %v1134_v53 = vld [vmem:[#allocation7 + $0x290] sm:$0xff]  ;;  %v1139_v22 = vld [vmem:[#allocation7 + $0x2b8] sm:$0xff]  ;;  %7084 = vst [vmem:[#allocation135_spill] sm:$0xff] %v5112_v18 }
 0x108   :  { %v1138_v23 = vld [vmem:[#allocation7 + $0x2b0] sm:$0xff]  ;;  %v5121_v58 = vcombine.high %v1135_v41, %v1139_v22  ;;  %v5128_v15 = vcombine.low %v1135_v41, %v1139_v22 }
 0x109   :  { %v5118_v9 = vcombine.high %v1134_v53, %v1138_v23  ;;  %v5124_v40 = vcombine.low %v1134_v53, %v1138_v23 }
 0x10a   :  { %1939 = vmatpush2.bf16.msra.mxu0 %v5088_v55  ;;  %1980 = vmatpush2.bf16.msra.mxu1 %v5092_v2  ;;  %7087 = vst [vmem:[#allocation138_spill] sm:$0xff] %v5121_v58  ;;  %v1127_v2 = vld [vmem:[#allocation7 + $0x258] sm:$0xff]  ;;  %7089 = vst [vmem:[#allocation140_spill] sm:$0xff] %v5128_v15 }
 0x10b   :  { %1940 = vmatprep.subr.bf16.mxu0 %v5094_v54  ;;  %1981 = vmatprep.subr.bf16.mxu1 %v5097_v32  ;;  %7086 = vst [vmem:[#allocation137_spill] sm:$0xff] %v5118_v9  ;;  %v1126_v32 = vld [vmem:[#allocation7 + $0x250] sm:$0xff]  ;;  %v1131_v55 = vld [vmem:[#allocation7 + $0x278] sm:$0xff]  ;;  %7088 = vst [vmem:[#allocation139_spill] sm:$0xff] %v5124_v40 }
 0x10c   :  { %v1130_v54 = vld [vmem:[#allocation7 + $0x270] sm:$0xff]  ;;  %v5133_v1 = vcombine.high %v1127_v2, %v1131_v55  ;;  %v5140_v22 = vcombine.low %v1127_v2, %v1131_v55 }
 0x10d   :  { %v5130_v3 = vcombine.high %v1126_v32, %v1130_v54  ;;  %v5136_v23 = vcombine.low %v1126_v32, %v1130_v54 }
 0x10e   :  { %1941 = vmatpush2.bf16.msra.mxu0 %v5100_v12  ;;  %1982 = vmatpush2.bf16.msra.mxu1 %v5104_v24  ;;  %7091 = vst [vmem:[#allocation142_spill] sm:$0xff] %v5133_v1  ;;  %v1119_v24 = vld [vmem:[#allocation7 + $0x218] sm:$0xff]  ;;  %7093 = vst [vmem:[#allocation144_spill] sm:$0xff] %v5140_v22 }
 0x10f   :  { %1942 = vmatprep.subr.bf16.mxu0 %v5106_v11  ;;  %1983 = vmatprep.subr.bf16.mxu1 %v5109_v25  ;;  %7090 = vst [vmem:[#allocation141_spill] sm:$0xff] %v5130_v3  ;;  %v1118_v25 = vld [vmem:[#allocation7 + $0x210] sm:$0xff]  ;;  %v1123_v12 = vld [vmem:[#allocation7 + $0x238] sm:$0xff]  ;;  %7092 = vst [vmem:[#allocation143_spill] sm:$0xff] %v5136_v23 }
 0x110   :  { %v1122_v11 = vld [vmem:[#allocation7 + $0x230] sm:$0xff]  ;;  %v5145_v53 = vcombine.high %v1119_v24, %v1123_v12  ;;  %v5152_v54 = vcombine.low %v1119_v24, %v1123_v12 }
 0x111   :  { %v5142_v41 = vcombine.high %v1118_v25, %v1122_v11 }
 0x112   :  { %1943 = vmatpush2.bf16.msra.mxu0 %v5112_v18  ;;  %1984 = vmatpush2.bf16.msra.mxu1 %v5116_v56  ;;  %7095 = vst [vmem:[#allocation146_spill] sm:$0xff] %v5145_v53  ;;  %7097 = vst [vmem:[#allocation148_spill] sm:$0xff] %v5152_v54 }
 0x113   :  { %1944 = vmatprep.subr.bf16.mxu0 %v5118_v9  ;;  %1985 = vmatprep.subr.bf16.mxu1 %v5121_v58  ;;  %7094 = vst [vmem:[#allocation145_spill] sm:$0xff] %v5142_v41  ;;  %v5148_v58 = vcombine.low %v1118_v25, %v1122_v11 }
 0x115   :  { %7096 = vst [vmem:[#allocation147_spill] sm:$0xff] %v5148_v58 }
 0x116   :  { %1945 = vmatpush2.bf16.msra.mxu0 %v5124_v40  ;;  %1986 = vmatpush2.bf16.msra.mxu1 %v5128_v15 }
 0x117   :  { %1946 = vmatprep.subr.bf16.mxu0 %v5130_v3  ;;  %1987 = vmatprep.subr.bf16.mxu1 %v5133_v1 }
 0x11a   :  { %1947 = vmatpush2.bf16.msra.mxu0 %v5136_v23  ;;  %1988 = vmatpush2.bf16.msra.mxu1 %v5140_v22 }
 0x11b   :  { %1948 = vmatprep.subr.bf16.mxu0 %v5142_v41  ;;  %1989 = vmatprep.subr.bf16.mxu1 %v5145_v53 }
 0x11e   :  { %1949 = vmatpush2.bf16.msra.mxu0 %v5148_v58  ;;  %1990 = vmatpush2.bf16.msra.mxu1 %v5152_v54 }
 0x11f   :  { %2090 = vmatprep.subr.bf16.mxu0 %v4746_v20  ;;  %2131 = vmatprep.subr.bf16.mxu1 %v4748_v21 }
 0x121   :  { %v5159_v55 = vpop.f32.mrf.mxu0  ;;  %1951 = vmatmul.mubr.bf16.vlgmr.msra.gmra.mxu0 %v4961_v14  ;;  %1992 = vmatmul.mubr.bf16.vlgmr.msra.gmra.mxu1 %v4961_v14  ;;  %v5163_v2 = vpop.f32.mrf.mxu1 }
 0x122   :  { %2091 = vmatpush1.bf16.msra.mxu0 %v4754_v26  ;;  %2132 = vmatpush1.bf16.msra.mxu1 %v4757_v27 }
 0x123   :  { %v5166_v32 = vpop.f32.mrf.mxu0  ;;  %2092 = vmatprep.subr.bf16.mxu0 %v4759_v28  ;;  %v5170_v12 = vpop.f32.mrf.mxu1  ;;  %2133 = vmatprep.subr.bf16.mxu1 %v4762_v29 }
 0x125   :  { %v926_v24 = vpop.f32.mrf.mxu0  ;;  %v967_v11 = vpop.f32.mrf.mxu1 }
 0x126   :  { %2093 = vmatpush1.bf16.msra.mxu0 %v4771_v35  ;;  %2134 = vmatpush1.bf16.msra.mxu1 %v4775_v36  ;;  %v68_v24 = vld [vmem:[%s6672_s6] sm:$0x3] }
 0x127   :  { %v927_v25 = vpop.f32.mrf.mxu0  ;;  %2094 = vmatprep.subr.bf16.mxu0 %v4777_v37  ;;  %v968_v14 = vpop.f32.mrf.mxu1  ;;  %2135 = vmatprep.subr.bf16.mxu1 %v4780_v38  ;;  %69 = vst.msk [vmem:[#allocation10] sm:$0x3] %vm4721_vm0, %v68_v24  ;;  %v7098_v11 = vld [vmem:[#allocation59_spill] sm:$0xff]  ;;  %v7101_v24 = vld [vmem:[#allocation62_spill] sm:$0xff] }
 0x128   :  { %v7099_v25 = vld [vmem:[#allocation60_spill] sm:$0xff]  ;;  %v7100_v14 = vld [vmem:[#allocation61_spill] sm:$0xff] }
 0x12a   :  { %2095 = vmatpush1.bf16.msra.mxu0 %v4785_v42  ;;  %2136 = vmatpush1.bf16.msra.mxu1 %v4789_v43 }
 0x12b   :  { %2096 = vmatprep.subr.bf16.mxu0 %v4791_v57  ;;  %2137 = vmatprep.subr.bf16.mxu1 %v4794_v44 }
 0x12e   :  { %2097 = vmatpush1.bf16.msra.mxu0 %v4797_v49  ;;  %2138 = vmatpush1.bf16.msra.mxu1 %v4801_v50 }
 0x12f   :  { %2098 = vmatprep.subr.bf16.mxu0 %v4803_v51  ;;  %2139 = vmatprep.subr.bf16.mxu1 %v4806_v52 }
 0x132   :  { %2099 = vmatpush1.bf16.msra.mxu0 %v4809_v59  ;;  %2140 = vmatpush1.bf16.msra.mxu1 %v4813_v60 }
 0x133   :  { %2100 = vmatprep.subr.bf16.mxu0 %v4815_v61  ;;  %2141 = vmatprep.subr.bf16.mxu1 %v4818_v62 }
 0x136   :  { %2101 = vmatpush1.bf16.msra.mxu0 %v4821_v5  ;;  %2142 = vmatpush1.bf16.msra.mxu1 %v4825_v6 }
 0x137   :  { %2102 = vmatprep.subr.bf16.mxu0 %v4827_v7  ;;  %2143 = vmatprep.subr.bf16.mxu1 %v4830_v8  ;;  %v7124_v8 = vld [vmem:[#allocation17_spill] sm:$0xff] }
 0x13a   :  { %2103 = vmatpush1.bf16.msra.mxu0 %v4833_v16  ;;  %2144 = vmatpush1.bf16.msra.mxu1 %v4837_v17  ;;  %v7122_v17 = vld [vmem:[#allocation16_spill] sm:$0xff] }
 0x13b   :  { %2104 = vmatprep.subr.bf16.mxu0 %v4839_v4  ;;  %2145 = vmatprep.subr.bf16.mxu1 %v4842_v19  ;;  %v215_v16 = vsub.s32 3, %v7122_v17 }
 0x13e   :  { %2105 = vmatpush1.bf16.msra.mxu0 %v4845_v30  ;;  %2146 = vmatpush1.bf16.msra.mxu1 %v4849_v31 }
 0x13f   :  { %2106 = vmatprep.subr.bf16.mxu0 %v4851_v33  ;;  %2147 = vmatprep.subr.bf16.mxu1 %v4854_v34  ;;  %v7102_v34 = vld [vmem:[#allocation63_spill] sm:$0xff] }
 0x142   :  { %2107 = vmatpush2.bf16.msra.mxu0 %v4857_v45  ;;  %2148 = vmatpush2.bf16.msra.mxu1 %v4861_v46  ;;  %v7103_v45 = vld [vmem:[#allocation64_spill] sm:$0xff]  ;;  %v7104_v46 = vld [vmem:[#allocation65_spill] sm:$0xff] }
 0x143   :  { %2108 = vmatprep.subr.bf16.mxu0 %v4863_v47  ;;  %2149 = vmatprep.subr.bf16.mxu1 %v4866_v48  ;;  %v7105_v47 = vld [vmem:[#allocation66_spill] sm:$0xff]  ;;  %v7106_v48 = vld [vmem:[#allocation67_spill] sm:$0xff] }
 0x146   :  { %2109 = vmatpush2.bf16.msra.mxu0 %v4869_v63  ;;  %2150 = vmatpush2.bf16.msra.mxu1 %v4873_v0  ;;  %v7107_v63 = vld [vmem:[#allocation68_spill] sm:$0xff]  ;;  %v7108_v0 = vld [vmem:[#allocation69_spill] sm:$0xff] }
 0x147   :  { %2110 = vmatprep.subr.bf16.mxu0 %v7098_v11  ;;  %2151 = vmatprep.subr.bf16.mxu1 %v7099_v25  ;;  %v7109_v25 = vld [vmem:[#allocation71_spill] sm:$0xff] }
 0x14a   :  { %2111 = vmatpush2.bf16.msra.mxu0 %v7100_v14  ;;  %2152 = vmatpush2.bf16.msra.mxu1 %v7101_v24  ;;  %v7110_v14 = vld [vmem:[#allocation72_spill] sm:$0xff] }
 0x14b   :  { %2112 = vmatprep.subr.bf16.mxu0 %v7102_v34  ;;  %2153 = vmatprep.subr.bf16.mxu1 %v7103_v45  ;;  %v7111_v34 = vld [vmem:[#allocation74_spill] sm:$0xff]  ;;  %v7112_v45 = vld [vmem:[#allocation75_spill] sm:$0xff] }
 0x14e   :  { %2113 = vmatpush2.bf16.msra.mxu0 %v7104_v46  ;;  %2154 = vmatpush2.bf16.msra.mxu1 %v7105_v47  ;;  %v7113_v46 = vld [vmem:[#allocation76_spill] sm:$0xff]  ;;  %v7114_v47 = vld [vmem:[#allocation78_spill] sm:$0xff] }
 0x14f   :  { %2114 = vmatprep.subr.bf16.mxu0 %v7106_v48  ;;  %2155 = vmatprep.subr.bf16.mxu1 %v7107_v63  ;;  %v7115_v48 = vld [vmem:[#allocation79_spill] sm:$0xff]  ;;  %v7116_v63 = vld [vmem:[#allocation80_spill] sm:$0xff] }
 0x152   :  { %2115 = vmatpush2.bf16.msra.mxu0 %v7108_v0  ;;  %2156 = vmatpush2.bf16.msra.mxu1 %v4909_v10  ;;  %v7117_v0 = vld [vmem:[#allocation81_spill] sm:$0xff]  ;;  %v7118_v10 = vld [vmem:[#allocation83_spill] sm:$0xff] }
 0x153   :  { %2116 = vmatprep.subr.bf16.mxu0 %v7109_v25  ;;  %2157 = vmatprep.subr.bf16.mxu1 %v7110_v14  ;;  %v7119_v25 = vld [vmem:[#allocation84_spill] sm:$0xff]  ;;  %v7120_v14 = vld [vmem:[#allocation85_spill] sm:$0xff] }
 0x156   :  { %2117 = vmatpush2.bf16.msra.mxu0 %v4917_v39  ;;  %2158 = vmatpush2.bf16.msra.mxu1 %v7111_v34  ;;  %v7121_v39 = vld [vmem:[#allocation86_spill] sm:$0xff] }
 0x157   :  { %2118 = vmatprep.subr.bf16.mxu0 %v7112_v45  ;;  %2159 = vmatprep.subr.bf16.mxu1 %v7113_v46 }
 0x15a   :  { %2119 = vmatpush2.bf16.msra.mxu0 %v7114_v47  ;;  %2160 = vmatpush2.bf16.msra.mxu1 %v7115_v48 }
 0x15b   :  { %2120 = vmatprep.subr.bf16.mxu0 %v7116_v63  ;;  %2161 = vmatprep.subr.bf16.mxu1 %v7117_v0 }
 0x15e   :  { %2121 = vmatpush2.bf16.msra.mxu0 %v7118_v10  ;;  %2162 = vmatpush2.bf16.msra.mxu1 %v7119_v25 }
 0x15f   :  { %2172 = vmatprep.subr.bf16.mxu0 %v7120_v14  ;;  %2213 = vmatprep.subr.bf16.mxu1 %v7121_v39  ;;  %v211_v14 = vsub.s32 2, %v7122_v17  ;;  %v199_v39 = vld [vmem:[%s6670_s4] sm:$0xff]  ;;  %s3460_s4 = scalar_select %p4383_p1, 1, 0 }
 0x160   :  { %v208_v7 = vrot.slane %v199_v39, %v7124_v8 }
 0x161   :  { %v1004_v34 = vpop.f32.mrf.mxu0  ;;  %v1045_v45 = vpop.f32.mrf.mxu1 }
 0x163   :  { %v1006_v24 = vpop.f32.mrf.mxu0  ;;  %v1047_v46 = vpop.f32.mrf.mxu1 }
 0x165   :  { %v1008_v11 = vpop.f32.mrf.mxu0  ;;  %v1049_v47 = vpop.f32.mrf.mxu1 }
 0x166   :  { %v212_v11 = vrot.slane %v199_v39, %v211_v14  ;;  %v7123_v47 = vld [vmem:[#allocation77_spill] sm:$0xff]  ;;  %v5257_v14 = vadd.f32 %v5166_v32, %v208_v7  ;;  %v231_v32 = vsub.s32 7, %v7122_v17 }
 0x167   :  { %v1009_v33 = vpop.f32.mrf.mxu0  ;;  %v1050_v48 = vpop.f32.mrf.mxu1 }
 0x168   :  { %v204_v33 = vrot.slane %v199_v39, %v7123_v47  ;;  %v216_v48 = vrot.slane %v199_v39, %v215_v16  ;;  %v5246_v6 = vadd.f32 %v5163_v2, %v212_v11  ;;  %7125 = vst [vmem:[#allocation16_spill] sm:$0xff] %v5257_v14  ;;  %v219_v11 = vsub.s32 4, %v7122_v17 }
 0x1a1   :  { %v1870_v31 = vpop.f32.mrf.mxu0  ;;  %v1911_v63 = vpop.f32.mrf.mxu1 }
 0x1a3   :  { %v1872_v30 = vpop.f32.mrf.mxu0  ;;  %v1913_v0 = vpop.f32.mrf.mxu1 }
 0x1a4   :  { %v2001_v62 = vadd.f32 %v1872_v30, %v5257_v14 }
 0x1a5   :  { %v1874_v19 = vpop.f32.mrf.mxu0  ;;  %v1915_v10 = vpop.f32.mrf.mxu1 }
 0x1a6   :  { %v5252_v19 = vadd.f32 %v5170_v12, %v216_v48  ;;  %v2002_v10 = vadd.f32 %v1911_v63, %v5246_v6  ;;  %v2009_v12 = vmul.f32 0.5, %v2001_v62  ;;  %v220_v63 = vrot.slane %v199_v39, %v219_v11 }
 0x1a7   :  { %v1875_v4 = vpop.f32.mrf.mxu0  ;;  %v1916_v25 = vpop.f32.mrf.mxu1 }
 0x1a8   :  { %v5249_v4 = vadd.f32 %v5159_v55, %v204_v33  ;;  %v2003_v16 = vadd.f32 %v1913_v0, %v5252_v19  ;;  %v2016_v5 = vmul.f32 0.5, %v2002_v10  ;;  %v223_v33 = vsub.s32 5, %v7122_v17 }
 0x1a9   :  { %v5265_v0 = vadd.f32 %v1004_v34, %v220_v63 }
 0x1aa   :  { %v2000_v25 = vadd.f32 %v1870_v31, %v5249_v4  ;;  %v2017_v55 = vmul.f32 0.5, %v2003_v16  ;;  %4398 = vtanh.f32 %v2016_v5  ;;  %v227_v31 = vsub.s32 6, %v7122_v17 }
 0x1ab   :  { %v224_v7 = vrot.slane %v199_v39, %v223_v33 }
 0x1ac   :  { %v2008_v2 = vmul.f32 0.5, %v2000_v25  ;;  %v228_v30 = vrot.slane %v199_v39, %v227_v31  ;;  %v232_v25 = vrot.slane %v199_v39, %v231_v32 }
 0x1ad   :  { %v5267_v10 = vadd.f32 %v1006_v24, %v224_v7 }
 0x1ae   :  { %4400 = vtanh.f32 %v2008_v2  ;;  %v5270_v2 = vadd.f32 %v1045_v45, %v228_v30  ;;  %v5273_v14 = vadd.f32 %v1047_v46, %v232_v25  ;;  %v1182_v46 = vld [vmem:[#allocation10] sm:$0x3] }
 0x1af   :  { %4402 = vtanh.f32 %v2017_v55 }
 0x1b0   :  { %4404 = vtanh.f32 %v2009_v12 }
 0x1b7   :  { %v4399_v24 = vpop.eup %4398 }
 0x1b8   :  { %v2020_v32 = vmul.f32 0.5, %v4399_v24  ;;  %v2058_v24 = vstv %s2057_s25 }
 0x1b9   :  { %vm5287_vm1 = vcmp.eq.s32.totalorder %v2058_v24, 1 }
 0x1bb   :  { %v4401_v39 = vpop.eup %4400 }
 0x1bc   :  { %v4403_v45 = vpop.eup %4402  ;;  %v2012_v25 = vmul.f32 0.5, %v4401_v39 }
 0x1e1   :  { %v1952_v48 = vpop.f32.mrf.mxu0  ;;  %v1993_v5 = vpop.f32.mrf.mxu1 }
 0x1e2   :  { %v2004_v16 = vadd.f32 %v1952_v48, %v5265_v0  ;;  %v2006_v34 = vadd.f32 %v1993_v5, %v5270_v2  ;;  %v4405_v48 = vpop.eup %4404 }
 0x1e3   :  { %v1954_v62 = vpop.f32.mrf.mxu0  ;;  %v1995_v55 = vpop.f32.mrf.mxu1 }
 0x1e4   :  { %4406 = vtanh.f32 %v2004_v16  ;;  %v2005_v11 = vadd.f32 %v1954_v62, %v5267_v10  ;;  %v2007_v31 = vadd.f32 %v1995_v55, %v5273_v14  ;;  %v2026_v30 = vmul.f32 0.5, %v2006_v34 }
 0x1e5   :  { %v1956_v33 = vpop.f32.mrf.mxu0  ;;  %v1997_v12 = vpop.f32.mrf.mxu1  ;;  %v2021_v16 = vmul.f32 0.5, %v4403_v45  ;;  %v2022_v62 = vadd.f32 0.5, %v2020_v32  ;;  %v5284_v55 = vrot.slane %v1182_v46, %v7124_v8  ;;  %v7247_v32 = vld [vmem:[#allocation106_spill] sm:$0xff] }
 0x1e6   :  { %4408 = vtanh.f32 %v2005_v11  ;;  %v2027_v5 = vmul.f32 0.5, %v2007_v31  ;;  %v5281_v11 = vrot.slane %v1182_v46, %v7123_v47  ;;  %v2013_v33 = vmul.f32 0.5, %v4405_v48  ;;  %v7129_v46 = vld [vmem:[#allocation82_spill] sm:$0xff] }
 0x1e7   :  { %v1957_v63 = vpop.f32.mrf.mxu0  ;;  %v1998_v7 = vpop.f32.mrf.mxu1  ;;  %4410 = vtanh.f32 %v2026_v30  ;;  %7126 = vst [vmem:[#allocation77_spill] sm:$0xff] %v5284_v55  ;;  %v2014_v12 = vadd.f32 0.5, %v2012_v25 }
 0x1e8   :  { %v2023_v63 = vadd.f32 0.5, %v2021_v16  ;;  %4412 = vtanh.f32 %v2027_v5  ;;  %v2045_v7 = vmul.f32 %v5281_v11, %v2022_v62  ;;  %v2015_v39 = vadd.f32 0.5, %v2013_v33 }
 0x1e9   :  { %v4650_v33 = vmov 1966171168  }
 0x1ea   :  { %v2046_v47 = vmul.f32 %v5284_v55, %v2023_v63  ;;  %v7130_v55 = vld [vmem:[#allocation20_spill] sm:$0xff] }
 0x1f1   :  { %v4407_v34 = vpop.eup %4406 }
 0x1f2   :  { %v2047_v45 = vmul.f32 %v4407_v34, %v2014_v12  ;;  %v2068_v12 = vunpack.c.l.s4 %v4650_v33  ;;  %v7131_v33 = vld [vmem:[#allocation87_spill] sm:$0xff] }
 0x1f3   :  { %v4409_v31 = vpop.eup %4408 }
 0x1f4   :  { %v5292_v30 = vadd.f32 %v2047_v45, %v2045_v7  ;;  %v2048_v8 = vmul.f32 %v4409_v31, %v2015_v39  ;;  %v4411_v16 = vpop.eup %4410  ;;  %v2069_v7 = vunpack.c.0.s8 %v2068_v12  ;;  %v7132_v12 = vld [vmem:[#allocation88_spill] sm:$0xff] }
 0x1f5   :  { %v4413_v5 = vpop.eup %4412  ;;  %v2030_v62 = vmul.f32 0.5, %v4411_v16 }
 0x1f6   :  { %4414 = vtanh.f32 %v5292_v30  ;;  %v5295_v48 = vadd.f32 %v2048_v8, %v2046_v47  ;;  %v2031_v63 = vmul.f32 0.5, %v4413_v5  ;;  %v5307_v8 = vsub.s32 %v2069_v7, %v7122_v17  ;;  %v7136_v7 = vld [vmem:[#allocation92_spill] sm:$0xff] }
 0x1f7   :  { %v2032_v24 = vadd.f32 0.5, %v2030_v62 }
 0x1f8   :  { %4416 = vtanh.f32 %v5295_v48  ;;  %v2033_v45 = vadd.f32 0.5, %v2031_v63  ;;  %v7133_v63 = vld [vmem:[#allocation89_spill] sm:$0xff] }
 0x203   :  { %v4415_v34 = vpop.eup %4414 }
 0x204   :  { %v2053_v39 = vmul.f32 %v4415_v34, %v2032_v24  ;;  %v7134_v24 = vld [vmem:[#allocation90_spill] sm:$0xff]  ;;  %v7135_v34 = vld [vmem:[#allocation91_spill] sm:$0xff] }
 0x205   :  { %v4417_v31 = vpop.eup %4416 }
 0x206   :  { %v2054_v47 = vmul.f32 %v4417_v31, %v2033_v45  ;;  %v5312_v25 = vsel %vm5287_vm1, %v2053_v39, %v7129_v46  ;;  %v7137_v39 = vld [vmem:[#allocation93_spill] sm:$0xff]  ;;  %v7138_v45 = vld [vmem:[#allocation94_spill] sm:$0xff]  ;;  %v7139_v31 = vld [vmem:[#allocation95_spill] sm:$0xff] }
 0x207   :  { %v5325_v17 = vpack.c.bf16 %v5312_v25, %v5312_v25 }
 0x208   :  { %v5317_v16 = vsel %vm5287_vm1, %v2054_v47, %v7130_v55  ;;  %v7140_v47 = vld [vmem:[#allocation96_spill] sm:$0xff] }
 0x209   :  { %v2089_v5 = vpack.c.bf16 %v5317_v16, %v5317_v16  ;;  %v2066_v62 = vcombine.low %v5312_v25, %v5317_v16 }
 0x20b   :  { %2122 = vmatprep.mubr.bf16.mxu0 %v2089_v5  ;;  %2163 = vmatprep.mubr.bf16.mxu1 %v2089_v5  ;;  %v2073_v46 = vrot.slane %v2066_v62, %v5307_v8  ;;  %v7142_v62 = vld [vmem:[#allocation98_spill] sm:$0xff] }
 0x20c   :  { %2123 = vmatmul.mubr.bf16.vlgmr.msra.gmra.mxu0 %v5325_v17  ;;  %2164 = vmatmul.mubr.bf16.vlgmr.msra.gmra.mxu1 %v5325_v17 }
 0x20d   :  { %v2080_v55 = vrot.slane %v2073_v46, %v5307_v8  ;;  %2173 = vmatpush1.bf16.msra.mxu0 %v7131_v33  ;;  %2214 = vmatpush1.bf16.msra.mxu1 %v7132_v12  ;;  %v7143_v46 = vld [vmem:[#allocation99_spill] sm:$0xff] }
 0x20e   :  { %2204 = vmatprep.mubr.bf16.mxu0 %v2089_v5  ;;  %2245 = vmatprep.mubr.bf16.mxu1 %v2089_v5  ;;  %v7141_v5 = vld [vmem:[#allocation97_spill] sm:$0xff] }
 0x20f   :  { %2086 = vst.msk [vmem:[%s6673_s7] ss:$8 sm:$0x3] %vm4721_vm0, %v2080_v55  ;;  %2174 = vmatprep.subr.bf16.mxu0 %v7133_v63  ;;  %2215 = vmatprep.subr.bf16.mxu1 %v7134_v24  ;;  %v7144_v55 = vld [vmem:[#allocation100_spill] sm:$0xff]  ;;  %v7145_v24 = vld [vmem:[#allocation101_spill] sm:$0xff] }
 0x211   :  { %2175 = vmatpush1.bf16.msra.mxu0 %v7135_v34  ;;  %2216 = vmatpush1.bf16.msra.mxu1 %v7136_v7  ;;  %v7146_v34 = vld [vmem:[#allocation102_spill] sm:$0xff]  ;;  %v7147_v7 = vld [vmem:[#allocation103_spill] sm:$0xff] }
 0x212   :  { %2176 = vmatprep.subr.bf16.mxu0 %v7137_v39  ;;  %2217 = vmatprep.subr.bf16.mxu1 %v7138_v45  ;;  %v7148_v39 = vld [vmem:[#allocation104_spill] sm:$0xff]  ;;  %v7149_v45 = vld [vmem:[#allocation105_spill] sm:$0xff] }
 0x215   :  { %2177 = vmatpush1.bf16.msra.mxu0 %v7139_v31  ;;  %2218 = vmatpush1.bf16.msra.mxu1 %v7140_v47  ;;  %v7150_v31 = vld [vmem:[#allocation106_spill] sm:$0xff]  ;;  %v7151_v47 = vld [vmem:[#allocation107_spill] sm:$0xff] }
 0x216   :  { %2178 = vmatprep.subr.bf16.mxu0 %v7141_v5  ;;  %2219 = vmatprep.subr.bf16.mxu1 %v7142_v62  ;;  %v7152_v5 = vld [vmem:[#allocation108_spill] sm:$0xff]  ;;  %v7153_v62 = vld [vmem:[#allocation109_spill] sm:$0xff] }
 0x219   :  { %2179 = vmatpush1.bf16.msra.mxu0 %v7143_v46  ;;  %2220 = vmatpush1.bf16.msra.mxu1 %v7144_v55  ;;  %v7154_v46 = vld [vmem:[#allocation110_spill] sm:$0xff]  ;;  %v7155_v55 = vld [vmem:[#allocation111_spill] sm:$0xff] }
 0x21a   :  { %2180 = vmatprep.subr.bf16.mxu0 %v7145_v24  ;;  %2221 = vmatprep.subr.bf16.mxu1 %v7146_v34  ;;  %v7156_v24 = vld [vmem:[#allocation112_spill] sm:$0xff]  ;;  %v7157_v34 = vld [vmem:[#allocation113_spill] sm:$0xff] }
 0x21d   :  { %2181 = vmatpush1.bf16.msra.mxu0 %v7147_v7  ;;  %2222 = vmatpush1.bf16.msra.mxu1 %v7148_v39  ;;  %v7158_v7 = vld [vmem:[#allocation114_spill] sm:$0xff]  ;;  %v7159_v39 = vld [vmem:[#allocation115_spill] sm:$0xff] }
 0x21e   :  { %2182 = vmatprep.subr.bf16.mxu0 %v7149_v45  ;;  %2223 = vmatprep.subr.bf16.mxu1 %v7150_v31  ;;  %v7160_v45 = vld [vmem:[#allocation116_spill] sm:$0xff]  ;;  %v7161_v31 = vld [vmem:[#allocation117_spill] sm:$0xff] }
 0x221   :  { %2183 = vmatpush1.bf16.msra.mxu0 %v7151_v47  ;;  %2224 = vmatpush1.bf16.msra.mxu1 %v7152_v5  ;;  %v7162_v47 = vld [vmem:[#allocation118_spill] sm:$0xff]  ;;  %v7163_v5 = vld [vmem:[#allocation119_spill] sm:$0xff] }
 0x222   :  { %2184 = vmatprep.subr.bf16.mxu0 %v7153_v62  ;;  %2225 = vmatprep.subr.bf16.mxu1 %v7154_v46  ;;  %v7164_v62 = vld [vmem:[#allocation120_spill] sm:$0xff]  ;;  %v7165_v46 = vld [vmem:[#allocation121_spill] sm:$0xff] }
 0x225   :  { %2185 = vmatpush1.bf16.msra.mxu0 %v7155_v55  ;;  %2226 = vmatpush1.bf16.msra.mxu1 %v7156_v24  ;;  %v7166_v55 = vld [vmem:[#allocation122_spill] sm:$0xff]  ;;  %v7167_v24 = vld [vmem:[#allocation123_spill] sm:$0xff] }
 0x226   :  { %2186 = vmatprep.subr.bf16.mxu0 %v7157_v34  ;;  %2227 = vmatprep.subr.bf16.mxu1 %v7158_v7  ;;  %v7168_v34 = vld [vmem:[#allocation124_spill] sm:$0xff]  ;;  %v7169_v7 = vld [vmem:[#allocation125_spill] sm:$0xff] }
 0x229   :  { %2187 = vmatpush1.bf16.msra.mxu0 %v7159_v39  ;;  %2228 = vmatpush1.bf16.msra.mxu1 %v7160_v45  ;;  %v7170_v39 = vld [vmem:[#allocation126_spill] sm:$0xff]  ;;  %v7171_v45 = vld [vmem:[#allocation127_spill] sm:$0xff] }
 0x22a   :  { %2188 = vmatprep.subr.bf16.mxu0 %v7161_v31  ;;  %2229 = vmatprep.subr.bf16.mxu1 %v7162_v47  ;;  %v7172_v31 = vld [vmem:[#allocation128_spill] sm:$0xff]  ;;  %v7173_v47 = vld [vmem:[#allocation129_spill] sm:$0xff] }
 0x22d   :  { %2189 = vmatpush2.bf16.msra.mxu0 %v7163_v5  ;;  %2230 = vmatpush2.bf16.msra.mxu1 %v7164_v62  ;;  %v7174_v5 = vld [vmem:[#allocation130_spill] sm:$0xff]  ;;  %v7175_v62 = vld [vmem:[#allocation131_spill] sm:$0xff] }
 0x22e   :  { %2190 = vmatprep.subr.bf16.mxu0 %v7165_v46  ;;  %2231 = vmatprep.subr.bf16.mxu1 %v7166_v55  ;;  %v7176_v46 = vld [vmem:[#allocation132_spill] sm:$0xff]  ;;  %v7177_v55 = vld [vmem:[#allocation133_spill] sm:$0xff] }
 0x231   :  { %2191 = vmatpush2.bf16.msra.mxu0 %v7167_v24  ;;  %2232 = vmatpush2.bf16.msra.mxu1 %v7168_v34  ;;  %v7178_v24 = vld [vmem:[#allocation134_spill] sm:$0xff] }
 0x232   :  { %2192 = vmatprep.subr.bf16.mxu0 %v7169_v7  ;;  %2233 = vmatprep.subr.bf16.mxu1 %v7170_v39 }
 0x235   :  { %2193 = vmatpush2.bf16.msra.mxu0 %v7171_v45  ;;  %2234 = vmatpush2.bf16.msra.mxu1 %v7172_v31  ;;  %v7179_v45 = vld [vmem:[#allocation138_spill] sm:$0xff] }
 0x236   :  { %2194 = vmatprep.subr.bf16.mxu0 %v7173_v47  ;;  %2235 = vmatprep.subr.bf16.mxu1 %v7174_v5 }
 0x239   :  { %2195 = vmatpush2.bf16.msra.mxu0 %v7175_v62  ;;  %2236 = vmatpush2.bf16.msra.mxu1 %v7176_v46 }
 0x23a   :  { %2196 = vmatprep.subr.bf16.mxu0 %v7177_v55  ;;  %2237 = vmatprep.subr.bf16.mxu1 %v7178_v24 }
 0x23d   :  { %2197 = vmatpush2.bf16.msra.mxu0 %v5112_v18  ;;  %2238 = vmatpush2.bf16.msra.mxu1 %v5116_v56 }
 0x23e   :  { %2198 = vmatprep.subr.bf16.mxu0 %v5118_v9  ;;  %2239 = vmatprep.subr.bf16.mxu1 %v7179_v45 }
 0x241   :  { %2199 = vmatpush2.bf16.msra.mxu0 %v5124_v40  ;;  %2240 = vmatpush2.bf16.msra.mxu1 %v5128_v15 }
 0x242   :  { %2200 = vmatprep.subr.bf16.mxu0 %v5130_v3  ;;  %2241 = vmatprep.subr.bf16.mxu1 %v5133_v1 }
 0x245   :  { %2201 = vmatpush2.bf16.msra.mxu0 %v5136_v23  ;;  %2242 = vmatpush2.bf16.msra.mxu1 %v5140_v22 }
 0x246   :  { %2202 = vmatprep.subr.bf16.mxu0 %v5142_v41  ;;  %2243 = vmatprep.subr.bf16.mxu1 %v5145_v53 }
 0x249   :  { %2203 = vmatpush2.bf16.msra.mxu0 %v5148_v58  ;;  %2244 = vmatpush2.bf16.msra.mxu1 %v5152_v54 }
 0x24a   :  { %2373 = vmatprep.subr.bf16.mxu0 %v4746_v20  ;;  %2414 = vmatprep.subr.bf16.mxu1 %v4748_v21 }
 0x24c   :  { %2205 = vmatmul.mubr.bf16.vlgmr.msra.gmra.mxu0 %v5325_v17  ;;  %2246 = vmatmul.mubr.bf16.vlgmr.msra.gmra.mxu1 %v5325_v17  ;;  %v7180_v17 = vld [vmem:[#allocation40_spill] sm:$0xff] }
 0x24d   :  { %2374 = vmatpush1.bf16.msra.mxu0 %v4754_v26  ;;  %2415 = vmatpush1.bf16.msra.mxu1 %v4757_v27 }
 0x24e   :  { %2375 = vmatprep.subr.bf16.mxu0 %v4759_v28  ;;  %2416 = vmatprep.subr.bf16.mxu1 %v4762_v29 }
 0x251   :  { %2376 = vmatpush1.bf16.msra.mxu0 %v4771_v35  ;;  %2417 = vmatpush1.bf16.msra.mxu1 %v4775_v36 }
 0x252   :  { %2377 = vmatprep.subr.bf16.mxu0 %v4777_v37  ;;  %2418 = vmatprep.subr.bf16.mxu1 %v4780_v38 }
 0x255   :  { %2378 = vmatpush1.bf16.msra.mxu0 %v4785_v42  ;;  %2419 = vmatpush1.bf16.msra.mxu1 %v4789_v43  ;;  %v7181_v43 = vld [vmem:[#allocation41_spill] sm:$0xff] }
 0x256   :  { %2379 = vmatprep.subr.bf16.mxu0 %v4791_v57  ;;  %2420 = vmatprep.subr.bf16.mxu1 %v4794_v44  ;;  %v7182_v57 = vld [vmem:[#allocation42_spill] sm:$0xff]  ;;  %v7183_v44 = vld [vmem:[#allocation43_spill] sm:$0xff] }
 0x259   :  { %2380 = vmatpush1.bf16.msra.mxu0 %v4797_v49  ;;  %2421 = vmatpush1.bf16.msra.mxu1 %v4801_v50  ;;  %v7184_v49 = vld [vmem:[#allocation44_spill] sm:$0xff]  ;;  %v7185_v50 = vld [vmem:[#allocation45_spill] sm:$0xff] }
 0x25a   :  { %2381 = vmatprep.subr.bf16.mxu0 %v4803_v51  ;;  %2422 = vmatprep.subr.bf16.mxu1 %v4806_v52  ;;  %v7186_v51 = vld [vmem:[#allocation46_spill] sm:$0xff]  ;;  %v7187_v52 = vld [vmem:[#allocation47_spill] sm:$0xff] }
 0x25d   :  { %2382 = vmatpush1.bf16.msra.mxu0 %v4809_v59  ;;  %2423 = vmatpush1.bf16.msra.mxu1 %v4813_v60  ;;  %v7188_v59 = vld [vmem:[#allocation48_spill] sm:$0xff]  ;;  %v7189_v60 = vld [vmem:[#allocation49_spill] sm:$0xff] }
 0x25e   :  { %2383 = vmatprep.subr.bf16.mxu0 %v4815_v61  ;;  %2424 = vmatprep.subr.bf16.mxu1 %v7180_v17  ;;  %v7190_v61 = vld [vmem:[#allocation50_spill] sm:$0xff]  ;;  %v7191_v17 = vld [vmem:[#allocation51_spill] sm:$0xff] }
 0x261   :  { %2384 = vmatpush1.bf16.msra.mxu0 %v7181_v43  ;;  %2425 = vmatpush1.bf16.msra.mxu1 %v7182_v57  ;;  %v7192_v43 = vld [vmem:[#allocation52_spill] sm:$0xff]  ;;  %v7193_v57 = vld [vmem:[#allocation53_spill] sm:$0xff] }
 0x262   :  { %2385 = vmatprep.subr.bf16.mxu0 %v7183_v44  ;;  %2426 = vmatprep.subr.bf16.mxu1 %v7184_v49  ;;  %v7194_v44 = vld [vmem:[#allocation54_spill] sm:$0xff]  ;;  %v7195_v49 = vld [vmem:[#allocation55_spill] sm:$0xff] }
 0x265   :  { %2386 = vmatpush1.bf16.msra.mxu0 %v7185_v50  ;;  %2427 = vmatpush1.bf16.msra.mxu1 %v7186_v51  ;;  %v7196_v50 = vld [vmem:[#allocation56_spill] sm:$0xff]  ;;  %v7197_v51 = vld [vmem:[#allocation57_spill] sm:$0xff] }
 0x266   :  { %2387 = vmatprep.subr.bf16.mxu0 %v7187_v52  ;;  %2428 = vmatprep.subr.bf16.mxu1 %v7188_v59  ;;  %v7198_v52 = vld [vmem:[#allocation58_spill] sm:$0xff]  ;;  %v7199_v59 = vld [vmem:[#allocation59_spill] sm:$0xff] }
 0x269   :  { %2388 = vmatpush1.bf16.msra.mxu0 %v7189_v60  ;;  %2429 = vmatpush1.bf16.msra.mxu1 %v7190_v61  ;;  %v7200_v60 = vld [vmem:[#allocation60_spill] sm:$0xff]  ;;  %v7201_v61 = vld [vmem:[#allocation61_spill] sm:$0xff] }
 0x26a   :  { %2389 = vmatprep.subr.bf16.mxu0 %v7191_v17  ;;  %2430 = vmatprep.subr.bf16.mxu1 %v7192_v43  ;;  %v7202_v17 = vld [vmem:[#allocation62_spill] sm:$0xff]  ;;  %v7203_v43 = vld [vmem:[#allocation63_spill] sm:$0xff] }
 0x26d   :  { %2390 = vmatpush2.bf16.msra.mxu0 %v7193_v57  ;;  %2431 = vmatpush2.bf16.msra.mxu1 %v7194_v44  ;;  %v7204_v57 = vld [vmem:[#allocation64_spill] sm:$0xff]  ;;  %v7205_v44 = vld [vmem:[#allocation65_spill] sm:$0xff] }
 0x26e   :  { %2391 = vmatprep.subr.bf16.mxu0 %v7195_v49  ;;  %2432 = vmatprep.subr.bf16.mxu1 %v7196_v50  ;;  %v7206_v49 = vld [vmem:[#allocation66_spill] sm:$0xff]  ;;  %v7207_v50 = vld [vmem:[#allocation67_spill] sm:$0xff] }
 0x271   :  { %2392 = vmatpush2.bf16.msra.mxu0 %v7197_v51  ;;  %2433 = vmatpush2.bf16.msra.mxu1 %v7198_v52  ;;  %v7208_v51 = vld [vmem:[#allocation68_spill] sm:$0xff]  ;;  %v7209_v52 = vld [vmem:[#allocation69_spill] sm:$0xff] }
 0x272   :  { %2393 = vmatprep.subr.bf16.mxu0 %v7199_v59  ;;  %2434 = vmatprep.subr.bf16.mxu1 %v7200_v60  ;;  %v7210_v59 = vld [vmem:[#allocation70_spill] sm:$0xff]  ;;  %v7211_v60 = vld [vmem:[#allocation71_spill] sm:$0xff] }
 0x275   :  { %2394 = vmatpush2.bf16.msra.mxu0 %v7201_v61  ;;  %2435 = vmatpush2.bf16.msra.mxu1 %v7202_v17  ;;  %v7212_v61 = vld [vmem:[#allocation72_spill] sm:$0xff]  ;;  %v7213_v17 = vld [vmem:[#allocation73_spill] sm:$0xff] }
 0x276   :  { %2395 = vmatprep.subr.bf16.mxu0 %v7203_v43  ;;  %2436 = vmatprep.subr.bf16.mxu1 %v7204_v57  ;;  %v7214_v43 = vld [vmem:[#allocation74_spill] sm:$0xff]  ;;  %v7215_v57 = vld [vmem:[#allocation75_spill] sm:$0xff] }
 0x279   :  { %2396 = vmatpush2.bf16.msra.mxu0 %v7205_v44  ;;  %2437 = vmatpush2.bf16.msra.mxu1 %v7206_v49  ;;  %v7216_v44 = vld [vmem:[#allocation76_spill] sm:$0xff]  ;;  %v7217_v49 = vld [vmem:[#allocation78_spill] sm:$0xff] }
 0x27a   :  { %2397 = vmatprep.subr.bf16.mxu0 %v7207_v50  ;;  %2438 = vmatprep.subr.bf16.mxu1 %v7208_v51  ;;  %v7218_v50 = vld [vmem:[#allocation79_spill] sm:$0xff]  ;;  %v7219_v51 = vld [vmem:[#allocation80_spill] sm:$0xff] }
 0x27d   :  { %2398 = vmatpush2.bf16.msra.mxu0 %v7209_v52  ;;  %2439 = vmatpush2.bf16.msra.mxu1 %v7210_v59  ;;  %v7220_v52 = vld [vmem:[#allocation81_spill] sm:$0xff]  ;;  %v7221_v59 = vld [vmem:[#allocation83_spill] sm:$0xff] }
 0x27e   :  { %2399 = vmatprep.subr.bf16.mxu0 %v7211_v60  ;;  %2440 = vmatprep.subr.bf16.mxu1 %v7212_v61  ;;  %v7222_v60 = vld [vmem:[#allocation84_spill] sm:$0xff]  ;;  %v7223_v61 = vld [vmem:[#allocation85_spill] sm:$0xff] }
 0x281   :  { %2400 = vmatpush2.bf16.msra.mxu0 %v7213_v17  ;;  %2441 = vmatpush2.bf16.msra.mxu1 %v7214_v43  ;;  %v7224_v17 = vld [vmem:[#allocation86_spill] sm:$0xff] }
 0x282   :  { %2401 = vmatprep.subr.bf16.mxu0 %v7215_v57  ;;  %2442 = vmatprep.subr.bf16.mxu1 %v7216_v44 }
 0x285   :  { %2402 = vmatpush2.bf16.msra.mxu0 %v7217_v49  ;;  %2443 = vmatpush2.bf16.msra.mxu1 %v7218_v50 }
 0x286   :  { %2403 = vmatprep.subr.bf16.mxu0 %v7219_v51  ;;  %2444 = vmatprep.subr.bf16.mxu1 %v7220_v52 }
 0x289   :  { %2404 = vmatpush2.bf16.msra.mxu0 %v7221_v59  ;;  %2445 = vmatpush2.bf16.msra.mxu1 %v7222_v60 }
 0x28a   :  { %2455 = vmatprep.subr.bf16.mxu0 %v7223_v61  ;;  %2496 = vmatprep.subr.bf16.mxu1 %v7224_v17  ;;  %v7225_v17 = vld [vmem:[#allocation16_spill] sm:$0xff] }
 0x2cc   :  { %v2124_v43 = vpop.f32.mrf.mxu0  ;;  %v2165_v57 = vpop.f32.mrf.mxu1 }
 0x2cd   :  { %v2264_v36 = vrot.slane %v2165_v57, 7  ;;  %v2262_v51 = vrot.slane %v2124_v43, 7 }
 0x2ce   :  { %v2126_v42 = vpop.f32.mrf.mxu0  ;;  %v2167_v44 = vpop.f32.mrf.mxu1 }
 0x2cf   :  { %v2265_v35 = vrot.slane %v2167_v44, 7  ;;  %v2280_v52 = vadd.f32 %v2264_v36, %v5246_v6  ;;  %v2263_v59 = vrot.slane %v2126_v42, 7  ;;  %v2278_v60 = vadd.f32 %v2262_v51, %v5249_v4 }
 0x2d0   :  { %v2128_v38 = vpop.f32.mrf.mxu0  ;;  %v2169_v49 = vpop.f32.mrf.mxu1 }
 0x2d1   :  { %v2281_v61 = vadd.f32 %v2265_v35, %v5252_v19  ;;  %v2294_v29 = vmul.f32 0.5, %v2280_v52  ;;  %v2279_v28 = vadd.f32 %v2263_v59, %v7225_v17  ;;  %v2286_v27 = vmul.f32 0.5, %v2278_v60 }
 0x2d2   :  { %v2129_v37 = vpop.f32.mrf.mxu0  ;;  %v2170_v50 = vpop.f32.mrf.mxu1 }
 0x2d3   :  { %v2295_v26 = vmul.f32 0.5, %v2281_v61  ;;  %4418 = vtanh.f32 %v2294_v29  ;;  %v2287_v38 = vmul.f32 0.5, %v2279_v28 }
 0x2d4   :  { %4420 = vtanh.f32 %v2286_v27 }
 0x2d5   :  { %4422 = vtanh.f32 %v2295_v26 }
 0x2d6   :  { %4424 = vtanh.f32 %v2287_v38 }
 0x2e0   :  { %v4419_v27 = vpop.eup %4418 }
 0x2e1   :  { %v4421_v60 = vpop.eup %4420 }
 0x2e2   :  { %v4423_v38 = vpop.eup %4422 }
 0x30c   :  { %v2206_v37 = vpop.f32.mrf.mxu0  ;;  %v2247_v43 = vpop.f32.mrf.mxu1 }
 0x30d   :  { %v2266_v57 = vrot.slane %v2206_v37, 7  ;;  %v2268_v49 = vrot.slane %v2247_v43, 7  ;;  %v2298_v37 = vmul.f32 0.5, %v4419_v27 }
 0x30e   :  { %v2208_v44 = vpop.f32.mrf.mxu0  ;;  %v2249_v36 = vpop.f32.mrf.mxu1 }
 0x30f   :  { %v2282_v42 = vadd.f32 %v2266_v57, %v5265_v0  ;;  %v2267_v50 = vrot.slane %v2208_v44, 7  ;;  %v2269_v59 = vrot.slane %v2249_v36, 7  ;;  %v2284_v26 = vadd.f32 %v2268_v49, %v5270_v2  ;;  %v4425_v57 = vpop.eup %4424 }
 0x310   :  { %v2210_v35 = vpop.f32.mrf.mxu0  ;;  %v2251_v51 = vpop.f32.mrf.mxu1  ;;  %v2290_v44 = vmul.f32 0.5, %v4421_v60  ;;  %v2299_v36 = vmul.f32 0.5, %v4423_v38  ;;  %v2291_v49 = vmul.f32 0.5, %v4425_v57 }
 0x311   :  { %4426 = vtanh.f32 %v2282_v42  ;;  %v2283_v52 = vadd.f32 %v2267_v50, %v5267_v10  ;;  %v2285_v61 = vadd.f32 %v2269_v59, %v5273_v14  ;;  %v2304_v43 = vmul.f32 0.5, %v2284_v26 }
 0x312   :  { %v2211_v29 = vpop.f32.mrf.mxu0  ;;  %v2252_v28 = vpop.f32.mrf.mxu1  ;;  %v2300_v50 = vadd.f32 0.5, %v2298_v37  ;;  %v2292_v35 = vadd.f32 0.5, %v2290_v44  ;;  %v7226_v51 = vsel %vm5287_vm1, %v5292_v30, %v5281_v11  ;;  %v2331_v59 = vstv %s2330_s30 }
 0x313   :  { %4428 = vtanh.f32 %v2283_v52  ;;  %v2305_v42 = vmul.f32 0.5, %v2285_v61  ;;  %v5482_v52 = vrot.slane %v7226_v51, 7  ;;  %v2301_v28 = vadd.f32 0.5, %v2299_v36  ;;  %v7227_v61 = vld [vmem:[#allocation77_spill] sm:$0xff] }
 0x314   :  { %4430 = vtanh.f32 %v2304_v43  ;;  %v2293_v60 = vadd.f32 0.5, %v2291_v49  ;;  %v7228_v38 = vsel %vm5287_vm1, %v5295_v48, %v7227_v61  ;;  %vm5492_vm2 = vcmp.eq.s32.totalorder %v2331_v59, 1  ;;  %v7246_v36 = vld [vmem:[#allocation105_spill] sm:$0xff]  ;;  %v7351_v43 = vld [vmem:[#allocation116_spill] sm:$0xff] }
 0x315   :  { %4432 = vtanh.f32 %v2305_v42  ;;  %v2318_v26 = vmul.f32 %v5482_v52, %v2300_v50  ;;  %v5490_v37 = vrot.slane %v7228_v38, 7  ;;  %v2334_v61 = vrot.slane %v5317_v16, 7 }
 0x317   :  { %v2319_v57 = vmul.f32 %v5490_v37, %v2301_v28 }
 0x31e   :  { %v4427_v29 = vpop.eup %4426 }
 0x31f   :  { %v2320_v27 = vmul.f32 %v4427_v29, %v2292_v35  ;;  %v2333_v29 = vrot.slane %v5312_v25, 7 }
 0x320   :  { %v4429_v11 = vpop.eup %4428 }
 0x321   :  { %v5496_v30 = vadd.f32 %v2320_v27, %v2318_v26  ;;  %v2321_v44 = vmul.f32 %v4429_v11, %v2293_v60  ;;  %v4431_v42 = vpop.eup %4430 }
 0x322   :  { %v4433_v50 = vpop.eup %4432  ;;  %v2308_v49 = vmul.f32 0.5, %v4431_v42 }
 0x323   :  { %4434 = vtanh.f32 %v5496_v30  ;;  %v5504_v48 = vadd.f32 %v2321_v44, %v2319_v57  ;;  %v2309_v35 = vmul.f32 0.5, %v4433_v50 }
 0x324   :  { %v2310_v51 = vadd.f32 0.5, %v2308_v49 }
 0x325   :  { %4436 = vtanh.f32 %v5504_v48  ;;  %v2311_v26 = vadd.f32 0.5, %v2309_v35 }
 0x330   :  { %v4435_v59 = vpop.eup %4434 }
 0x331   :  { %v2326_v28 = vmul.f32 %v4435_v59, %v2310_v51  ;;  %v7231_v51 = vld [vmem:[#allocation90_spill] sm:$0xff]  ;;  %v7232_v59 = vld [vmem:[#allocation91_spill] sm:$0xff] }
 0x332   :  { %v4437_v27 = vpop.eup %4436 }
 0x333   :  { %v5514_v60 = vsel %vm5492_vm2, %v2326_v28, %v2333_v29  ;;  %v2327_v38 = vmul.f32 %v4437_v27, %v2311_v26  ;;  %v7233_v29 = vld [vmem:[#allocation92_spill] sm:$0xff]  ;;  %v7234_v28 = vld [vmem:[#allocation93_spill] sm:$0xff]  ;;  %v7235_v26 = vld [vmem:[#allocation94_spill] sm:$0xff] }
 0x334   :  { %v2363_v57 = vpack.c.bf16 %v5514_v60, %v5514_v60  ;;  %v7236_v27 = vld [vmem:[#allocation95_spill] sm:$0xff] }
 0x335   :  { %v5519_v11 = vsel %vm5492_vm2, %v2327_v38, %v2334_v61  ;;  %v7237_v61 = vld [vmem:[#allocation96_spill] sm:$0xff]  ;;  %v7238_v38 = vld [vmem:[#allocation97_spill] sm:$0xff] }
 0x336   :  { %v2364_v25 = vpack.c.bf16 %v5519_v11, %v5519_v11  ;;  %v2343_v44 = vcombine.low %v5514_v60, %v5519_v11  ;;  %v5528_v49 = vshrl.u32 %v2363_v57, 16  ;;  %v7239_v57 = vld [vmem:[#allocation98_spill] sm:$0xff] }
 0x338   :  { %v2369_v42 = vshrl.u32 %v2364_v25, 16  ;;  %v2350_v50 = vrot.slane %v2343_v44, %v5307_v8  ;;  %v7240_v25 = vld [vmem:[#allocation99_spill] sm:$0xff]  ;;  %v7241_v44 = vld [vmem:[#allocation100_spill] sm:$0xff] }
 0x33a   :  { %2405 = vmatprep.mubr.bf16.mxu0 %v2369_v42  ;;  %2446 = vmatprep.mubr.bf16.mxu1 %v2369_v42  ;;  %v2351_v16 = vcombine.high %v2350_v50, %v2350_v50  ;;  %v7243_v50 = vld [vmem:[#allocation102_spill] sm:$0xff] }
 0x33b   :  { %2406 = vmatmul.mubr.bf16.vlgmr.msra.gmra.mxu0 %v5528_v49  ;;  %2447 = vmatmul.mubr.bf16.vlgmr.msra.gmra.mxu1 %v5528_v49 }
 0x33c   :  { %v2358_v35 = vrot.slane %v2351_v16, %v5307_v8  ;;  %2456 = vmatpush1.bf16.msra.mxu0 %v7131_v33  ;;  %2497 = vmatpush1.bf16.msra.mxu1 %v7132_v12  ;;  %v7244_v16 = vld [vmem:[#allocation103_spill] sm:$0xff] }
 0x33d   :  { %2487 = vmatprep.mubr.bf16.mxu0 %v2369_v42  ;;  %2528 = vmatprep.mubr.bf16.mxu1 %v2369_v42  ;;  %v7242_v42 = vld [vmem:[#allocation101_spill] sm:$0xff] }
 0x33e   :  { %4376 = vst.msk [vmem:[%s6673_s7 + $0x1] ss:$8 sm:$0x3] %vm4721_vm0, %v2358_v35  ;;  %2457 = vmatprep.subr.bf16.mxu0 %v7133_v63  ;;  %2498 = vmatprep.subr.bf16.mxu1 %v7231_v51  ;;  %v7245_v35 = vld [vmem:[#allocation104_spill] sm:$0xff] }
 0x340   :  { %2458 = vmatpush1.bf16.msra.mxu0 %v7232_v59  ;;  %2499 = vmatpush1.bf16.msra.mxu1 %v7233_v29 }
 0x341   :  { %2459 = vmatprep.subr.bf16.mxu0 %v7234_v28  ;;  %2500 = vmatprep.subr.bf16.mxu1 %v7235_v26 }
 0x344   :  { %2460 = vmatpush1.bf16.msra.mxu0 %v7236_v27  ;;  %2501 = vmatpush1.bf16.msra.mxu1 %v7237_v61  ;;  %v7248_v61 = vld [vmem:[#allocation107_spill] sm:$0xff] }
 0x345   :  { %2461 = vmatprep.subr.bf16.mxu0 %v7238_v38  ;;  %2502 = vmatprep.subr.bf16.mxu1 %v7239_v57  ;;  %v7249_v38 = vld [vmem:[#allocation108_spill] sm:$0xff]  ;;  %v7250_v57 = vld [vmem:[#allocation109_spill] sm:$0xff] }
 0x348   :  { %2462 = vmatpush1.bf16.msra.mxu0 %v7240_v25  ;;  %2503 = vmatpush1.bf16.msra.mxu1 %v7241_v44  ;;  %v7251_v25 = vld [vmem:[#allocation110_spill] sm:$0xff]  ;;  %v7252_v44 = vld [vmem:[#allocation111_spill] sm:$0xff] }
 0x349   :  { %2463 = vmatprep.subr.bf16.mxu0 %v7242_v42  ;;  %2504 = vmatprep.subr.bf16.mxu1 %v7243_v50  ;;  %v7253_v42 = vld [vmem:[#allocation112_spill] sm:$0xff]  ;;  %v7254_v50 = vld [vmem:[#allocation113_spill] sm:$0xff] }
 0x34c   :  { %2464 = vmatpush1.bf16.msra.mxu0 %v7244_v16  ;;  %2505 = vmatpush1.bf16.msra.mxu1 %v7245_v35  ;;  %v7255_v16 = vld [vmem:[#allocation114_spill] sm:$0xff]  ;;  %v7256_v35 = vld [vmem:[#allocation115_spill] sm:$0xff] }
 0x34d   :  { %2465 = vmatprep.subr.bf16.mxu0 %v7246_v36  ;;  %2506 = vmatprep.subr.bf16.mxu1 %v7247_v32  ;;  %v7257_v36 = vld [vmem:[#allocation116_spill] sm:$0xff]  ;;  %v7258_v32 = vld [vmem:[#allocation117_spill] sm:$0xff] }
 0x350   :  { %2466 = vmatpush1.bf16.msra.mxu0 %v7248_v61  ;;  %2507 = vmatpush1.bf16.msra.mxu1 %v7249_v38  ;;  %v7259_v61 = vld [vmem:[#allocation118_spill] sm:$0xff]  ;;  %v7260_v38 = vld [vmem:[#allocation119_spill] sm:$0xff] }
 0x351   :  { %2467 = vmatprep.subr.bf16.mxu0 %v7250_v57  ;;  %2508 = vmatprep.subr.bf16.mxu1 %v7251_v25  ;;  %v7261_v57 = vld [vmem:[#allocation120_spill] sm:$0xff]  ;;  %v7262_v25 = vld [vmem:[#allocation121_spill] sm:$0xff] }
 0x354   :  { %2468 = vmatpush1.bf16.msra.mxu0 %v7252_v44  ;;  %2509 = vmatpush1.bf16.msra.mxu1 %v7253_v42  ;;  %v7263_v44 = vld [vmem:[#allocation122_spill] sm:$0xff]  ;;  %v7264_v42 = vld [vmem:[#allocation123_spill] sm:$0xff] }
 0x355   :  { %2469 = vmatprep.subr.bf16.mxu0 %v7254_v50  ;;  %2510 = vmatprep.subr.bf16.mxu1 %v7255_v16 }
 0x358   :  { %2470 = vmatpush1.bf16.msra.mxu0 %v7256_v35  ;;  %2511 = vmatpush1.bf16.msra.mxu1 %v7257_v36  ;;  %v7265_v36 = vld [vmem:[#allocation127_spill] sm:$0xff] }
 0x359   :  { %2471 = vmatprep.subr.bf16.mxu0 %v7258_v32  ;;  %2512 = vmatprep.subr.bf16.mxu1 %v7259_v61 }
 0x35c   :  { %2472 = vmatpush2.bf16.msra.mxu0 %v7260_v38  ;;  %2513 = vmatpush2.bf16.msra.mxu1 %v7261_v57 }
 0x35d   :  { %2473 = vmatprep.subr.bf16.mxu0 %v7262_v25  ;;  %2514 = vmatprep.subr.bf16.mxu1 %v7263_v44 }
 0x360   :  { %2474 = vmatpush2.bf16.msra.mxu0 %v7264_v42  ;;  %2515 = vmatpush2.bf16.msra.mxu1 %v7168_v34 }
 0x361   :  { %2475 = vmatprep.subr.bf16.mxu0 %v7169_v7  ;;  %2516 = vmatprep.subr.bf16.mxu1 %v7170_v39 }
 0x364   :  { %2476 = vmatpush2.bf16.msra.mxu0 %v7265_v36  ;;  %2517 = vmatpush2.bf16.msra.mxu1 %v7172_v31 }
 0x365   :  { %2477 = vmatprep.subr.bf16.mxu0 %v7173_v47  ;;  %2518 = vmatprep.subr.bf16.mxu1 %v7174_v5 }
 0x368   :  { %2478 = vmatpush2.bf16.msra.mxu0 %v7175_v62  ;;  %2519 = vmatpush2.bf16.msra.mxu1 %v7176_v46 }
 0x369   :  { %2479 = vmatprep.subr.bf16.mxu0 %v7177_v55  ;;  %2520 = vmatprep.subr.bf16.mxu1 %v7178_v24 }
 0x36c   :  { %2480 = vmatpush2.bf16.msra.mxu0 %v5112_v18  ;;  %2521 = vmatpush2.bf16.msra.mxu1 %v5116_v56 }
 0x36d   :  { %2481 = vmatprep.subr.bf16.mxu0 %v5118_v9  ;;  %2522 = vmatprep.subr.bf16.mxu1 %v7179_v45 }
 0x370   :  { %2482 = vmatpush2.bf16.msra.mxu0 %v5124_v40  ;;  %2523 = vmatpush2.bf16.msra.mxu1 %v5128_v15 }
 0x371   :  { %2483 = vmatprep.subr.bf16.mxu0 %v5130_v3  ;;  %2524 = vmatprep.subr.bf16.mxu1 %v5133_v1  ;;  %v7266_v1 = vld [vmem:[#allocation21_spill] sm:$0xff]  ;;  %v7275_v3 = vld [vmem:[#allocation30_spill] sm:$0xff] }
 0x374   :  { %2484 = vmatpush2.bf16.msra.mxu0 %v5136_v23  ;;  %2525 = vmatpush2.bf16.msra.mxu1 %v5140_v22  ;;  %v7267_v23 = vld [vmem:[#allocation22_spill] sm:$0xff]  ;;  %v7268_v22 = vld [vmem:[#allocation23_spill] sm:$0xff] }
 0x375   :  { %2485 = vmatprep.subr.bf16.mxu0 %v5142_v41  ;;  %2526 = vmatprep.subr.bf16.mxu1 %v5145_v53  ;;  %v7269_v41 = vld [vmem:[#allocation24_spill] sm:$0xff]  ;;  %v7270_v53 = vld [vmem:[#allocation25_spill] sm:$0xff] }
 0x378   :  { %2486 = vmatpush2.bf16.msra.mxu0 %v5148_v58  ;;  %2527 = vmatpush2.bf16.msra.mxu1 %v5152_v54  ;;  %v7271_v58 = vld [vmem:[#allocation26_spill] sm:$0xff]  ;;  %v7272_v54 = vld [vmem:[#allocation27_spill] sm:$0xff] }
 0x379   :  { %2654 = vmatprep.subr.bf16.mxu0 %v4746_v20  ;;  %2695 = vmatprep.subr.bf16.mxu1 %v4748_v21  ;;  %v7273_v20 = vld [vmem:[#allocation28_spill] sm:$0xff]  ;;  %v7274_v21 = vld [vmem:[#allocation29_spill] sm:$0xff] }
 0x37b   :  { %2488 = vmatmul.mubr.bf16.vlgmr.msra.gmra.mxu0 %v5528_v49  ;;  %2529 = vmatmul.mubr.bf16.vlgmr.msra.gmra.mxu1 %v5528_v49  ;;  %v7276_v49 = vld [vmem:[#allocation31_spill] sm:$0xff] }
 0x37c   :  { %2655 = vmatpush1.bf16.msra.mxu0 %v7266_v1  ;;  %2696 = vmatpush1.bf16.msra.mxu1 %v7267_v23  ;;  %v7277_v1 = vld [vmem:[#allocation32_spill] sm:$0xff]  ;;  %v7278_v23 = vld [vmem:[#allocation33_spill] sm:$0xff] }
 0x37d   :  { %2656 = vmatprep.subr.bf16.mxu0 %v7268_v22  ;;  %2697 = vmatprep.subr.bf16.mxu1 %v7269_v41  ;;  %v7279_v22 = vld [vmem:[#allocation34_spill] sm:$0xff]  ;;  %v7280_v41 = vld [vmem:[#allocation35_spill] sm:$0xff] }
 0x380   :  { %2657 = vmatpush1.bf16.msra.mxu0 %v7270_v53  ;;  %2698 = vmatpush1.bf16.msra.mxu1 %v7271_v58  ;;  %v7281_v53 = vld [vmem:[#allocation36_spill] sm:$0xff]  ;;  %v7282_v58 = vld [vmem:[#allocation37_spill] sm:$0xff] }
 0x381   :  { %2658 = vmatprep.subr.bf16.mxu0 %v7272_v54  ;;  %2699 = vmatprep.subr.bf16.mxu1 %v7273_v20  ;;  %v7283_v54 = vld [vmem:[#allocation38_spill] sm:$0xff]  ;;  %v7284_v20 = vld [vmem:[#allocation39_spill] sm:$0xff] }
 0x384   :  { %2659 = vmatpush1.bf16.msra.mxu0 %v7274_v21  ;;  %2700 = vmatpush1.bf16.msra.mxu1 %v7275_v3  ;;  %v7285_v21 = vld [vmem:[#allocation40_spill] sm:$0xff]  ;;  %v7286_v3 = vld [vmem:[#allocation41_spill] sm:$0xff] }
 0x385   :  { %2660 = vmatprep.subr.bf16.mxu0 %v7276_v49  ;;  %2701 = vmatprep.subr.bf16.mxu1 %v7277_v1  ;;  %v7287_v49 = vld [vmem:[#allocation42_spill] sm:$0xff]  ;;  %v7288_v1 = vld [vmem:[#allocation43_spill] sm:$0xff] }
 0x388   :  { %2661 = vmatpush1.bf16.msra.mxu0 %v7278_v23  ;;  %2702 = vmatpush1.bf16.msra.mxu1 %v7279_v22  ;;  %v7289_v23 = vld [vmem:[#allocation44_spill] sm:$0xff]  ;;  %v7290_v22 = vld [vmem:[#allocation45_spill] sm:$0xff] }
 0x389   :  { %2662 = vmatprep.subr.bf16.mxu0 %v7280_v41  ;;  %2703 = vmatprep.subr.bf16.mxu1 %v7281_v53  ;;  %v7291_v41 = vld [vmem:[#allocation46_spill] sm:$0xff]  ;;  %v7292_v53 = vld [vmem:[#allocation47_spill] sm:$0xff] }
 0x38c   :  { %2663 = vmatpush1.bf16.msra.mxu0 %v7282_v58  ;;  %2704 = vmatpush1.bf16.msra.mxu1 %v7283_v54  ;;  %v7293_v58 = vld [vmem:[#allocation48_spill] sm:$0xff]  ;;  %v7294_v54 = vld [vmem:[#allocation49_spill] sm:$0xff] }
 0x38d   :  { %2664 = vmatprep.subr.bf16.mxu0 %v7284_v20  ;;  %2705 = vmatprep.subr.bf16.mxu1 %v7285_v21  ;;  %v7295_v20 = vld [vmem:[#allocation50_spill] sm:$0xff]  ;;  %v7296_v21 = vld [vmem:[#allocation51_spill] sm:$0xff] }
 0x390   :  { %2665 = vmatpush1.bf16.msra.mxu0 %v7286_v3  ;;  %2706 = vmatpush1.bf16.msra.mxu1 %v7287_v49  ;;  %v7297_v3 = vld [vmem:[#allocation52_spill] sm:$0xff]  ;;  %v7298_v49 = vld [vmem:[#allocation53_spill] sm:$0xff] }
 0x391   :  { %2666 = vmatprep.subr.bf16.mxu0 %v7288_v1  ;;  %2707 = vmatprep.subr.bf16.mxu1 %v7289_v23  ;;  %v7299_v1 = vld [vmem:[#allocation54_spill] sm:$0xff]  ;;  %v7300_v23 = vld [vmem:[#allocation55_spill] sm:$0xff] }
 0x394   :  { %2667 = vmatpush1.bf16.msra.mxu0 %v7290_v22  ;;  %2708 = vmatpush1.bf16.msra.mxu1 %v7291_v41  ;;  %v7301_v22 = vld [vmem:[#allocation56_spill] sm:$0xff]  ;;  %v7302_v41 = vld [vmem:[#allocation57_spill] sm:$0xff] }
 0x395   :  { %2668 = vmatprep.subr.bf16.mxu0 %v7292_v53  ;;  %2709 = vmatprep.subr.bf16.mxu1 %v7293_v58  ;;  %v7303_v53 = vld [vmem:[#allocation58_spill] sm:$0xff]  ;;  %v7304_v58 = vld [vmem:[#allocation59_spill] sm:$0xff] }
 0x398   :  { %2669 = vmatpush1.bf16.msra.mxu0 %v7294_v54  ;;  %2710 = vmatpush1.bf16.msra.mxu1 %v7295_v20  ;;  %v7305_v54 = vld [vmem:[#allocation60_spill] sm:$0xff]  ;;  %v7306_v20 = vld [vmem:[#allocation61_spill] sm:$0xff] }
 0x399   :  { %2670 = vmatprep.subr.bf16.mxu0 %v7296_v21  ;;  %2711 = vmatprep.subr.bf16.mxu1 %v7297_v3  ;;  %v7307_v21 = vld [vmem:[#allocation62_spill] sm:$0xff]  ;;  %v7308_v3 = vld [vmem:[#allocation63_spill] sm:$0xff] }
 0x39c   :  { %2671 = vmatpush2.bf16.msra.mxu0 %v7298_v49  ;;  %2712 = vmatpush2.bf16.msra.mxu1 %v7299_v1  ;;  %v7309_v49 = vld [vmem:[#allocation64_spill] sm:$0xff]  ;;  %v7310_v1 = vld [vmem:[#allocation65_spill] sm:$0xff] }
 0x39d   :  { %2672 = vmatprep.subr.bf16.mxu0 %v7300_v23  ;;  %2713 = vmatprep.subr.bf16.mxu1 %v7301_v22  ;;  %v7311_v23 = vld [vmem:[#allocation66_spill] sm:$0xff]  ;;  %v7312_v22 = vld [vmem:[#allocation67_spill] sm:$0xff] }
 0x3a0   :  { %2673 = vmatpush2.bf16.msra.mxu0 %v7302_v41  ;;  %2714 = vmatpush2.bf16.msra.mxu1 %v7303_v53  ;;  %v7313_v41 = vld [vmem:[#allocation68_spill] sm:$0xff]  ;;  %v7314_v53 = vld [vmem:[#allocation69_spill] sm:$0xff] }
 0x3a1   :  { %2674 = vmatprep.subr.bf16.mxu0 %v7304_v58  ;;  %2715 = vmatprep.subr.bf16.mxu1 %v7305_v54  ;;  %v7315_v58 = vld [vmem:[#allocation70_spill] sm:$0xff]  ;;  %v7316_v54 = vld [vmem:[#allocation71_spill] sm:$0xff] }
 0x3a4   :  { %2675 = vmatpush2.bf16.msra.mxu0 %v7306_v20  ;;  %2716 = vmatpush2.bf16.msra.mxu1 %v7307_v21  ;;  %v7317_v20 = vld [vmem:[#allocation72_spill] sm:$0xff]  ;;  %v7318_v21 = vld [vmem:[#allocation73_spill] sm:$0xff] }
 0x3a5   :  { %2676 = vmatprep.subr.bf16.mxu0 %v7308_v3  ;;  %2717 = vmatprep.subr.bf16.mxu1 %v7309_v49  ;;  %v7319_v3 = vld [vmem:[#allocation74_spill] sm:$0xff]  ;;  %v7320_v49 = vld [vmem:[#allocation75_spill] sm:$0xff] }
 0x3a8   :  { %2677 = vmatpush2.bf16.msra.mxu0 %v7310_v1  ;;  %2718 = vmatpush2.bf16.msra.mxu1 %v7311_v23  ;;  %v7321_v1 = vld [vmem:[#allocation76_spill] sm:$0xff]  ;;  %v7322_v23 = vld [vmem:[#allocation78_spill] sm:$0xff] }
 0x3a9   :  { %2678 = vmatprep.subr.bf16.mxu0 %v7312_v22  ;;  %2719 = vmatprep.subr.bf16.mxu1 %v7313_v41  ;;  %v7323_v22 = vld [vmem:[#allocation79_spill] sm:$0xff]  ;;  %v7324_v41 = vld [vmem:[#allocation80_spill] sm:$0xff] }
 0x3ac   :  { %2679 = vmatpush2.bf16.msra.mxu0 %v7314_v53  ;;  %2720 = vmatpush2.bf16.msra.mxu1 %v7315_v58  ;;  %v7325_v53 = vld [vmem:[#allocation81_spill] sm:$0xff]  ;;  %v7326_v58 = vld [vmem:[#allocation83_spill] sm:$0xff] }
 0x3ad   :  { %2680 = vmatprep.subr.bf16.mxu0 %v7316_v54  ;;  %2721 = vmatprep.subr.bf16.mxu1 %v7317_v20  ;;  %v7327_v54 = vld [vmem:[#allocation84_spill] sm:$0xff]  ;;  %v7328_v20 = vld [vmem:[#allocation85_spill] sm:$0xff] }
 0x3b0   :  { %2681 = vmatpush2.bf16.msra.mxu0 %v7318_v21  ;;  %2722 = vmatpush2.bf16.msra.mxu1 %v7319_v3  ;;  %v7329_v21 = vld [vmem:[#allocation86_spill] sm:$0xff] }
 0x3b1   :  { %2682 = vmatprep.subr.bf16.mxu0 %v7320_v49  ;;  %2723 = vmatprep.subr.bf16.mxu1 %v7321_v1 }
 0x3b4   :  { %2683 = vmatpush2.bf16.msra.mxu0 %v7322_v23  ;;  %2724 = vmatpush2.bf16.msra.mxu1 %v7323_v22 }
 0x3b5   :  { %2684 = vmatprep.subr.bf16.mxu0 %v7324_v41  ;;  %2725 = vmatprep.subr.bf16.mxu1 %v7325_v53 }
 0x3b8   :  { %2685 = vmatpush2.bf16.msra.mxu0 %v7326_v58  ;;  %2726 = vmatpush2.bf16.msra.mxu1 %v7327_v54 }
 0x3b9   :  { %2736 = vmatprep.subr.bf16.mxu0 %v7328_v20  ;;  %2777 = vmatprep.subr.bf16.mxu1 %v7329_v21 }
 0x3fb   :  { %v2407_v3 = vpop.f32.mrf.mxu0  ;;  %v2448_v49 = vpop.f32.mrf.mxu1 }
 0x3fc   :  { %v2547_v9 = vrot.slane %v2448_v49, 6  ;;  %v2545_v41 = vrot.slane %v2407_v3, 6 }
 0x3fd   :  { %v2409_v15 = vpop.f32.mrf.mxu0  ;;  %v2450_v1 = vpop.f32.mrf.mxu1 }
 0x3fe   :  { %v2548_v56 = vrot.slane %v2450_v1, 6  ;;  %v2563_v53 = vadd.f32 %v2547_v9, %v5246_v6  ;;  %v2546_v58 = vrot.slane %v2409_v15, 6  ;;  %v2561_v54 = vadd.f32 %v2545_v41, %v5249_v4 }
 0x3ff   :  { %v2411_v40 = vpop.f32.mrf.mxu0  ;;  %v2452_v23 = vpop.f32.mrf.mxu1 }
 0x400   :  { %v2564_v20 = vadd.f32 %v2548_v56, %v5252_v19  ;;  %v2577_v18 = vmul.f32 0.5, %v2563_v53  ;;  %v2562_v21 = vadd.f32 %v2546_v58, %v7225_v17  ;;  %v2569_v24 = vmul.f32 0.5, %v2561_v54 }
 0x401   :  { %v2412_v45 = vpop.f32.mrf.mxu0  ;;  %v2453_v22 = vpop.f32.mrf.mxu1 }
 0x402   :  { %v2578_v55 = vmul.f32 0.5, %v2564_v20  ;;  %4438 = vtanh.f32 %v2577_v18  ;;  %v2570_v40 = vmul.f32 0.5, %v2562_v21 }
 0x403   :  { %4440 = vtanh.f32 %v2569_v24 }
 0x404   :  { %4442 = vtanh.f32 %v2578_v55 }
 0x405   :  { %4444 = vtanh.f32 %v2570_v40 }
 0x40f   :  { %v4439_v24 = vpop.eup %4438 }
 0x410   :  { %v4441_v55 = vpop.eup %4440 }
 0x411   :  { %v4443_v40 = vpop.eup %4442 }
 0x43b   :  { %v2489_v23 = vpop.f32.mrf.mxu0  ;;  %v2530_v3 = vpop.f32.mrf.mxu1 }
 0x43c   :  { %v2549_v1 = vrot.slane %v2489_v23, 6  ;;  %v2551_v41 = vrot.slane %v2530_v3, 6  ;;  %v2581_v23 = vmul.f32 0.5, %v4439_v24 }
 0x43d   :  { %v2491_v22 = vpop.f32.mrf.mxu0  ;;  %v2532_v9 = vpop.f32.mrf.mxu1 }
 0x43e   :  { %v2565_v15 = vadd.f32 %v2549_v1, %v5265_v0  ;;  %v2550_v45 = vrot.slane %v2491_v22, 6  ;;  %v2552_v20 = vrot.slane %v2532_v9, 6  ;;  %v2567_v54 = vadd.f32 %v2551_v41, %v5270_v2  ;;  %v4445_v1 = vpop.eup %4444 }
 0x43f   :  { %v2493_v56 = vpop.f32.mrf.mxu0  ;;  %v2534_v53 = vpop.f32.mrf.mxu1  ;;  %v2573_v22 = vmul.f32 0.5, %v4441_v55  ;;  %v2582_v9 = vmul.f32 0.5, %v4443_v40  ;;  %v2574_v41 = vmul.f32 0.5, %v4445_v1 }
 0x440   :  { %4446 = vtanh.f32 %v2565_v15  ;;  %v2566_v58 = vadd.f32 %v2550_v45, %v5267_v10  ;;  %v2568_v49 = vadd.f32 %v2552_v20, %v5273_v14  ;;  %v2587_v3 = vmul.f32 0.5, %v2567_v54 }
 0x441   :  { %v2494_v18 = vpop.f32.mrf.mxu0  ;;  %v2535_v21 = vpop.f32.mrf.mxu1  ;;  %v2583_v45 = vadd.f32 0.5, %v2581_v23  ;;  %v2575_v56 = vadd.f32 0.5, %v2573_v22  ;;  %v7330_v53 = vsel %vm5492_vm2, %v5496_v30, %v5482_v52  ;;  %v2614_v20 = vstv %s2613_s14  ;;  %v7455_v23 = vld [vmem:[#allocation132_spill] sm:$0xff]  ;;  %s4598_s14 = scalar_lea.vmem %s4101_s13, 32 }
 0x442   :  { %4448 = vtanh.f32 %v2566_v58  ;;  %v2588_v15 = vmul.f32 0.5, %v2568_v49  ;;  %v5684_v58 = vrot.slane %v7330_v53, 7  ;;  %v2584_v21 = vadd.f32 0.5, %v2582_v9  ;;  %p4599_p4 = scmp.ne.s32.totalorder %s4101_s13, %s4598_s14  ;;  %p4604_p6 = scmp.lt.s32.totalorder %s4598_s14, %s4598_s14 }
 0x443   :  { %4450 = vtanh.f32 %v2587_v3  ;;  %v2576_v55 = vadd.f32 0.5, %v2574_v41  ;;  %v7331_v49 = vsel %vm5492_vm2, %v5504_v48, %v5490_v37  ;;  %vm5694_vm3 = vcmp.eq.s32.totalorder %v2614_v20, 1  ;;  %v7350_v48 = vld [vmem:[#allocation112_spill] sm:$0xff] }
 0x444   :  { %4452 = vtanh.f32 %v2588_v15  ;;  %v2601_v54 = vmul.f32 %v5684_v58, %v2583_v45  ;;  %v5692_v40 = vrot.slane %v7331_v49, 7  ;;  %v2616_v53 = vrot.slane %v5514_v60, 7  ;;  %p4605_p7 = por %p4604_p6, %p4603_p5 }
 0x446   :  { %v2602_v3 = vmul.f32 %v5692_v40, %v2584_v21  ;;  %p4606_p8 = pnand %p4605_p7, %p4599_p4 }
 0x44d   :  { %v4447_v18 = vpop.eup %4446 }
 0x44e   :  { %v2603_v24 = vmul.f32 %v4447_v18, %v2575_v56 }
 0x44f   :  { %v4449_v52 = vpop.eup %4448 }
 0x450   :  { %v5698_v30 = vadd.f32 %v2603_v24, %v2601_v54  ;;  %v2604_v1 = vmul.f32 %v4449_v52, %v2576_v55  ;;  %v4451_v22 = vpop.eup %4450  ;;  %v2617_v24 = vrot.slane %v5519_v11, 7 }
 0x451   :  { %v4453_v9 = vpop.eup %4452  ;;  %v2591_v15 = vmul.f32 0.5, %v4451_v22 }
 0x452   :  { %4454 = vtanh.f32 %v5698_v30  ;;  %v5706_v37 = vadd.f32 %v2604_v1, %v2602_v3  ;;  %v2592_v45 = vmul.f32 0.5, %v4453_v9 }
 0x453   :  { %v2593_v41 = vadd.f32 0.5, %v2591_v15 }
 0x454   :  { %4456 = vtanh.f32 %v5706_v37  ;;  %v2594_v18 = vadd.f32 0.5, %v2592_v45  ;;  %v7334_v45 = vld [vmem:[#allocation96_spill] sm:$0xff] }
 0x45f   :  { %v4455_v56 = vpop.eup %4454 }
 0x460   :  { %v2609_v20 = vmul.f32 %v4455_v56, %v2593_v41  ;;  %v7335_v41 = vld [vmem:[#allocation97_spill] sm:$0xff]  ;;  %v7336_v56 = vld [vmem:[#allocation98_spill] sm:$0xff] }
 0x461   :  { %v4457_v21 = vpop.eup %4456 }
 0x462   :  { %v5716_v54 = vsel %vm5694_vm3, %v2609_v20, %v2616_v53  ;;  %v2610_v55 = vmul.f32 %v4457_v21, %v2594_v18  ;;  %v7337_v53 = vld [vmem:[#allocation99_spill] sm:$0xff]  ;;  %v7338_v20 = vld [vmem:[#allocation100_spill] sm:$0xff]  ;;  %v7339_v18 = vld [vmem:[#allocation101_spill] sm:$0xff] }
 0x463   :  { %v2646_v52 = vpack.c.bf16 %v5716_v54, %v5716_v54  ;;  %v7340_v21 = vld [vmem:[#allocation102_spill] sm:$0xff] }
 0x464   :  { %v5721_v49 = vsel %vm5694_vm3, %v2610_v55, %v2617_v24  ;;  %v7341_v24 = vld [vmem:[#allocation103_spill] sm:$0xff]  ;;  %v7342_v55 = vld [vmem:[#allocation104_spill] sm:$0xff] }
 0x465   :  { %v2647_v60 = vpack.c.bf16 %v5721_v49, %v5721_v49  ;;  %v2626_v3 = vcombine.low %v5716_v54, %v5721_v49  ;;  %v5730_v9 = vrot.slane %v2646_v52, 1  ;;  %v7343_v52 = vld [vmem:[#allocation105_spill] sm:$0xff] }
 0x467   :  { %v2651_v1 = vrot.slane %v2647_v60, 1  ;;  %v2633_v22 = vrot.slane %v2626_v3, %v5307_v8  ;;  %v7344_v60 = vld [vmem:[#allocation106_spill] sm:$0xff]  ;;  %v7345_v3 = vld [vmem:[#allocation107_spill] sm:$0xff] }
 0x469   :  { %2686 = vmatprep.mubr.bf16.mxu0 %v2651_v1  ;;  %2727 = vmatprep.mubr.bf16.mxu1 %v2651_v1  ;;  %v2640_v11 = vrot.slane %v2633_v22, %v5307_v8  ;;  %v7347_v22 = vld [vmem:[#allocation109_spill] sm:$0xff] }
 0x46a   :  { %2687 = vmatmul.mubr.bf16.vlgmr.msra.gmra.mxu0 %v5730_v9  ;;  %2728 = vmatmul.mubr.bf16.vlgmr.msra.gmra.mxu1 %v5730_v9 }
 0x46b   :  { %v2641_v15 = vcombine.high %v2640_v11, %v2640_v11  ;;  %2737 = vmatpush1.bf16.msra.mxu0 %v7131_v33  ;;  %2778 = vmatpush1.bf16.msra.mxu1 %v7132_v12  ;;  %v7348_v11 = vld [vmem:[#allocation110_spill] sm:$0xff] }
 0x46c   :  { %2768 = vmatprep.mubr.bf16.mxu0 %v2651_v1  ;;  %2809 = vmatprep.mubr.bf16.mxu1 %v2651_v1  ;;  %v7346_v1 = vld [vmem:[#allocation108_spill] sm:$0xff] }
 0x46d   :  { %4378 = vst.msk [vmem:[%s6673_s7 + $0x2] ss:$8 sm:$0x3] %vm4721_vm0, %v2641_v15  ;;  %2738 = vmatprep.subr.bf16.mxu0 %v7133_v63  ;;  %2779 = vmatprep.subr.bf16.mxu1 %v7231_v51  ;;  %v7349_v15 = vld [vmem:[#allocation111_spill] sm:$0xff] }
 0x46f   :  { %2739 = vmatpush1.bf16.msra.mxu0 %v7232_v59  ;;  %2780 = vmatpush1.bf16.msra.mxu1 %v7233_v29 }
 0x470   :  { %2740 = vmatprep.subr.bf16.mxu0 %v7234_v28  ;;  %2781 = vmatprep.subr.bf16.mxu1 %v7235_v26 }
 0x473   :  { %2741 = vmatpush1.bf16.msra.mxu0 %v7236_v27  ;;  %2782 = vmatpush1.bf16.msra.mxu1 %v7334_v45 }
 0x474   :  { %2742 = vmatprep.subr.bf16.mxu0 %v7335_v41  ;;  %2783 = vmatprep.subr.bf16.mxu1 %v7336_v56 }
 0x477   :  { %2743 = vmatpush1.bf16.msra.mxu0 %v7337_v53  ;;  %2784 = vmatpush1.bf16.msra.mxu1 %v7338_v20 }
 0x478   :  { %2744 = vmatprep.subr.bf16.mxu0 %v7339_v18  ;;  %2785 = vmatprep.subr.bf16.mxu1 %v7340_v21 }
 0x47b   :  { %2745 = vmatpush1.bf16.msra.mxu0 %v7341_v24  ;;  %2786 = vmatpush1.bf16.msra.mxu1 %v7342_v55 }
 0x47c   :  { %2746 = vmatprep.subr.bf16.mxu0 %v7343_v52  ;;  %2787 = vmatprep.subr.bf16.mxu1 %v7344_v60 }
 0x47f   :  { %2747 = vmatpush1.bf16.msra.mxu0 %v7345_v3  ;;  %2788 = vmatpush1.bf16.msra.mxu1 %v7346_v1 }
 0x480   :  { %2748 = vmatprep.subr.bf16.mxu0 %v7347_v22  ;;  %2789 = vmatprep.subr.bf16.mxu1 %v7348_v11 }
 0x483   :  { %2749 = vmatpush1.bf16.msra.mxu0 %v7349_v15  ;;  %2790 = vmatpush1.bf16.msra.mxu1 %v7350_v48 }
 0x484   :  { %2750 = vmatprep.subr.bf16.mxu0 %v7254_v50  ;;  %2791 = vmatprep.subr.bf16.mxu1 %v7255_v16 }
 0x487   :  { %2751 = vmatpush1.bf16.msra.mxu0 %v7256_v35  ;;  %2792 = vmatpush1.bf16.msra.mxu1 %v7351_v43 }
 0x488   :  { %2752 = vmatprep.subr.bf16.mxu0 %v7258_v32  ;;  %2793 = vmatprep.subr.bf16.mxu1 %v7259_v61 }
 0x48b   :  { %2753 = vmatpush2.bf16.msra.mxu0 %v7260_v38  ;;  %2794 = vmatpush2.bf16.msra.mxu1 %v7261_v57 }
 0x48c   :  { %2754 = vmatprep.subr.bf16.mxu0 %v7262_v25  ;;  %2795 = vmatprep.subr.bf16.mxu1 %v7263_v44  ;;  %v7352_v44 = vld [vmem:[#allocation133_spill] sm:$0xff] }
 0x48f   :  { %2755 = vmatpush2.bf16.msra.mxu0 %v7264_v42  ;;  %2796 = vmatpush2.bf16.msra.mxu1 %v7168_v34  ;;  %v7353_v42 = vld [vmem:[#allocation134_spill] sm:$0xff]  ;;  %v7354_v34 = vld [vmem:[#allocation135_spill] sm:$0xff] }
 0x490   :  { %2756 = vmatprep.subr.bf16.mxu0 %v7169_v7  ;;  %2797 = vmatprep.subr.bf16.mxu1 %v7170_v39  ;;  %v7355_v7 = vld [vmem:[#allocation136_spill] sm:$0xff]  ;;  %v7356_v39 = vld [vmem:[#allocation137_spill] sm:$0xff] }
 0x493   :  { %2757 = vmatpush2.bf16.msra.mxu0 %v7265_v36  ;;  %2798 = vmatpush2.bf16.msra.mxu1 %v7172_v31  ;;  %v7357_v36 = vld [vmem:[#allocation138_spill] sm:$0xff]  ;;  %v7358_v31 = vld [vmem:[#allocation139_spill] sm:$0xff] }
 0x494   :  { %2758 = vmatprep.subr.bf16.mxu0 %v7173_v47  ;;  %2799 = vmatprep.subr.bf16.mxu1 %v7174_v5  ;;  %v7359_v47 = vld [vmem:[#allocation140_spill] sm:$0xff]  ;;  %v7360_v5 = vld [vmem:[#allocation141_spill] sm:$0xff] }
 0x497   :  { %2759 = vmatpush2.bf16.msra.mxu0 %v7175_v62  ;;  %2800 = vmatpush2.bf16.msra.mxu1 %v7176_v46  ;;  %v7361_v62 = vld [vmem:[#allocation142_spill] sm:$0xff]  ;;  %v7362_v46 = vld [vmem:[#allocation143_spill] sm:$0xff] }
 0x498   :  { %2760 = vmatprep.subr.bf16.mxu0 %v7352_v44  ;;  %2801 = vmatprep.subr.bf16.mxu1 %v7353_v42  ;;  %v7363_v44 = vld [vmem:[#allocation144_spill] sm:$0xff]  ;;  %v7364_v42 = vld [vmem:[#allocation145_spill] sm:$0xff] }
 0x49b   :  { %2761 = vmatpush2.bf16.msra.mxu0 %v7354_v34  ;;  %2802 = vmatpush2.bf16.msra.mxu1 %v7355_v7  ;;  %v7365_v34 = vld [vmem:[#allocation146_spill] sm:$0xff]  ;;  %v7366_v7 = vld [vmem:[#allocation147_spill] sm:$0xff] }
 0x49c   :  { %2762 = vmatprep.subr.bf16.mxu0 %v7356_v39  ;;  %2803 = vmatprep.subr.bf16.mxu1 %v7357_v36  ;;  %v7367_v39 = vld [vmem:[#allocation148_spill] sm:$0xff]  ;;  %v7368_v36 = vld [vmem:[#allocation18_spill] sm:$0xff] }
 0x49f   :  { %2763 = vmatpush2.bf16.msra.mxu0 %v7358_v31  ;;  %2804 = vmatpush2.bf16.msra.mxu1 %v7359_v47  ;;  %v7369_v31 = vld [vmem:[#allocation19_spill] sm:$0xff] }
 0x4a0   :  { %2764 = vmatprep.subr.bf16.mxu0 %v7360_v5  ;;  %2805 = vmatprep.subr.bf16.mxu1 %v7361_v62  ;;  %v7370_v62 = vld [vmem:[#allocation21_spill] sm:$0xff]  ;;  %v7379_v5 = vld [vmem:[#allocation30_spill] sm:$0xff] }
 0x4a3   :  { %2765 = vmatpush2.bf16.msra.mxu0 %v7362_v46  ;;  %2806 = vmatpush2.bf16.msra.mxu1 %v7363_v44  ;;  %v7371_v46 = vld [vmem:[#allocation22_spill] sm:$0xff]  ;;  %v7372_v44 = vld [vmem:[#allocation23_spill] sm:$0xff] }
 0x4a4   :  { %2766 = vmatprep.subr.bf16.mxu0 %v7364_v42  ;;  %2807 = vmatprep.subr.bf16.mxu1 %v7365_v34  ;;  %v7373_v42 = vld [vmem:[#allocation24_spill] sm:$0xff]  ;;  %v7374_v34 = vld [vmem:[#allocation25_spill] sm:$0xff] }
 0x4a7   :  { %2767 = vmatpush2.bf16.msra.mxu0 %v7366_v7  ;;  %2808 = vmatpush2.bf16.msra.mxu1 %v7367_v39  ;;  %v7375_v7 = vld [vmem:[#allocation26_spill] sm:$0xff]  ;;  %v7376_v39 = vld [vmem:[#allocation27_spill] sm:$0xff] }
 0x4a8   :  { %2940 = vmatprep.subr.bf16.mxu0 %v7368_v36  ;;  %2981 = vmatprep.subr.bf16.mxu1 %v7369_v31  ;;  %v7377_v36 = vld [vmem:[#allocation28_spill] sm:$0xff]  ;;  %v7378_v31 = vld [vmem:[#allocation29_spill] sm:$0xff] }
 0x4aa   :  { %2769 = vmatmul.mubr.bf16.vlgmr.msra.gmra.mxu0 %v5730_v9  ;;  %2810 = vmatmul.mubr.bf16.vlgmr.msra.gmra.mxu1 %v5730_v9  ;;  %v7380_v9 = vld [vmem:[#allocation31_spill] sm:$0xff] }
 0x4ab   :  { %2941 = vmatpush1.bf16.msra.mxu0 %v7370_v62  ;;  %2982 = vmatpush1.bf16.msra.mxu1 %v7371_v46  ;;  %v7381_v62 = vld [vmem:[#allocation32_spill] sm:$0xff]  ;;  %v7382_v46 = vld [vmem:[#allocation33_spill] sm:$0xff] }
 0x4ac   :  { %2942 = vmatprep.subr.bf16.mxu0 %v7372_v44  ;;  %2983 = vmatprep.subr.bf16.mxu1 %v7373_v42  ;;  %v7383_v44 = vld [vmem:[#allocation34_spill] sm:$0xff]  ;;  %v7384_v42 = vld [vmem:[#allocation35_spill] sm:$0xff] }
 0x4af   :  { %2943 = vmatpush1.bf16.msra.mxu0 %v7374_v34  ;;  %2984 = vmatpush1.bf16.msra.mxu1 %v7375_v7  ;;  %v7385_v34 = vld [vmem:[#allocation36_spill] sm:$0xff]  ;;  %v7386_v7 = vld [vmem:[#allocation37_spill] sm:$0xff] }
 0x4b0   :  { %2944 = vmatprep.subr.bf16.mxu0 %v7376_v39  ;;  %2985 = vmatprep.subr.bf16.mxu1 %v7377_v36  ;;  %v7387_v39 = vld [vmem:[#allocation38_spill] sm:$0xff]  ;;  %v7388_v36 = vld [vmem:[#allocation39_spill] sm:$0xff] }
 0x4b3   :  { %2945 = vmatpush1.bf16.msra.mxu0 %v7378_v31  ;;  %2986 = vmatpush1.bf16.msra.mxu1 %v7379_v5  ;;  %v7389_v31 = vld [vmem:[#allocation40_spill] sm:$0xff]  ;;  %v7390_v5 = vld [vmem:[#allocation41_spill] sm:$0xff] }
 0x4b4   :  { %2946 = vmatprep.subr.bf16.mxu0 %v7380_v9  ;;  %2987 = vmatprep.subr.bf16.mxu1 %v7381_v62  ;;  %v7391_v9 = vld [vmem:[#allocation42_spill] sm:$0xff]  ;;  %v7392_v62 = vld [vmem:[#allocation43_spill] sm:$0xff] }
 0x4b7   :  { %2947 = vmatpush1.bf16.msra.mxu0 %v7382_v46  ;;  %2988 = vmatpush1.bf16.msra.mxu1 %v7383_v44  ;;  %v7393_v46 = vld [vmem:[#allocation44_spill] sm:$0xff]  ;;  %v7394_v44 = vld [vmem:[#allocation45_spill] sm:$0xff] }
 0x4b8   :  { %2948 = vmatprep.subr.bf16.mxu0 %v7384_v42  ;;  %2989 = vmatprep.subr.bf16.mxu1 %v7385_v34  ;;  %v7395_v42 = vld [vmem:[#allocation46_spill] sm:$0xff]  ;;  %v7396_v34 = vld [vmem:[#allocation47_spill] sm:$0xff] }
 0x4bb   :  { %2949 = vmatpush1.bf16.msra.mxu0 %v7386_v7  ;;  %2990 = vmatpush1.bf16.msra.mxu1 %v7387_v39  ;;  %v7397_v7 = vld [vmem:[#allocation48_spill] sm:$0xff]  ;;  %v7398_v39 = vld [vmem:[#allocation49_spill] sm:$0xff] }
 0x4bc   :  { %2950 = vmatprep.subr.bf16.mxu0 %v7388_v36  ;;  %2991 = vmatprep.subr.bf16.mxu1 %v7389_v31  ;;  %v7399_v36 = vld [vmem:[#allocation50_spill] sm:$0xff]  ;;  %v7400_v31 = vld [vmem:[#allocation51_spill] sm:$0xff] }
 0x4bf   :  { %2951 = vmatpush1.bf16.msra.mxu0 %v7390_v5  ;;  %2992 = vmatpush1.bf16.msra.mxu1 %v7391_v9  ;;  %v7401_v5 = vld [vmem:[#allocation52_spill] sm:$0xff]  ;;  %v7402_v9 = vld [vmem:[#allocation53_spill] sm:$0xff] }
 0x4c0   :  { %2952 = vmatprep.subr.bf16.mxu0 %v7392_v62  ;;  %2993 = vmatprep.subr.bf16.mxu1 %v7393_v46  ;;  %v7403_v62 = vld [vmem:[#allocation54_spill] sm:$0xff]  ;;  %v7404_v46 = vld [vmem:[#allocation55_spill] sm:$0xff] }
 0x4c3   :  { %2953 = vmatpush1.bf16.msra.mxu0 %v7394_v44  ;;  %2994 = vmatpush1.bf16.msra.mxu1 %v7395_v42  ;;  %v7405_v44 = vld [vmem:[#allocation56_spill] sm:$0xff]  ;;  %v7406_v42 = vld [vmem:[#allocation57_spill] sm:$0xff] }
 0x4c4   :  { %2954 = vmatprep.subr.bf16.mxu0 %v7396_v34  ;;  %2995 = vmatprep.subr.bf16.mxu1 %v7397_v7  ;;  %v7407_v34 = vld [vmem:[#allocation58_spill] sm:$0xff]  ;;  %v7408_v7 = vld [vmem:[#allocation59_spill] sm:$0xff] }
 0x4c7   :  { %2955 = vmatpush1.bf16.msra.mxu0 %v7398_v39  ;;  %2996 = vmatpush1.bf16.msra.mxu1 %v7399_v36  ;;  %v7409_v39 = vld [vmem:[#allocation60_spill] sm:$0xff]  ;;  %v7410_v36 = vld [vmem:[#allocation61_spill] sm:$0xff] }
 0x4c8   :  { %2956 = vmatprep.subr.bf16.mxu0 %v7400_v31  ;;  %2997 = vmatprep.subr.bf16.mxu1 %v7401_v5  ;;  %v7411_v31 = vld [vmem:[#allocation62_spill] sm:$0xff]  ;;  %v7412_v5 = vld [vmem:[#allocation63_spill] sm:$0xff] }
 0x4cb   :  { %2957 = vmatpush2.bf16.msra.mxu0 %v7402_v9  ;;  %2998 = vmatpush2.bf16.msra.mxu1 %v7403_v62  ;;  %v7413_v9 = vld [vmem:[#allocation64_spill] sm:$0xff]  ;;  %v7414_v62 = vld [vmem:[#allocation65_spill] sm:$0xff] }
 0x4cc   :  { %2958 = vmatprep.subr.bf16.mxu0 %v7404_v46  ;;  %2999 = vmatprep.subr.bf16.mxu1 %v7405_v44  ;;  %v7415_v46 = vld [vmem:[#allocation66_spill] sm:$0xff]  ;;  %v7416_v44 = vld [vmem:[#allocation67_spill] sm:$0xff] }
 0x4cf   :  { %2959 = vmatpush2.bf16.msra.mxu0 %v7406_v42  ;;  %3000 = vmatpush2.bf16.msra.mxu1 %v7407_v34  ;;  %v7417_v42 = vld [vmem:[#allocation68_spill] sm:$0xff]  ;;  %v7418_v34 = vld [vmem:[#allocation69_spill] sm:$0xff] }
 0x4d0   :  { %2960 = vmatprep.subr.bf16.mxu0 %v7408_v7  ;;  %3001 = vmatprep.subr.bf16.mxu1 %v7409_v39  ;;  %v7419_v7 = vld [vmem:[#allocation70_spill] sm:$0xff]  ;;  %v7420_v39 = vld [vmem:[#allocation71_spill] sm:$0xff] }
 0x4d3   :  { %2961 = vmatpush2.bf16.msra.mxu0 %v7410_v36  ;;  %3002 = vmatpush2.bf16.msra.mxu1 %v7411_v31  ;;  %v7421_v36 = vld [vmem:[#allocation72_spill] sm:$0xff]  ;;  %v7422_v31 = vld [vmem:[#allocation73_spill] sm:$0xff] }
 0x4d4   :  { %2962 = vmatprep.subr.bf16.mxu0 %v7412_v5  ;;  %3003 = vmatprep.subr.bf16.mxu1 %v7413_v9  ;;  %v7423_v5 = vld [vmem:[#allocation74_spill] sm:$0xff]  ;;  %v7424_v9 = vld [vmem:[#allocation75_spill] sm:$0xff] }
 0x4d7   :  { %2963 = vmatpush2.bf16.msra.mxu0 %v7414_v62  ;;  %3004 = vmatpush2.bf16.msra.mxu1 %v7415_v46  ;;  %v7425_v62 = vld [vmem:[#allocation76_spill] sm:$0xff]  ;;  %v7426_v46 = vld [vmem:[#allocation78_spill] sm:$0xff] }
 0x4d8   :  { %2964 = vmatprep.subr.bf16.mxu0 %v7416_v44  ;;  %3005 = vmatprep.subr.bf16.mxu1 %v7417_v42  ;;  %v7427_v44 = vld [vmem:[#allocation79_spill] sm:$0xff]  ;;  %v7428_v42 = vld [vmem:[#allocation80_spill] sm:$0xff] }
 0x4db   :  { %2965 = vmatpush2.bf16.msra.mxu0 %v7418_v34  ;;  %3006 = vmatpush2.bf16.msra.mxu1 %v7419_v7  ;;  %v7429_v34 = vld [vmem:[#allocation81_spill] sm:$0xff]  ;;  %v7430_v7 = vld [vmem:[#allocation83_spill] sm:$0xff] }
 0x4dc   :  { %2966 = vmatprep.subr.bf16.mxu0 %v7420_v39  ;;  %3007 = vmatprep.subr.bf16.mxu1 %v7421_v36  ;;  %v7431_v39 = vld [vmem:[#allocation84_spill] sm:$0xff]  ;;  %v7432_v36 = vld [vmem:[#allocation85_spill] sm:$0xff] }
 0x4df   :  { %2967 = vmatpush2.bf16.msra.mxu0 %v7422_v31  ;;  %3008 = vmatpush2.bf16.msra.mxu1 %v7423_v5  ;;  %v7433_v31 = vld [vmem:[#allocation86_spill] sm:$0xff] }
 0x4e0   :  { %2968 = vmatprep.subr.bf16.mxu0 %v7424_v9  ;;  %3009 = vmatprep.subr.bf16.mxu1 %v7425_v62 }
 0x4e3   :  { %2969 = vmatpush2.bf16.msra.mxu0 %v7426_v46  ;;  %3010 = vmatpush2.bf16.msra.mxu1 %v7427_v44 }
 0x4e4   :  { %2970 = vmatprep.subr.bf16.mxu0 %v7428_v42  ;;  %3011 = vmatprep.subr.bf16.mxu1 %v7429_v34 }
 0x4e7   :  { %2971 = vmatpush2.bf16.msra.mxu0 %v7430_v7  ;;  %3012 = vmatpush2.bf16.msra.mxu1 %v7431_v39 }
 0x4e8   :  { %3022 = vmatprep.subr.bf16.mxu0 %v7432_v36  ;;  %3063 = vmatprep.subr.bf16.mxu1 %v7433_v31 }
 0x52a   :  { %v2688_v5 = vpop.f32.mrf.mxu0  ;;  %v2729_v9 = vpop.f32.mrf.mxu1 }
 0x52b   :  { %v2828_v38 = vrot.slane %v2729_v9, 5  ;;  %v2826_v42 = vrot.slane %v2688_v5, 5 }
 0x52c   :  { %v2690_v47 = vpop.f32.mrf.mxu0  ;;  %v2731_v62 = vpop.f32.mrf.mxu1 }
 0x52d   :  { %v2829_v61 = vrot.slane %v2731_v62, 5  ;;  %v2844_v34 = vadd.f32 %v2828_v38, %v5246_v6  ;;  %v2827_v7 = vrot.slane %v2690_v47, 5  ;;  %v2842_v39 = vadd.f32 %v2826_v42, %v5249_v4 }
 0x52e   :  { %v2692_v25 = vpop.f32.mrf.mxu0  ;;  %v2733_v46 = vpop.f32.mrf.mxu1 }
 0x52f   :  { %v2845_v36 = vadd.f32 %v2829_v61, %v5252_v19  ;;  %v2858_v32 = vmul.f32 0.5, %v2844_v34  ;;  %v2843_v31 = vadd.f32 %v2827_v7, %v7225_v17  ;;  %v2850_v43 = vmul.f32 0.5, %v2842_v39 }
 0x530   :  { %v2693_v57 = vpop.f32.mrf.mxu0  ;;  %v2734_v44 = vpop.f32.mrf.mxu1 }
 0x531   :  { %v2859_v35 = vmul.f32 0.5, %v2845_v36  ;;  %4458 = vtanh.f32 %v2858_v32  ;;  %v2851_v25 = vmul.f32 0.5, %v2843_v31 }
 0x532   :  { %4460 = vtanh.f32 %v2850_v43 }
 0x533   :  { %4462 = vtanh.f32 %v2859_v35 }
 0x534   :  { %4464 = vtanh.f32 %v2851_v25 }
 0x53e   :  { %v4459_v35 = vpop.eup %4458 }
 0x53f   :  { %v4461_v43 = vpop.eup %4460 }
 0x540   :  { %v4463_v25 = vpop.eup %4462 }
 0x56a   :  { %v2770_v46 = vpop.f32.mrf.mxu0  ;;  %v2811_v5 = vpop.f32.mrf.mxu1 }
 0x56b   :  { %v2830_v62 = vrot.slane %v2770_v46, 5  ;;  %v2832_v44 = vrot.slane %v2811_v5, 5  ;;  %v2862_v46 = vmul.f32 0.5, %v4459_v35 }
 0x56c   :  { %v2772_v57 = vpop.f32.mrf.mxu0  ;;  %v2813_v38 = vpop.f32.mrf.mxu1 }
 0x56d   :  { %v2846_v47 = vadd.f32 %v2830_v62, %v5265_v0  ;;  %v2831_v42 = vrot.slane %v2772_v57, 5  ;;  %v2833_v39 = vrot.slane %v2813_v38, 5  ;;  %v2848_v36 = vadd.f32 %v2832_v44, %v5270_v2  ;;  %v4465_v62 = vpop.eup %4464 }
 0x56e   :  { %v2774_v61 = vpop.f32.mrf.mxu0  ;;  %v2815_v34 = vpop.f32.mrf.mxu1  ;;  %v2854_v57 = vmul.f32 0.5, %v4461_v43  ;;  %v2863_v38 = vmul.f32 0.5, %v4463_v25  ;;  %v2855_v44 = vmul.f32 0.5, %v4465_v62 }
 0x56f   :  { %4466 = vtanh.f32 %v2846_v47  ;;  %v2847_v7 = vadd.f32 %v2831_v42, %v5267_v10  ;;  %v2849_v9 = vadd.f32 %v2833_v39, %v5273_v14  ;;  %v2868_v5 = vmul.f32 0.5, %v2848_v36 }
 0x570   :  { %v2775_v32 = vpop.f32.mrf.mxu0  ;;  %v2816_v31 = vpop.f32.mrf.mxu1  ;;  %v2864_v42 = vadd.f32 0.5, %v2862_v46  ;;  %v2856_v61 = vadd.f32 0.5, %v2854_v57  ;;  %v7434_v34 = vsel %vm5694_vm3, %v5698_v30, %v5684_v58  ;;  %v2895_v39 = vstv %s2894_s19  ;;  %v7559_v46 = vld [vmem:[#allocation132_spill] sm:$0xff] }
 0x571   :  { %4468 = vtanh.f32 %v2847_v7  ;;  %v2869_v47 = vmul.f32 0.5, %v2849_v9  ;;  %v5886_v7 = vrot.slane %v7434_v34, 7  ;;  %v2865_v31 = vadd.f32 0.5, %v2863_v38 }
 0x572   :  { %4470 = vtanh.f32 %v2868_v5  ;;  %v2857_v43 = vadd.f32 0.5, %v2855_v44  ;;  %v7435_v9 = vsel %vm5694_vm3, %v5706_v37, %v5692_v40  ;;  %vm5896_vm4 = vcmp.eq.s32.totalorder %v2895_v39, 1  ;;  %v7454_v37 = vld [vmem:[#allocation131_spill] sm:$0xff] }
 0x573   :  { %4472 = vtanh.f32 %v2869_v47  ;;  %v2882_v36 = vmul.f32 %v5886_v7, %v2864_v42  ;;  %v5894_v25 = vrot.slane %v7435_v9, 7  ;;  %v2897_v34 = vrot.slane %v5716_v54, 7 }
 0x575   :  { %v2883_v5 = vmul.f32 %v5894_v25, %v2865_v31 }
 0x57c   :  { %v4467_v32 = vpop.eup %4466 }
 0x57d   :  { %v2884_v35 = vmul.f32 %v4467_v32, %v2856_v61 }
 0x57e   :  { %v4469_v58 = vpop.eup %4468 }
 0x57f   :  { %v5900_v30 = vadd.f32 %v2884_v35, %v2882_v36  ;;  %v2885_v62 = vmul.f32 %v4469_v58, %v2857_v43  ;;  %v4471_v57 = vpop.eup %4470  ;;  %v2898_v35 = vrot.slane %v5721_v49, 7 }
 0x580   :  { %v4473_v38 = vpop.eup %4472  ;;  %v2872_v47 = vmul.f32 0.5, %v4471_v57 }
 0x581   :  { %4474 = vtanh.f32 %v5900_v30  ;;  %v5908_v40 = vadd.f32 %v2885_v62, %v2883_v5  ;;  %v2873_v42 = vmul.f32 0.5, %v4473_v38 }
 0x582   :  { %v2874_v44 = vadd.f32 0.5, %v2872_v47 }
 0x583   :  { %4476 = vtanh.f32 %v5908_v40  ;;  %v2875_v32 = vadd.f32 0.5, %v2873_v42 }
 0x58e   :  { %v4475_v61 = vpop.eup %4474 }
 0x58f   :  { %v2890_v39 = vmul.f32 %v4475_v61, %v2874_v44 }
 0x590   :  { %v4477_v31 = vpop.eup %4476 }
 0x591   :  { %v5918_v36 = vsel %vm5896_vm4, %v2890_v39, %v2897_v34  ;;  %v2891_v43 = vmul.f32 %v4477_v31, %v2875_v32  ;;  %v7438_v34 = vld [vmem:[#allocation115_spill] sm:$0xff]  ;;  %v7439_v39 = vld [vmem:[#allocation116_spill] sm:$0xff]  ;;  %v7440_v32 = vld [vmem:[#allocation117_spill] sm:$0xff] }
 0x592   :  { %v2928_v9 = vpack.c.bf16 %v5918_v36, %v5918_v36  ;;  %v7441_v31 = vld [vmem:[#allocation118_spill] sm:$0xff] }
 0x593   :  { %v5925_v58 = vsel %vm5896_vm4, %v2891_v43, %v2898_v35  ;;  %v7442_v35 = vld [vmem:[#allocation119_spill] sm:$0xff]  ;;  %v7443_v43 = vld [vmem:[#allocation120_spill] sm:$0xff] }
 0x594   :  { %v2929_v54 = vpack.c.bf16 %v5925_v58, %v5925_v58  ;;  %v2907_v5 = vcombine.low %v5918_v36, %v5925_v58  ;;  %v2931_v62 = vshrl.u32 %v2928_v9, 16  ;;  %v7444_v9 = vld [vmem:[#allocation121_spill] sm:$0xff] }
 0x596   :  { %v2935_v57 = vshrl.u32 %v2929_v54, 16  ;;  %v2914_v38 = vrot.slane %v2907_v5, %v5307_v8  ;;  %v5932_v42 = vrot.slane %v2931_v62, 1  ;;  %v7445_v54 = vld [vmem:[#allocation122_spill] sm:$0xff]  ;;  %v7446_v5 = vld [vmem:[#allocation123_spill] sm:$0xff]  ;;  %v7447_v62 = vld [vmem:[#allocation124_spill] sm:$0xff] }
 0x598   :  { %v2937_v47 = vrot.slane %v2935_v57, 1  ;;  %v2915_v49 = vcombine.high %v2914_v38, %v2914_v38  ;;  %v7448_v57 = vld [vmem:[#allocation125_spill] sm:$0xff]  ;;  %v7449_v38 = vld [vmem:[#allocation126_spill] sm:$0xff] }
 0x59a   :  { %2972 = vmatprep.mubr.bf16.mxu0 %v2937_v47  ;;  %3013 = vmatprep.mubr.bf16.mxu1 %v2937_v47  ;;  %v2922_v44 = vrot.slane %v2915_v49, %v5307_v8  ;;  %v7451_v49 = vld [vmem:[#allocation128_spill] sm:$0xff] }
 0x59b   :  { %2973 = vmatmul.mubr.bf16.vlgmr.msra.gmra.mxu0 %v5932_v42  ;;  %3014 = vmatmul.mubr.bf16.vlgmr.msra.gmra.mxu1 %v5932_v42 }
 0x59c   :  { %v2923_v61 = vcombine.high %v2922_v44, %v2922_v44  ;;  %3023 = vmatpush1.bf16.msra.mxu0 %v7131_v33  ;;  %3064 = vmatpush1.bf16.msra.mxu1 %v7132_v12  ;;  %v7452_v44 = vld [vmem:[#allocation129_spill] sm:$0xff] }
 0x59d   :  { %3054 = vmatprep.mubr.bf16.mxu0 %v2937_v47  ;;  %3095 = vmatprep.mubr.bf16.mxu1 %v2937_v47  ;;  %v7450_v47 = vld [vmem:[#allocation127_spill] sm:$0xff] }
 0x59e   :  { %4380 = vst.msk [vmem:[%s6673_s7 + $0x3] ss:$8 sm:$0x3] %vm4721_vm0, %v2923_v61  ;;  %3024 = vmatprep.subr.bf16.mxu0 %v7133_v63  ;;  %3065 = vmatprep.subr.bf16.mxu1 %v7231_v51  ;;  %v7453_v61 = vld [vmem:[#allocation130_spill] sm:$0xff] }
 0x5a0   :  { %3025 = vmatpush1.bf16.msra.mxu0 %v7232_v59  ;;  %3066 = vmatpush1.bf16.msra.mxu1 %v7233_v29 }
 0x5a1   :  { %3026 = vmatprep.subr.bf16.mxu0 %v7234_v28  ;;  %3067 = vmatprep.subr.bf16.mxu1 %v7235_v26 }
 0x5a4   :  { %3027 = vmatpush1.bf16.msra.mxu0 %v7236_v27  ;;  %3068 = vmatpush1.bf16.msra.mxu1 %v7334_v45 }
 0x5a5   :  { %3028 = vmatprep.subr.bf16.mxu0 %v7335_v41  ;;  %3069 = vmatprep.subr.bf16.mxu1 %v7336_v56 }
 0x5a8   :  { %3029 = vmatpush1.bf16.msra.mxu0 %v7337_v53  ;;  %3070 = vmatpush1.bf16.msra.mxu1 %v7338_v20 }
 0x5a9   :  { %3030 = vmatprep.subr.bf16.mxu0 %v7339_v18  ;;  %3071 = vmatprep.subr.bf16.mxu1 %v7340_v21 }
 0x5ac   :  { %3031 = vmatpush1.bf16.msra.mxu0 %v7341_v24  ;;  %3072 = vmatpush1.bf16.msra.mxu1 %v7342_v55 }
 0x5ad   :  { %3032 = vmatprep.subr.bf16.mxu0 %v7343_v52  ;;  %3073 = vmatprep.subr.bf16.mxu1 %v7344_v60 }
 0x5b0   :  { %3033 = vmatpush1.bf16.msra.mxu0 %v7345_v3  ;;  %3074 = vmatpush1.bf16.msra.mxu1 %v7346_v1 }
 0x5b1   :  { %3034 = vmatprep.subr.bf16.mxu0 %v7347_v22  ;;  %3075 = vmatprep.subr.bf16.mxu1 %v7348_v11 }
 0x5b4   :  { %3035 = vmatpush1.bf16.msra.mxu0 %v7349_v15  ;;  %3076 = vmatpush1.bf16.msra.mxu1 %v7350_v48 }
 0x5b5   :  { %3036 = vmatprep.subr.bf16.mxu0 %v7254_v50  ;;  %3077 = vmatprep.subr.bf16.mxu1 %v7255_v16 }
 0x5b8   :  { %3037 = vmatpush1.bf16.msra.mxu0 %v7438_v34  ;;  %3078 = vmatpush1.bf16.msra.mxu1 %v7439_v39 }
 0x5b9   :  { %3038 = vmatprep.subr.bf16.mxu0 %v7440_v32  ;;  %3079 = vmatprep.subr.bf16.mxu1 %v7441_v31 }
 0x5bc   :  { %3039 = vmatpush2.bf16.msra.mxu0 %v7442_v35  ;;  %3080 = vmatpush2.bf16.msra.mxu1 %v7443_v43 }
 0x5bd   :  { %3040 = vmatprep.subr.bf16.mxu0 %v7444_v9  ;;  %3081 = vmatprep.subr.bf16.mxu1 %v7445_v54  ;;  %v7456_v54 = vld [vmem:[#allocation133_spill] sm:$0xff] }
 0x5c0   :  { %3041 = vmatpush2.bf16.msra.mxu0 %v7446_v5  ;;  %3082 = vmatpush2.bf16.msra.mxu1 %v7447_v62  ;;  %v7457_v5 = vld [vmem:[#allocation134_spill] sm:$0xff]  ;;  %v7458_v62 = vld [vmem:[#allocation135_spill] sm:$0xff] }
 0x5c1   :  { %3042 = vmatprep.subr.bf16.mxu0 %v7448_v57  ;;  %3083 = vmatprep.subr.bf16.mxu1 %v7449_v38  ;;  %v7459_v57 = vld [vmem:[#allocation136_spill] sm:$0xff]  ;;  %v7460_v38 = vld [vmem:[#allocation137_spill] sm:$0xff] }
 0x5c4   :  { %3043 = vmatpush2.bf16.msra.mxu0 %v7450_v47  ;;  %3084 = vmatpush2.bf16.msra.mxu1 %v7451_v49  ;;  %v7461_v47 = vld [vmem:[#allocation138_spill] sm:$0xff]  ;;  %v7462_v49 = vld [vmem:[#allocation139_spill] sm:$0xff] }
 0x5c5   :  { %3044 = vmatprep.subr.bf16.mxu0 %v7452_v44  ;;  %3085 = vmatprep.subr.bf16.mxu1 %v7453_v61  ;;  %v7463_v44 = vld [vmem:[#allocation140_spill] sm:$0xff]  ;;  %v7464_v61 = vld [vmem:[#allocation141_spill] sm:$0xff] }
 0x5c8   :  { %3045 = vmatpush2.bf16.msra.mxu0 %v7454_v37  ;;  %3086 = vmatpush2.bf16.msra.mxu1 %v7455_v23  ;;  %v7465_v37 = vld [vmem:[#allocation142_spill] sm:$0xff]  ;;  %v7466_v23 = vld [vmem:[#allocation143_spill] sm:$0xff] }
 0x5c9   :  { %3046 = vmatprep.subr.bf16.mxu0 %v7456_v54  ;;  %3087 = vmatprep.subr.bf16.mxu1 %v7457_v5  ;;  %v7467_v54 = vld [vmem:[#allocation144_spill] sm:$0xff]  ;;  %v7468_v5 = vld [vmem:[#allocation145_spill] sm:$0xff] }
 0x5cc   :  { %3047 = vmatpush2.bf16.msra.mxu0 %v7458_v62  ;;  %3088 = vmatpush2.bf16.msra.mxu1 %v7459_v57  ;;  %v7469_v62 = vld [vmem:[#allocation146_spill] sm:$0xff]  ;;  %v7470_v57 = vld [vmem:[#allocation147_spill] sm:$0xff] }
 0x5cd   :  { %3048 = vmatprep.subr.bf16.mxu0 %v7460_v38  ;;  %3089 = vmatprep.subr.bf16.mxu1 %v7461_v47  ;;  %v7471_v38 = vld [vmem:[#allocation148_spill] sm:$0xff]  ;;  %v7472_v47 = vld [vmem:[#allocation18_spill] sm:$0xff] }
 0x5d0   :  { %3049 = vmatpush2.bf16.msra.mxu0 %v7462_v49  ;;  %3090 = vmatpush2.bf16.msra.mxu1 %v7463_v44  ;;  %v7473_v49 = vld [vmem:[#allocation19_spill] sm:$0xff] }
 0x5d1   :  { %3050 = vmatprep.subr.bf16.mxu0 %v7464_v61  ;;  %3091 = vmatprep.subr.bf16.mxu1 %v7465_v37  ;;  %v7474_v37 = vld [vmem:[#allocation21_spill] sm:$0xff]  ;;  %v7483_v61 = vld [vmem:[#allocation30_spill] sm:$0xff] }
 0x5d4   :  { %3051 = vmatpush2.bf16.msra.mxu0 %v7466_v23  ;;  %3092 = vmatpush2.bf16.msra.mxu1 %v7467_v54  ;;  %v7475_v23 = vld [vmem:[#allocation22_spill] sm:$0xff]  ;;  %v7476_v54 = vld [vmem:[#allocation23_spill] sm:$0xff] }
 0x5d5   :  { %3052 = vmatprep.subr.bf16.mxu0 %v7468_v5  ;;  %3093 = vmatprep.subr.bf16.mxu1 %v7469_v62  ;;  %v7477_v5 = vld [vmem:[#allocation24_spill] sm:$0xff]  ;;  %v7478_v62 = vld [vmem:[#allocation25_spill] sm:$0xff] }
 0x5d8   :  { %3053 = vmatpush2.bf16.msra.mxu0 %v7470_v57  ;;  %3094 = vmatpush2.bf16.msra.mxu1 %v7471_v38  ;;  %v7479_v57 = vld [vmem:[#allocation26_spill] sm:$0xff]  ;;  %v7480_v38 = vld [vmem:[#allocation27_spill] sm:$0xff] }
 0x5d9   :  { %3220 = vmatprep.subr.bf16.mxu0 %v7472_v47  ;;  %3261 = vmatprep.subr.bf16.mxu1 %v7473_v49  ;;  %v7481_v47 = vld [vmem:[#allocation28_spill] sm:$0xff]  ;;  %v7482_v49 = vld [vmem:[#allocation29_spill] sm:$0xff] }
 0x5db   :  { %3055 = vmatmul.mubr.bf16.vlgmr.msra.gmra.mxu0 %v5932_v42  ;;  %3096 = vmatmul.mubr.bf16.vlgmr.msra.gmra.mxu1 %v5932_v42  ;;  %v7484_v42 = vld [vmem:[#allocation31_spill] sm:$0xff] }
 0x5dc   :  { %3221 = vmatpush1.bf16.msra.mxu0 %v7474_v37  ;;  %3262 = vmatpush1.bf16.msra.mxu1 %v7475_v23  ;;  %v7485_v37 = vld [vmem:[#allocation32_spill] sm:$0xff]  ;;  %v7486_v23 = vld [vmem:[#allocation33_spill] sm:$0xff] }
 0x5dd   :  { %3222 = vmatprep.subr.bf16.mxu0 %v7476_v54  ;;  %3263 = vmatprep.subr.bf16.mxu1 %v7477_v5  ;;  %v7487_v54 = vld [vmem:[#allocation34_spill] sm:$0xff]  ;;  %v7488_v5 = vld [vmem:[#allocation35_spill] sm:$0xff] }
 0x5e0   :  { %3223 = vmatpush1.bf16.msra.mxu0 %v7478_v62  ;;  %3264 = vmatpush1.bf16.msra.mxu1 %v7479_v57  ;;  %v7489_v62 = vld [vmem:[#allocation36_spill] sm:$0xff]  ;;  %v7490_v57 = vld [vmem:[#allocation37_spill] sm:$0xff] }
 0x5e1   :  { %3224 = vmatprep.subr.bf16.mxu0 %v7480_v38  ;;  %3265 = vmatprep.subr.bf16.mxu1 %v7481_v47  ;;  %v7491_v38 = vld [vmem:[#allocation38_spill] sm:$0xff]  ;;  %v7492_v47 = vld [vmem:[#allocation39_spill] sm:$0xff] }
 0x5e4   :  { %3225 = vmatpush1.bf16.msra.mxu0 %v7482_v49  ;;  %3266 = vmatpush1.bf16.msra.mxu1 %v7483_v61  ;;  %v7493_v49 = vld [vmem:[#allocation40_spill] sm:$0xff]  ;;  %v7494_v61 = vld [vmem:[#allocation41_spill] sm:$0xff] }
 0x5e5   :  { %3226 = vmatprep.subr.bf16.mxu0 %v7484_v42  ;;  %3267 = vmatprep.subr.bf16.mxu1 %v7485_v37  ;;  %v7495_v42 = vld [vmem:[#allocation42_spill] sm:$0xff]  ;;  %v7496_v37 = vld [vmem:[#allocation43_spill] sm:$0xff] }
 0x5e8   :  { %3227 = vmatpush1.bf16.msra.mxu0 %v7486_v23  ;;  %3268 = vmatpush1.bf16.msra.mxu1 %v7487_v54  ;;  %v7497_v23 = vld [vmem:[#allocation44_spill] sm:$0xff]  ;;  %v7498_v54 = vld [vmem:[#allocation45_spill] sm:$0xff] }
 0x5e9   :  { %3228 = vmatprep.subr.bf16.mxu0 %v7488_v5  ;;  %3269 = vmatprep.subr.bf16.mxu1 %v7489_v62  ;;  %v7499_v5 = vld [vmem:[#allocation46_spill] sm:$0xff]  ;;  %v7500_v62 = vld [vmem:[#allocation47_spill] sm:$0xff] }
 0x5ec   :  { %3229 = vmatpush1.bf16.msra.mxu0 %v7490_v57  ;;  %3270 = vmatpush1.bf16.msra.mxu1 %v7491_v38  ;;  %v7501_v57 = vld [vmem:[#allocation48_spill] sm:$0xff]  ;;  %v7502_v38 = vld [vmem:[#allocation49_spill] sm:$0xff] }
 0x5ed   :  { %3230 = vmatprep.subr.bf16.mxu0 %v7492_v47  ;;  %3271 = vmatprep.subr.bf16.mxu1 %v7493_v49  ;;  %v7503_v47 = vld [vmem:[#allocation50_spill] sm:$0xff]  ;;  %v7504_v49 = vld [vmem:[#allocation51_spill] sm:$0xff] }
 0x5f0   :  { %3231 = vmatpush1.bf16.msra.mxu0 %v7494_v61  ;;  %3272 = vmatpush1.bf16.msra.mxu1 %v7495_v42  ;;  %v7505_v61 = vld [vmem:[#allocation52_spill] sm:$0xff]  ;;  %v7506_v42 = vld [vmem:[#allocation53_spill] sm:$0xff] }
 0x5f1   :  { %3232 = vmatprep.subr.bf16.mxu0 %v7496_v37  ;;  %3273 = vmatprep.subr.bf16.mxu1 %v7497_v23  ;;  %v7507_v37 = vld [vmem:[#allocation54_spill] sm:$0xff]  ;;  %v7508_v23 = vld [vmem:[#allocation55_spill] sm:$0xff] }
 0x5f4   :  { %3233 = vmatpush1.bf16.msra.mxu0 %v7498_v54  ;;  %3274 = vmatpush1.bf16.msra.mxu1 %v7499_v5  ;;  %v7509_v54 = vld [vmem:[#allocation56_spill] sm:$0xff]  ;;  %v7510_v5 = vld [vmem:[#allocation57_spill] sm:$0xff] }
 0x5f5   :  { %3234 = vmatprep.subr.bf16.mxu0 %v7500_v62  ;;  %3275 = vmatprep.subr.bf16.mxu1 %v7501_v57  ;;  %v7511_v62 = vld [vmem:[#allocation58_spill] sm:$0xff]  ;;  %v7512_v57 = vld [vmem:[#allocation59_spill] sm:$0xff] }
 0x5f8   :  { %3235 = vmatpush1.bf16.msra.mxu0 %v7502_v38  ;;  %3276 = vmatpush1.bf16.msra.mxu1 %v7503_v47  ;;  %v7513_v38 = vld [vmem:[#allocation60_spill] sm:$0xff]  ;;  %v7514_v47 = vld [vmem:[#allocation61_spill] sm:$0xff] }
 0x5f9   :  { %3236 = vmatprep.subr.bf16.mxu0 %v7504_v49  ;;  %3277 = vmatprep.subr.bf16.mxu1 %v7505_v61  ;;  %v7515_v49 = vld [vmem:[#allocation62_spill] sm:$0xff]  ;;  %v7516_v61 = vld [vmem:[#allocation63_spill] sm:$0xff] }
 0x5fc   :  { %3237 = vmatpush2.bf16.msra.mxu0 %v7506_v42  ;;  %3278 = vmatpush2.bf16.msra.mxu1 %v7507_v37  ;;  %v7517_v42 = vld [vmem:[#allocation64_spill] sm:$0xff]  ;;  %v7518_v37 = vld [vmem:[#allocation65_spill] sm:$0xff] }
 0x5fd   :  { %3238 = vmatprep.subr.bf16.mxu0 %v7508_v23  ;;  %3279 = vmatprep.subr.bf16.mxu1 %v7509_v54  ;;  %v7519_v23 = vld [vmem:[#allocation66_spill] sm:$0xff]  ;;  %v7520_v54 = vld [vmem:[#allocation67_spill] sm:$0xff] }
 0x600   :  { %3239 = vmatpush2.bf16.msra.mxu0 %v7510_v5  ;;  %3280 = vmatpush2.bf16.msra.mxu1 %v7511_v62  ;;  %v7521_v5 = vld [vmem:[#allocation68_spill] sm:$0xff]  ;;  %v7522_v62 = vld [vmem:[#allocation69_spill] sm:$0xff] }
 0x601   :  { %3240 = vmatprep.subr.bf16.mxu0 %v7512_v57  ;;  %3281 = vmatprep.subr.bf16.mxu1 %v7513_v38  ;;  %v7523_v57 = vld [vmem:[#allocation70_spill] sm:$0xff]  ;;  %v7524_v38 = vld [vmem:[#allocation71_spill] sm:$0xff] }
 0x604   :  { %3241 = vmatpush2.bf16.msra.mxu0 %v7514_v47  ;;  %3282 = vmatpush2.bf16.msra.mxu1 %v7515_v49  ;;  %v7525_v47 = vld [vmem:[#allocation72_spill] sm:$0xff]  ;;  %v7526_v49 = vld [vmem:[#allocation73_spill] sm:$0xff] }
 0x605   :  { %3242 = vmatprep.subr.bf16.mxu0 %v7516_v61  ;;  %3283 = vmatprep.subr.bf16.mxu1 %v7517_v42  ;;  %v7527_v61 = vld [vmem:[#allocation74_spill] sm:$0xff]  ;;  %v7528_v42 = vld [vmem:[#allocation75_spill] sm:$0xff] }
 0x608   :  { %3243 = vmatpush2.bf16.msra.mxu0 %v7518_v37  ;;  %3284 = vmatpush2.bf16.msra.mxu1 %v7519_v23  ;;  %v7529_v37 = vld [vmem:[#allocation76_spill] sm:$0xff]  ;;  %v7530_v23 = vld [vmem:[#allocation78_spill] sm:$0xff] }
 0x609   :  { %3244 = vmatprep.subr.bf16.mxu0 %v7520_v54  ;;  %3285 = vmatprep.subr.bf16.mxu1 %v7521_v5  ;;  %v7531_v54 = vld [vmem:[#allocation79_spill] sm:$0xff]  ;;  %v7532_v5 = vld [vmem:[#allocation80_spill] sm:$0xff] }
 0x60c   :  { %3245 = vmatpush2.bf16.msra.mxu0 %v7522_v62  ;;  %3286 = vmatpush2.bf16.msra.mxu1 %v7523_v57  ;;  %v7533_v62 = vld [vmem:[#allocation81_spill] sm:$0xff]  ;;  %v7534_v57 = vld [vmem:[#allocation83_spill] sm:$0xff] }
 0x60d   :  { %3246 = vmatprep.subr.bf16.mxu0 %v7524_v38  ;;  %3287 = vmatprep.subr.bf16.mxu1 %v7525_v47  ;;  %v7535_v38 = vld [vmem:[#allocation84_spill] sm:$0xff]  ;;  %v7536_v47 = vld [vmem:[#allocation85_spill] sm:$0xff] }
 0x610   :  { %3247 = vmatpush2.bf16.msra.mxu0 %v7526_v49  ;;  %3288 = vmatpush2.bf16.msra.mxu1 %v7527_v61  ;;  %v7537_v49 = vld [vmem:[#allocation86_spill] sm:$0xff] }
 0x611   :  { %3248 = vmatprep.subr.bf16.mxu0 %v7528_v42  ;;  %3289 = vmatprep.subr.bf16.mxu1 %v7529_v37 }
 0x614   :  { %3249 = vmatpush2.bf16.msra.mxu0 %v7530_v23  ;;  %3290 = vmatpush2.bf16.msra.mxu1 %v7531_v54 }
 0x615   :  { %3250 = vmatprep.subr.bf16.mxu0 %v7532_v5  ;;  %3291 = vmatprep.subr.bf16.mxu1 %v7533_v62 }
 0x618   :  { %3251 = vmatpush2.bf16.msra.mxu0 %v7534_v57  ;;  %3292 = vmatpush2.bf16.msra.mxu1 %v7535_v38 }
 0x619   :  { %3302 = vmatprep.subr.bf16.mxu0 %v7536_v47  ;;  %3343 = vmatprep.subr.bf16.mxu1 %v7537_v49 }
 0x65b   :  { %v2974_v61 = vpop.f32.mrf.mxu0  ;;  %v3015_v42 = vpop.f32.mrf.mxu1 }
 0x65c   :  { %v3114_v35 = vrot.slane %v3015_v42, 4  ;;  %v3112_v5 = vrot.slane %v2974_v61, 4 }
 0x65d   :  { %v2976_v44 = vpop.f32.mrf.mxu0  ;;  %v3017_v37 = vpop.f32.mrf.mxu1 }
 0x65e   :  { %v3115_v31 = vrot.slane %v3017_v37, 4  ;;  %v3130_v62 = vadd.f32 %v3114_v35, %v5246_v6  ;;  %v3113_v57 = vrot.slane %v2976_v44, 4  ;;  %v3128_v38 = vadd.f32 %v3112_v5, %v5249_v4 }
 0x65f   :  { %v2978_v9 = vpop.f32.mrf.mxu0  ;;  %v3019_v23 = vpop.f32.mrf.mxu1 }
 0x660   :  { %v3131_v47 = vadd.f32 %v3115_v31, %v5252_v19  ;;  %v3144_v32 = vmul.f32 0.5, %v3130_v62  ;;  %v3129_v49 = vadd.f32 %v3113_v57, %v7225_v17  ;;  %v3136_v39 = vmul.f32 0.5, %v3128_v38 }
 0x661   :  { %v2979_v43 = vpop.f32.mrf.mxu0  ;;  %v3020_v54 = vpop.f32.mrf.mxu1 }
 0x662   :  { %v3145_v34 = vmul.f32 0.5, %v3131_v47  ;;  %4478 = vtanh.f32 %v3144_v32  ;;  %v3137_v9 = vmul.f32 0.5, %v3129_v49 }
 0x663   :  { %4480 = vtanh.f32 %v3136_v39 }
 0x664   :  { %4482 = vtanh.f32 %v3145_v34 }
 0x665   :  { %4484 = vtanh.f32 %v3137_v9 }
 0x66f   :  { %v4479_v39 = vpop.eup %4478 }
 0x670   :  { %v4481_v49 = vpop.eup %4480 }
 0x671   :  { %v4483_v9 = vpop.eup %4482 }
 0x69b   :  { %v3056_v23 = vpop.f32.mrf.mxu0  ;;  %v3097_v43 = vpop.f32.mrf.mxu1 }
 0x69c   :  { %v3116_v37 = vrot.slane %v3056_v23, 4  ;;  %v3118_v5 = vrot.slane %v3097_v43, 4  ;;  %v3148_v23 = vmul.f32 0.5, %v4479_v39 }
 0x69d   :  { %v3058_v54 = vpop.f32.mrf.mxu0  ;;  %v3099_v35 = vpop.f32.mrf.mxu1 }
 0x69e   :  { %v3132_v44 = vadd.f32 %v3116_v37, %v5265_v0  ;;  %v3117_v61 = vrot.slane %v3058_v54, 4  ;;  %v3119_v38 = vrot.slane %v3099_v35, 4  ;;  %v3134_v34 = vadd.f32 %v3118_v5, %v5270_v2  ;;  %v4485_v37 = vpop.eup %4484 }
 0x69f   :  { %v3060_v31 = vpop.f32.mrf.mxu0  ;;  %v3101_v62 = vpop.f32.mrf.mxu1  ;;  %v3140_v54 = vmul.f32 0.5, %v4481_v49  ;;  %v3149_v35 = vmul.f32 0.5, %v4483_v9  ;;  %v3141_v5 = vmul.f32 0.5, %v4485_v37 }
 0x6a0   :  { %4486 = vtanh.f32 %v3132_v44  ;;  %v3133_v57 = vadd.f32 %v3117_v61, %v5267_v10  ;;  %v3135_v42 = vadd.f32 %v3119_v38, %v5273_v14  ;;  %v3154_v43 = vmul.f32 0.5, %v3134_v34 }
 0x6a1   :  { %v3061_v32 = vpop.f32.mrf.mxu0  ;;  %v3102_v47 = vpop.f32.mrf.mxu1  ;;  %v3150_v61 = vadd.f32 0.5, %v3148_v23  ;;  %v3142_v31 = vadd.f32 0.5, %v3140_v54  ;;  %v7538_v62 = vsel %vm5896_vm4, %v5900_v30, %v5886_v7  ;;  %v3181_v38 = vstv %s3180_s21  ;;  %v7663_v23 = vld [vmem:[#allocation132_spill] sm:$0xff] }
 0x6a2   :  { %4488 = vtanh.f32 %v3133_v57  ;;  %v3155_v44 = vmul.f32 0.5, %v3135_v42  ;;  %v6088_v57 = vrot.slane %v7538_v62, 7  ;;  %v3151_v47 = vadd.f32 0.5, %v3149_v35 }
 0x6a3   :  { %4490 = vtanh.f32 %v3154_v43  ;;  %v3143_v49 = vadd.f32 0.5, %v3141_v5  ;;  %v7539_v42 = vsel %vm5896_vm4, %v5908_v40, %v5894_v25  ;;  %vm6098_vm5 = vcmp.eq.s32.totalorder %v3181_v38, 1  ;;  %v7558_v40 = vld [vmem:[#allocation131_spill] sm:$0xff] }
 0x6a4   :  { %4492 = vtanh.f32 %v3155_v44  ;;  %v3168_v34 = vmul.f32 %v6088_v57, %v3150_v61  ;;  %v6096_v9 = vrot.slane %v7539_v42, 7  ;;  %v3183_v62 = vrot.slane %v5918_v36, 7 }
 0x6a6   :  { %v3169_v43 = vmul.f32 %v6096_v9, %v3151_v47 }
 0x6ad   :  { %v4487_v32 = vpop.eup %4486 }
 0x6ae   :  { %v3170_v39 = vmul.f32 %v4487_v32, %v3142_v31 }
 0x6af   :  { %v4489_v7 = vpop.eup %4488 }
 0x6b0   :  { %v6102_v30 = vadd.f32 %v3170_v39, %v3168_v34  ;;  %v3171_v37 = vmul.f32 %v4489_v7, %v3143_v49  ;;  %v4491_v54 = vpop.eup %4490  ;;  %v3184_v39 = vrot.slane %v5925_v58, 7 }
 0x6b1   :  { %v4493_v35 = vpop.eup %4492  ;;  %v3158_v44 = vmul.f32 0.5, %v4491_v54 }
 0x6b2   :  { %4494 = vtanh.f32 %v6102_v30  ;;  %v6110_v25 = vadd.f32 %v3171_v37, %v3169_v43  ;;  %v3159_v61 = vmul.f32 0.5, %v4493_v35 }
 0x6b3   :  { %v3160_v5 = vadd.f32 0.5, %v3158_v44  ;;  %v7542_v44 = vld [vmem:[#allocation115_spill] sm:$0xff] }
 0x6b4   :  { %4496 = vtanh.f32 %v6110_v25  ;;  %v3161_v32 = vadd.f32 0.5, %v3159_v61  ;;  %v7543_v61 = vld [vmem:[#allocation116_spill] sm:$0xff] }
 0x6bf   :  { %v4495_v31 = vpop.eup %4494 }
 0x6c0   :  { %v3176_v38 = vmul.f32 %v4495_v31, %v3160_v5  ;;  %v7544_v5 = vld [vmem:[#allocation117_spill] sm:$0xff]  ;;  %v7545_v31 = vld [vmem:[#allocation118_spill] sm:$0xff] }
 0x6c1   :  { %v4497_v47 = vpop.eup %4496 }
 0x6c2   :  { %v6120_v34 = vsel %vm6098_vm5, %v3176_v38, %v3183_v62  ;;  %v3177_v49 = vmul.f32 %v4497_v47, %v3161_v32  ;;  %v7546_v62 = vld [vmem:[#allocation119_spill] sm:$0xff]  ;;  %v7547_v38 = vld [vmem:[#allocation120_spill] sm:$0xff]  ;;  %v7548_v32 = vld [vmem:[#allocation121_spill] sm:$0xff] }
 0x6c3   :  { %v3212_v7 = vpack.c.bf16 %v6120_v34, %v6120_v34  ;;  %v7549_v47 = vld [vmem:[#allocation122_spill] sm:$0xff] }
 0x6c4   :  { %v6125_v42 = vsel %vm6098_vm5, %v3177_v49, %v3184_v39  ;;  %v7550_v39 = vld [vmem:[#allocation123_spill] sm:$0xff]  ;;  %v7551_v49 = vld [vmem:[#allocation124_spill] sm:$0xff] }
 0x6c5   :  { %v3213_v36 = vpack.c.bf16 %v6125_v42, %v6125_v42  ;;  %v3193_v43 = vcombine.high %v6120_v34, %v6125_v42  ;;  %v6134_v35 = vrot.slane %v3212_v7, 2  ;;  %v7552_v7 = vld [vmem:[#allocation125_spill] sm:$0xff] }
 0x6c7   :  { %v3217_v37 = vrot.slane %v3213_v36, 2  ;;  %v3200_v54 = vrot.slane %v3193_v43, %v5307_v8  ;;  %v7553_v36 = vld [vmem:[#allocation126_spill] sm:$0xff]  ;;  %v7554_v43 = vld [vmem:[#allocation127_spill] sm:$0xff] }
 0x6c9   :  { %3252 = vmatprep.mubr.bf16.mxu0 %v3217_v37  ;;  %3293 = vmatprep.mubr.bf16.mxu1 %v3217_v37  ;;  %v3207_v58 = vrot.slane %v3200_v54, %v5307_v8  ;;  %v7556_v54 = vld [vmem:[#allocation129_spill] sm:$0xff] }
 0x6ca   :  { %3253 = vmatmul.mubr.bf16.vlgmr.msra.gmra.mxu0 %v6134_v35  ;;  %3294 = vmatmul.mubr.bf16.vlgmr.msra.gmra.mxu1 %v6134_v35 }
 0x6cb   :  { %4382 = vst.msk [vmem:[%s6673_s7 + $0x4] ss:$8 sm:$0x3] %vm4721_vm0, %v3207_v58  ;;  %3303 = vmatpush1.bf16.msra.mxu0 %v7131_v33  ;;  %3344 = vmatpush1.bf16.msra.mxu1 %v7132_v12  ;;  %v7557_v58 = vld [vmem:[#allocation130_spill] sm:$0xff] }
 0x6cc   :  { %3334 = vmatprep.mubr.bf16.mxu0 %v3217_v37  ;;  %3375 = vmatprep.mubr.bf16.mxu1 %v3217_v37  ;;  %v7555_v37 = vld [vmem:[#allocation128_spill] sm:$0xff] }
 0x6cd   :  { %3304 = vmatprep.subr.bf16.mxu0 %v7133_v63  ;;  %3345 = vmatprep.subr.bf16.mxu1 %v7231_v51 }
 0x6cf   :  { %3305 = vmatpush1.bf16.msra.mxu0 %v7232_v59  ;;  %3346 = vmatpush1.bf16.msra.mxu1 %v7233_v29 }
 0x6d0   :  { %3306 = vmatprep.subr.bf16.mxu0 %v7234_v28  ;;  %3347 = vmatprep.subr.bf16.mxu1 %v7235_v26 }
 0x6d3   :  { %3307 = vmatpush1.bf16.msra.mxu0 %v7236_v27  ;;  %3348 = vmatpush1.bf16.msra.mxu1 %v7334_v45 }
 0x6d4   :  { %3308 = vmatprep.subr.bf16.mxu0 %v7335_v41  ;;  %3349 = vmatprep.subr.bf16.mxu1 %v7336_v56 }
 0x6d7   :  { %3309 = vmatpush1.bf16.msra.mxu0 %v7337_v53  ;;  %3350 = vmatpush1.bf16.msra.mxu1 %v7338_v20 }
 0x6d8   :  { %3310 = vmatprep.subr.bf16.mxu0 %v7339_v18  ;;  %3351 = vmatprep.subr.bf16.mxu1 %v7340_v21 }
 0x6db   :  { %3311 = vmatpush1.bf16.msra.mxu0 %v7341_v24  ;;  %3352 = vmatpush1.bf16.msra.mxu1 %v7342_v55 }
 0x6dc   :  { %3312 = vmatprep.subr.bf16.mxu0 %v7343_v52  ;;  %3353 = vmatprep.subr.bf16.mxu1 %v7344_v60 }
 0x6df   :  { %3313 = vmatpush1.bf16.msra.mxu0 %v7345_v3  ;;  %3354 = vmatpush1.bf16.msra.mxu1 %v7346_v1 }
 0x6e0   :  { %3314 = vmatprep.subr.bf16.mxu0 %v7347_v22  ;;  %3355 = vmatprep.subr.bf16.mxu1 %v7348_v11 }
 0x6e3   :  { %3315 = vmatpush1.bf16.msra.mxu0 %v7349_v15  ;;  %3356 = vmatpush1.bf16.msra.mxu1 %v7350_v48 }
 0x6e4   :  { %3316 = vmatprep.subr.bf16.mxu0 %v7254_v50  ;;  %3357 = vmatprep.subr.bf16.mxu1 %v7255_v16 }
 0x6e7   :  { %3317 = vmatpush1.bf16.msra.mxu0 %v7542_v44  ;;  %3358 = vmatpush1.bf16.msra.mxu1 %v7543_v61 }
 0x6e8   :  { %3318 = vmatprep.subr.bf16.mxu0 %v7544_v5  ;;  %3359 = vmatprep.subr.bf16.mxu1 %v7545_v31 }
 0x6eb   :  { %3319 = vmatpush2.bf16.msra.mxu0 %v7546_v62  ;;  %3360 = vmatpush2.bf16.msra.mxu1 %v7547_v38 }
 0x6ec   :  { %3320 = vmatprep.subr.bf16.mxu0 %v7548_v32  ;;  %3361 = vmatprep.subr.bf16.mxu1 %v7549_v47  ;;  %v7560_v47 = vld [vmem:[#allocation133_spill] sm:$0xff] }
 0x6ef   :  { %3321 = vmatpush2.bf16.msra.mxu0 %v7550_v39  ;;  %3362 = vmatpush2.bf16.msra.mxu1 %v7551_v49  ;;  %v7561_v39 = vld [vmem:[#allocation134_spill] sm:$0xff]  ;;  %v7562_v49 = vld [vmem:[#allocation135_spill] sm:$0xff] }
 0x6f0   :  { %3322 = vmatprep.subr.bf16.mxu0 %v7552_v7  ;;  %3363 = vmatprep.subr.bf16.mxu1 %v7553_v36  ;;  %v7563_v7 = vld [vmem:[#allocation136_spill] sm:$0xff]  ;;  %v7564_v36 = vld [vmem:[#allocation137_spill] sm:$0xff] }
 0x6f3   :  { %3323 = vmatpush2.bf16.msra.mxu0 %v7554_v43  ;;  %3364 = vmatpush2.bf16.msra.mxu1 %v7555_v37  ;;  %v7565_v43 = vld [vmem:[#allocation138_spill] sm:$0xff]  ;;  %v7566_v37 = vld [vmem:[#allocation139_spill] sm:$0xff] }
 0x6f4   :  { %3324 = vmatprep.subr.bf16.mxu0 %v7556_v54  ;;  %3365 = vmatprep.subr.bf16.mxu1 %v7557_v58  ;;  %v7567_v54 = vld [vmem:[#allocation140_spill] sm:$0xff]  ;;  %v7568_v58 = vld [vmem:[#allocation141_spill] sm:$0xff] }
 0x6f7   :  { %3325 = vmatpush2.bf16.msra.mxu0 %v7558_v40  ;;  %3366 = vmatpush2.bf16.msra.mxu1 %v7559_v46  ;;  %v7569_v40 = vld [vmem:[#allocation142_spill] sm:$0xff]  ;;  %v7570_v46 = vld [vmem:[#allocation143_spill] sm:$0xff] }
 0x6f8   :  { %3326 = vmatprep.subr.bf16.mxu0 %v7560_v47  ;;  %3367 = vmatprep.subr.bf16.mxu1 %v7561_v39  ;;  %v7571_v47 = vld [vmem:[#allocation144_spill] sm:$0xff]  ;;  %v7572_v39 = vld [vmem:[#allocation145_spill] sm:$0xff] }
 0x6fb   :  { %3327 = vmatpush2.bf16.msra.mxu0 %v7562_v49  ;;  %3368 = vmatpush2.bf16.msra.mxu1 %v7563_v7  ;;  %v7573_v49 = vld [vmem:[#allocation146_spill] sm:$0xff]  ;;  %v7574_v7 = vld [vmem:[#allocation147_spill] sm:$0xff] }
 0x6fc   :  { %3328 = vmatprep.subr.bf16.mxu0 %v7564_v36  ;;  %3369 = vmatprep.subr.bf16.mxu1 %v7565_v43  ;;  %v7575_v36 = vld [vmem:[#allocation148_spill] sm:$0xff]  ;;  %v7576_v43 = vld [vmem:[#allocation18_spill] sm:$0xff] }
 0x6ff   :  { %3329 = vmatpush2.bf16.msra.mxu0 %v7566_v37  ;;  %3370 = vmatpush2.bf16.msra.mxu1 %v7567_v54  ;;  %v7577_v37 = vld [vmem:[#allocation19_spill] sm:$0xff] }
 0x700   :  { %3330 = vmatprep.subr.bf16.mxu0 %v7568_v58  ;;  %3371 = vmatprep.subr.bf16.mxu1 %v7569_v40  ;;  %v7578_v40 = vld [vmem:[#allocation21_spill] sm:$0xff]  ;;  %v7587_v58 = vld [vmem:[#allocation30_spill] sm:$0xff] }
 0x703   :  { %3331 = vmatpush2.bf16.msra.mxu0 %v7570_v46  ;;  %3372 = vmatpush2.bf16.msra.mxu1 %v7571_v47  ;;  %v7579_v46 = vld [vmem:[#allocation22_spill] sm:$0xff]  ;;  %v7580_v47 = vld [vmem:[#allocation23_spill] sm:$0xff] }
 0x704   :  { %3332 = vmatprep.subr.bf16.mxu0 %v7572_v39  ;;  %3373 = vmatprep.subr.bf16.mxu1 %v7573_v49  ;;  %v7581_v39 = vld [vmem:[#allocation24_spill] sm:$0xff]  ;;  %v7582_v49 = vld [vmem:[#allocation25_spill] sm:$0xff] }
 0x707   :  { %3333 = vmatpush2.bf16.msra.mxu0 %v7574_v7  ;;  %3374 = vmatpush2.bf16.msra.mxu1 %v7575_v36  ;;  %v7583_v7 = vld [vmem:[#allocation26_spill] sm:$0xff]  ;;  %v7584_v36 = vld [vmem:[#allocation27_spill] sm:$0xff] }
 0x708   :  { %3505 = vmatprep.subr.bf16.mxu0 %v7576_v43  ;;  %3546 = vmatprep.subr.bf16.mxu1 %v7577_v37  ;;  %v7585_v43 = vld [vmem:[#allocation28_spill] sm:$0xff]  ;;  %v7586_v37 = vld [vmem:[#allocation29_spill] sm:$0xff] }
 0x70a   :  { %3335 = vmatmul.mubr.bf16.vlgmr.msra.gmra.mxu0 %v6134_v35  ;;  %3376 = vmatmul.mubr.bf16.vlgmr.msra.gmra.mxu1 %v6134_v35  ;;  %v7588_v35 = vld [vmem:[#allocation31_spill] sm:$0xff] }
 0x70b   :  { %3506 = vmatpush1.bf16.msra.mxu0 %v7578_v40  ;;  %3547 = vmatpush1.bf16.msra.mxu1 %v7579_v46  ;;  %v7589_v40 = vld [vmem:[#allocation32_spill] sm:$0xff]  ;;  %v7590_v46 = vld [vmem:[#allocation33_spill] sm:$0xff] }
 0x70c   :  { %3507 = vmatprep.subr.bf16.mxu0 %v7580_v47  ;;  %3548 = vmatprep.subr.bf16.mxu1 %v7581_v39  ;;  %v7591_v47 = vld [vmem:[#allocation34_spill] sm:$0xff]  ;;  %v7592_v39 = vld [vmem:[#allocation35_spill] sm:$0xff] }
 0x70f   :  { %3508 = vmatpush1.bf16.msra.mxu0 %v7582_v49  ;;  %3549 = vmatpush1.bf16.msra.mxu1 %v7583_v7  ;;  %v7593_v49 = vld [vmem:[#allocation36_spill] sm:$0xff]  ;;  %v7594_v7 = vld [vmem:[#allocation37_spill] sm:$0xff] }
 0x710   :  { %3509 = vmatprep.subr.bf16.mxu0 %v7584_v36  ;;  %3550 = vmatprep.subr.bf16.mxu1 %v7585_v43  ;;  %v7595_v36 = vld [vmem:[#allocation38_spill] sm:$0xff]  ;;  %v7596_v43 = vld [vmem:[#allocation39_spill] sm:$0xff] }
 0x713   :  { %3510 = vmatpush1.bf16.msra.mxu0 %v7586_v37  ;;  %3551 = vmatpush1.bf16.msra.mxu1 %v7587_v58  ;;  %v7597_v37 = vld [vmem:[#allocation40_spill] sm:$0xff]  ;;  %v7598_v58 = vld [vmem:[#allocation41_spill] sm:$0xff] }
 0x714   :  { %3511 = vmatprep.subr.bf16.mxu0 %v7588_v35  ;;  %3552 = vmatprep.subr.bf16.mxu1 %v7589_v40  ;;  %v7599_v35 = vld [vmem:[#allocation42_spill] sm:$0xff]  ;;  %v7600_v40 = vld [vmem:[#allocation43_spill] sm:$0xff] }
 0x717   :  { %3512 = vmatpush1.bf16.msra.mxu0 %v7590_v46  ;;  %3553 = vmatpush1.bf16.msra.mxu1 %v7591_v47  ;;  %v7601_v46 = vld [vmem:[#allocation44_spill] sm:$0xff]  ;;  %v7602_v47 = vld [vmem:[#allocation45_spill] sm:$0xff] }
 0x718   :  { %3513 = vmatprep.subr.bf16.mxu0 %v7592_v39  ;;  %3554 = vmatprep.subr.bf16.mxu1 %v7593_v49  ;;  %v7603_v39 = vld [vmem:[#allocation46_spill] sm:$0xff]  ;;  %v7604_v49 = vld [vmem:[#allocation47_spill] sm:$0xff] }
 0x71b   :  { %3514 = vmatpush1.bf16.msra.mxu0 %v7594_v7  ;;  %3555 = vmatpush1.bf16.msra.mxu1 %v7595_v36  ;;  %v7605_v7 = vld [vmem:[#allocation48_spill] sm:$0xff]  ;;  %v7606_v36 = vld [vmem:[#allocation49_spill] sm:$0xff] }
 0x71c   :  { %3515 = vmatprep.subr.bf16.mxu0 %v7596_v43  ;;  %3556 = vmatprep.subr.bf16.mxu1 %v7597_v37  ;;  %v7607_v43 = vld [vmem:[#allocation50_spill] sm:$0xff]  ;;  %v7608_v37 = vld [vmem:[#allocation51_spill] sm:$0xff] }
 0x71f   :  { %3516 = vmatpush1.bf16.msra.mxu0 %v7598_v58  ;;  %3557 = vmatpush1.bf16.msra.mxu1 %v7599_v35  ;;  %v7609_v58 = vld [vmem:[#allocation52_spill] sm:$0xff]  ;;  %v7610_v35 = vld [vmem:[#allocation53_spill] sm:$0xff] }
 0x720   :  { %3517 = vmatprep.subr.bf16.mxu0 %v7600_v40  ;;  %3558 = vmatprep.subr.bf16.mxu1 %v7601_v46  ;;  %v7611_v40 = vld [vmem:[#allocation54_spill] sm:$0xff]  ;;  %v7612_v46 = vld [vmem:[#allocation55_spill] sm:$0xff] }
 0x723   :  { %3518 = vmatpush1.bf16.msra.mxu0 %v7602_v47  ;;  %3559 = vmatpush1.bf16.msra.mxu1 %v7603_v39  ;;  %v7613_v47 = vld [vmem:[#allocation56_spill] sm:$0xff]  ;;  %v7614_v39 = vld [vmem:[#allocation57_spill] sm:$0xff] }
 0x724   :  { %3519 = vmatprep.subr.bf16.mxu0 %v7604_v49  ;;  %3560 = vmatprep.subr.bf16.mxu1 %v7605_v7  ;;  %v7615_v49 = vld [vmem:[#allocation58_spill] sm:$0xff]  ;;  %v7616_v7 = vld [vmem:[#allocation59_spill] sm:$0xff] }
 0x727   :  { %3520 = vmatpush1.bf16.msra.mxu0 %v7606_v36  ;;  %3561 = vmatpush1.bf16.msra.mxu1 %v7607_v43  ;;  %v7617_v36 = vld [vmem:[#allocation60_spill] sm:$0xff]  ;;  %v7618_v43 = vld [vmem:[#allocation61_spill] sm:$0xff] }
 0x728   :  { %3521 = vmatprep.subr.bf16.mxu0 %v7608_v37  ;;  %3562 = vmatprep.subr.bf16.mxu1 %v7609_v58  ;;  %v7619_v37 = vld [vmem:[#allocation62_spill] sm:$0xff]  ;;  %v7620_v58 = vld [vmem:[#allocation63_spill] sm:$0xff] }
 0x72b   :  { %3522 = vmatpush2.bf16.msra.mxu0 %v7610_v35  ;;  %3563 = vmatpush2.bf16.msra.mxu1 %v7611_v40  ;;  %v7621_v35 = vld [vmem:[#allocation64_spill] sm:$0xff]  ;;  %v7622_v40 = vld [vmem:[#allocation65_spill] sm:$0xff] }
 0x72c   :  { %3523 = vmatprep.subr.bf16.mxu0 %v7612_v46  ;;  %3564 = vmatprep.subr.bf16.mxu1 %v7613_v47  ;;  %v7623_v46 = vld [vmem:[#allocation66_spill] sm:$0xff]  ;;  %v7624_v47 = vld [vmem:[#allocation67_spill] sm:$0xff] }
 0x72f   :  { %3524 = vmatpush2.bf16.msra.mxu0 %v7614_v39  ;;  %3565 = vmatpush2.bf16.msra.mxu1 %v7615_v49  ;;  %v7625_v39 = vld [vmem:[#allocation68_spill] sm:$0xff]  ;;  %v7626_v49 = vld [vmem:[#allocation69_spill] sm:$0xff] }
 0x730   :  { %3525 = vmatprep.subr.bf16.mxu0 %v7616_v7  ;;  %3566 = vmatprep.subr.bf16.mxu1 %v7617_v36  ;;  %v7627_v7 = vld [vmem:[#allocation70_spill] sm:$0xff]  ;;  %v7628_v36 = vld [vmem:[#allocation71_spill] sm:$0xff] }
 0x733   :  { %3526 = vmatpush2.bf16.msra.mxu0 %v7618_v43  ;;  %3567 = vmatpush2.bf16.msra.mxu1 %v7619_v37  ;;  %v7629_v43 = vld [vmem:[#allocation72_spill] sm:$0xff]  ;;  %v7630_v37 = vld [vmem:[#allocation73_spill] sm:$0xff] }
 0x734   :  { %3527 = vmatprep.subr.bf16.mxu0 %v7620_v58  ;;  %3568 = vmatprep.subr.bf16.mxu1 %v7621_v35  ;;  %v7631_v58 = vld [vmem:[#allocation74_spill] sm:$0xff]  ;;  %v7632_v35 = vld [vmem:[#allocation75_spill] sm:$0xff] }
 0x737   :  { %3528 = vmatpush2.bf16.msra.mxu0 %v7622_v40  ;;  %3569 = vmatpush2.bf16.msra.mxu1 %v7623_v46  ;;  %v7633_v40 = vld [vmem:[#allocation76_spill] sm:$0xff]  ;;  %v7634_v46 = vld [vmem:[#allocation78_spill] sm:$0xff] }
 0x738   :  { %3529 = vmatprep.subr.bf16.mxu0 %v7624_v47  ;;  %3570 = vmatprep.subr.bf16.mxu1 %v7625_v39  ;;  %v7635_v47 = vld [vmem:[#allocation79_spill] sm:$0xff]  ;;  %v7636_v39 = vld [vmem:[#allocation80_spill] sm:$0xff] }
 0x73b   :  { %3530 = vmatpush2.bf16.msra.mxu0 %v7626_v49  ;;  %3571 = vmatpush2.bf16.msra.mxu1 %v7627_v7  ;;  %v7637_v49 = vld [vmem:[#allocation81_spill] sm:$0xff]  ;;  %v7638_v7 = vld [vmem:[#allocation83_spill] sm:$0xff] }
 0x73c   :  { %3531 = vmatprep.subr.bf16.mxu0 %v7628_v36  ;;  %3572 = vmatprep.subr.bf16.mxu1 %v7629_v43  ;;  %v7639_v36 = vld [vmem:[#allocation84_spill] sm:$0xff]  ;;  %v7640_v43 = vld [vmem:[#allocation85_spill] sm:$0xff] }
 0x73f   :  { %3532 = vmatpush2.bf16.msra.mxu0 %v7630_v37  ;;  %3573 = vmatpush2.bf16.msra.mxu1 %v7631_v58  ;;  %v7641_v37 = vld [vmem:[#allocation86_spill] sm:$0xff] }
 0x740   :  { %3533 = vmatprep.subr.bf16.mxu0 %v7632_v35  ;;  %3574 = vmatprep.subr.bf16.mxu1 %v7633_v40 }
 0x743   :  { %3534 = vmatpush2.bf16.msra.mxu0 %v7634_v46  ;;  %3575 = vmatpush2.bf16.msra.mxu1 %v7635_v47 }
 0x744   :  { %3535 = vmatprep.subr.bf16.mxu0 %v7636_v39  ;;  %3576 = vmatprep.subr.bf16.mxu1 %v7637_v49 }
 0x747   :  { %3536 = vmatpush2.bf16.msra.mxu0 %v7638_v7  ;;  %3577 = vmatpush2.bf16.msra.mxu1 %v7639_v36 }
 0x748   :  { %3587 = vmatprep.subr.bf16.mxu0 %v7640_v43  ;;  %3628 = vmatprep.subr.bf16.mxu1 %v7641_v37 }
 0x78a   :  { %v3254_v58 = vpop.f32.mrf.mxu0  ;;  %v3295_v35 = vpop.f32.mrf.mxu1 }
 0x78b   :  { %v3394_v62 = vrot.slane %v3295_v35, 3  ;;  %v3392_v39 = vrot.slane %v3254_v58, 3 }
 0x78c   :  { %v3256_v54 = vpop.f32.mrf.mxu0  ;;  %v3297_v40 = vpop.f32.mrf.mxu1 }
 0x78d   :  { %v3395_v31 = vrot.slane %v3297_v40, 3  ;;  %v3410_v49 = vadd.f32 %v3394_v62, %v5246_v6  ;;  %v3393_v7 = vrot.slane %v3256_v54, 3  ;;  %v3408_v36 = vadd.f32 %v3392_v39, %v5249_v4 }
 0x78e   :  { %v3258_v32 = vpop.f32.mrf.mxu0  ;;  %v3299_v46 = vpop.f32.mrf.mxu1 }
 0x78f   :  { %v3411_v43 = vadd.f32 %v3395_v31, %v5252_v19  ;;  %v3424_v5 = vmul.f32 0.5, %v3410_v49  ;;  %v3409_v37 = vadd.f32 %v3393_v7, %v7225_v17  ;;  %v3416_v61 = vmul.f32 0.5, %v3408_v36 }
 0x790   :  { %v3259_v38 = vpop.f32.mrf.mxu0  ;;  %v3300_v47 = vpop.f32.mrf.mxu1 }
 0x791   :  { %v3425_v44 = vmul.f32 0.5, %v3411_v43  ;;  %4498 = vtanh.f32 %v3424_v5  ;;  %v3417_v32 = vmul.f32 0.5, %v3409_v37 }
 0x792   :  { %4500 = vtanh.f32 %v3416_v61 }
 0x793   :  { %4502 = vtanh.f32 %v3425_v44 }
 0x794   :  { %4504 = vtanh.f32 %v3417_v32 }
 0x79e   :  { %v4499_v61 = vpop.eup %4498 }
 0x79f   :  { %v4501_v37 = vpop.eup %4500 }
 0x7a0   :  { %v4503_v32 = vpop.eup %4502 }
 0x7ca   :  { %v3336_v46 = vpop.f32.mrf.mxu0  ;;  %v3377_v38 = vpop.f32.mrf.mxu1 }
 0x7cb   :  { %v3396_v40 = vrot.slane %v3336_v46, 3  ;;  %v3398_v39 = vrot.slane %v3377_v38, 3  ;;  %v3428_v46 = vmul.f32 0.5, %v4499_v61 }
 0x7cc   :  { %v3338_v47 = vpop.f32.mrf.mxu0  ;;  %v3379_v62 = vpop.f32.mrf.mxu1 }
 0x7cd   :  { %v3412_v54 = vadd.f32 %v3396_v40, %v5265_v0  ;;  %v3397_v58 = vrot.slane %v3338_v47, 3  ;;  %v3399_v36 = vrot.slane %v3379_v62, 3  ;;  %v3414_v44 = vadd.f32 %v3398_v39, %v5270_v2  ;;  %v4505_v40 = vpop.eup %4504 }
 0x7ce   :  { %v3340_v31 = vpop.f32.mrf.mxu0  ;;  %v3381_v49 = vpop.f32.mrf.mxu1  ;;  %v3420_v47 = vmul.f32 0.5, %v4501_v37  ;;  %v3429_v62 = vmul.f32 0.5, %v4503_v32  ;;  %v3421_v39 = vmul.f32 0.5, %v4505_v40 }
 0x7cf   :  { %4506 = vtanh.f32 %v3412_v54  ;;  %v3413_v7 = vadd.f32 %v3397_v58, %v5267_v10  ;;  %v3415_v35 = vadd.f32 %v3399_v36, %v5273_v14  ;;  %v3434_v38 = vmul.f32 0.5, %v3414_v44 }
 0x7d0   :  { %v3341_v5 = vpop.f32.mrf.mxu0  ;;  %v3382_v43 = vpop.f32.mrf.mxu1  ;;  %v3430_v58 = vadd.f32 0.5, %v3428_v46  ;;  %v3422_v31 = vadd.f32 0.5, %v3420_v47  ;;  %v7642_v49 = vsel %vm6098_vm5, %v6102_v30, %v6088_v57  ;;  %v3461_v36 = vstv %s3460_s4 }
 0x7d1   :  { %4508 = vtanh.f32 %v3413_v7  ;;  %v3435_v54 = vmul.f32 0.5, %v3415_v35  ;;  %v6290_v7 = vrot.slane %v7642_v49, 7  ;;  %v3431_v43 = vadd.f32 0.5, %v3429_v62 }
 0x7d2   :  { %4510 = vtanh.f32 %v3434_v38  ;;  %v3423_v37 = vadd.f32 0.5, %v3421_v39  ;;  %v7643_v35 = vsel %vm6098_vm5, %v6110_v25, %v6096_v9  ;;  %vm6300_vm6 = vcmp.eq.s32.totalorder %v3461_v36, 1  ;;  %v7662_v25 = vld [vmem:[#allocation131_spill] sm:$0xff] }
 0x7d3   :  { %4512 = vtanh.f32 %v3435_v54  ;;  %v3448_v44 = vmul.f32 %v6290_v7, %v3430_v58  ;;  %v6298_v32 = vrot.slane %v7643_v35, 7  ;;  %v3463_v49 = vrot.slane %v6120_v34, 7 }
 0x7d5   :  { %v3449_v38 = vmul.f32 %v6298_v32, %v3431_v43 }
 0x7dc   :  { %v4507_v5 = vpop.eup %4506 }
 0x7dd   :  { %v3450_v61 = vmul.f32 %v4507_v5, %v3422_v31 }
 0x7de   :  { %v4509_v57 = vpop.eup %4508 }
 0x7df   :  { %v6304_v30 = vadd.f32 %v3450_v61, %v3448_v44  ;;  %v3451_v40 = vmul.f32 %v4509_v57, %v3423_v37  ;;  %v4511_v47 = vpop.eup %4510  ;;  %v3464_v61 = vrot.slane %v6125_v42, 7 }
 0x7e0   :  { %v4513_v62 = vpop.eup %4512  ;;  %v3438_v54 = vmul.f32 0.5, %v4511_v47 }
 0x7e1   :  { %4514 = vtanh.f32 %v6304_v30  ;;  %v6312_v9 = vadd.f32 %v3451_v40, %v3449_v38  ;;  %v3439_v58 = vmul.f32 0.5, %v4513_v62 }
 0x7e2   :  { %v3440_v39 = vadd.f32 0.5, %v3438_v54 }
 0x7e3   :  { %4516 = vtanh.f32 %v6312_v9  ;;  %v3441_v5 = vadd.f32 0.5, %v3439_v58 }
 0x7ee   :  { %v4515_v31 = vpop.eup %4514 }
 0x7ef   :  { %v3456_v36 = vmul.f32 %v4515_v31, %v3440_v39  ;;  %v7646_v31 = vld [vmem:[#allocation115_spill] sm:$0xff] }
 0x7f0   :  { %v4517_v43 = vpop.eup %4516 }
 0x7f1   :  { %v6322_v44 = vsel %vm6300_vm6, %v3456_v36, %v3463_v49  ;;  %v3457_v37 = vmul.f32 %v4517_v43, %v3441_v5  ;;  %v7647_v49 = vld [vmem:[#allocation116_spill] sm:$0xff]  ;;  %v7648_v36 = vld [vmem:[#allocation117_spill] sm:$0xff]  ;;  %v7649_v5 = vld [vmem:[#allocation118_spill] sm:$0xff] }
 0x7f2   :  { %v3493_v35 = vpack.c.bf16 %v6322_v44, %v6322_v44  ;;  %v7650_v43 = vld [vmem:[#allocation119_spill] sm:$0xff] }
 0x7f3   :  { %v6329_v57 = vsel %vm6300_vm6, %v3457_v37, %v3464_v61  ;;  %v7651_v61 = vld [vmem:[#allocation120_spill] sm:$0xff]  ;;  %v7652_v37 = vld [vmem:[#allocation121_spill] sm:$0xff] }
 0x7f4   :  { %v3494_v34 = vpack.c.bf16 %v6329_v57, %v6329_v57  ;;  %v3473_v38 = vcombine.high %v6322_v44, %v6329_v57  ;;  %v3496_v40 = vshrl.u32 %v3493_v35, 16  ;;  %v7653_v35 = vld [vmem:[#allocation122_spill] sm:$0xff] }
 0x7f6   :  { %v3500_v47 = vshrl.u32 %v3494_v34, 16  ;;  %v3480_v62 = vrot.slane %v3473_v38, %v5307_v8  ;;  %v6336_v58 = vrot.slane %v3496_v40, 2  ;;  %v7654_v34 = vld [vmem:[#allocation123_spill] sm:$0xff]  ;;  %v7655_v38 = vld [vmem:[#allocation124_spill] sm:$0xff]  ;;  %v7656_v40 = vld [vmem:[#allocation125_spill] sm:$0xff] }
 0x7f8   :  { %v3502_v54 = vrot.slane %v3500_v47, 2  ;;  %v3481_v42 = vcombine.high %v3480_v62, %v3480_v62  ;;  %v7657_v47 = vld [vmem:[#allocation126_spill] sm:$0xff]  ;;  %v7658_v62 = vld [vmem:[#allocation127_spill] sm:$0xff] }
 0x7fa   :  { %3537 = vmatprep.mubr.bf16.mxu0 %v3502_v54  ;;  %3578 = vmatprep.mubr.bf16.mxu1 %v3502_v54  ;;  %v3488_v39 = vrot.slane %v3481_v42, %v5307_v8  ;;  %v7660_v42 = vld [vmem:[#allocation129_spill] sm:$0xff] }
 0x7fb   :  { %3538 = vmatmul.mubr.bf16.vlgmr.msra.gmra.mxu0 %v6336_v58  ;;  %3579 = vmatmul.mubr.bf16.vlgmr.msra.gmra.mxu1 %v6336_v58 }
 0x7fc   :  { %4384 = vst.msk [vmem:[%s6673_s7 + $0x5] ss:$8 sm:$0x3] %vm4721_vm0, %v3488_v39  ;;  %3588 = vmatpush1.bf16.msra.mxu0 %v7131_v33  ;;  %3629 = vmatpush1.bf16.msra.mxu1 %v7132_v12  ;;  %v7661_v39 = vld [vmem:[#allocation130_spill] sm:$0xff] }
 0x7fd   :  { %3619 = vmatprep.mubr.bf16.mxu0 %v3502_v54  ;;  %3660 = vmatprep.mubr.bf16.mxu1 %v3502_v54  ;;  %v7659_v54 = vld [vmem:[#allocation128_spill] sm:$0xff] }
 0x7fe   :  { %3589 = vmatprep.subr.bf16.mxu0 %v7133_v63  ;;  %3630 = vmatprep.subr.bf16.mxu1 %v7231_v51 }
 0x800   :  { %3590 = vmatpush1.bf16.msra.mxu0 %v7232_v59  ;;  %3631 = vmatpush1.bf16.msra.mxu1 %v7233_v29 }
 0x801   :  { %3591 = vmatprep.subr.bf16.mxu0 %v7234_v28  ;;  %3632 = vmatprep.subr.bf16.mxu1 %v7235_v26 }
 0x804   :  { %3592 = vmatpush1.bf16.msra.mxu0 %v7236_v27  ;;  %3633 = vmatpush1.bf16.msra.mxu1 %v7334_v45 }
 0x805   :  { %3593 = vmatprep.subr.bf16.mxu0 %v7335_v41  ;;  %3634 = vmatprep.subr.bf16.mxu1 %v7336_v56 }
 0x808   :  { %3594 = vmatpush1.bf16.msra.mxu0 %v7337_v53  ;;  %3635 = vmatpush1.bf16.msra.mxu1 %v7338_v20 }
 0x809   :  { %3595 = vmatprep.subr.bf16.mxu0 %v7339_v18  ;;  %3636 = vmatprep.subr.bf16.mxu1 %v7340_v21 }
 0x80c   :  { %3596 = vmatpush1.bf16.msra.mxu0 %v7341_v24  ;;  %3637 = vmatpush1.bf16.msra.mxu1 %v7342_v55 }
 0x80d   :  { %3597 = vmatprep.subr.bf16.mxu0 %v7343_v52  ;;  %3638 = vmatprep.subr.bf16.mxu1 %v7344_v60 }
 0x810   :  { %3598 = vmatpush1.bf16.msra.mxu0 %v7345_v3  ;;  %3639 = vmatpush1.bf16.msra.mxu1 %v7346_v1 }
 0x811   :  { %3599 = vmatprep.subr.bf16.mxu0 %v7347_v22  ;;  %3640 = vmatprep.subr.bf16.mxu1 %v7348_v11 }
 0x814   :  { %3600 = vmatpush1.bf16.msra.mxu0 %v7349_v15  ;;  %3641 = vmatpush1.bf16.msra.mxu1 %v7350_v48 }
 0x815   :  { %3601 = vmatprep.subr.bf16.mxu0 %v7254_v50  ;;  %3642 = vmatprep.subr.bf16.mxu1 %v7255_v16 }
 0x818   :  { %3602 = vmatpush1.bf16.msra.mxu0 %v7646_v31  ;;  %3643 = vmatpush1.bf16.msra.mxu1 %v7647_v49 }
 0x819   :  { %3603 = vmatprep.subr.bf16.mxu0 %v7648_v36  ;;  %3644 = vmatprep.subr.bf16.mxu1 %v7649_v5 }
 0x81c   :  { %3604 = vmatpush2.bf16.msra.mxu0 %v7650_v43  ;;  %3645 = vmatpush2.bf16.msra.mxu1 %v7651_v61 }
 0x81d   :  { %3605 = vmatprep.subr.bf16.mxu0 %v7652_v37  ;;  %3646 = vmatprep.subr.bf16.mxu1 %v7653_v35  ;;  %v7664_v35 = vld [vmem:[#allocation133_spill] sm:$0xff] }
 0x820   :  { %3606 = vmatpush2.bf16.msra.mxu0 %v7654_v34  ;;  %3647 = vmatpush2.bf16.msra.mxu1 %v7655_v38  ;;  %v7665_v34 = vld [vmem:[#allocation134_spill] sm:$0xff]  ;;  %v7666_v38 = vld [vmem:[#allocation135_spill] sm:$0xff] }
 0x821   :  { %3607 = vmatprep.subr.bf16.mxu0 %v7656_v40  ;;  %3648 = vmatprep.subr.bf16.mxu1 %v7657_v47  ;;  %v7667_v40 = vld [vmem:[#allocation136_spill] sm:$0xff]  ;;  %v7668_v47 = vld [vmem:[#allocation137_spill] sm:$0xff] }
 0x824   :  { %3608 = vmatpush2.bf16.msra.mxu0 %v7658_v62  ;;  %3649 = vmatpush2.bf16.msra.mxu1 %v7659_v54  ;;  %v7669_v62 = vld [vmem:[#allocation138_spill] sm:$0xff]  ;;  %v7670_v54 = vld [vmem:[#allocation139_spill] sm:$0xff] }
 0x825   :  { %3609 = vmatprep.subr.bf16.mxu0 %v7660_v42  ;;  %3650 = vmatprep.subr.bf16.mxu1 %v7661_v39  ;;  %v7671_v42 = vld [vmem:[#allocation140_spill] sm:$0xff]  ;;  %v7672_v39 = vld [vmem:[#allocation141_spill] sm:$0xff] }
 0x828   :  { %3610 = vmatpush2.bf16.msra.mxu0 %v7662_v25  ;;  %3651 = vmatpush2.bf16.msra.mxu1 %v7663_v23  ;;  %v7673_v25 = vld [vmem:[#allocation142_spill] sm:$0xff]  ;;  %v7674_v23 = vld [vmem:[#allocation143_spill] sm:$0xff] }
 0x829   :  { %3611 = vmatprep.subr.bf16.mxu0 %v7664_v35  ;;  %3652 = vmatprep.subr.bf16.mxu1 %v7665_v34  ;;  %v7675_v35 = vld [vmem:[#allocation144_spill] sm:$0xff]  ;;  %v7676_v34 = vld [vmem:[#allocation145_spill] sm:$0xff] }
 0x82c   :  { %3612 = vmatpush2.bf16.msra.mxu0 %v7666_v38  ;;  %3653 = vmatpush2.bf16.msra.mxu1 %v7667_v40  ;;  %v7677_v38 = vld [vmem:[#allocation146_spill] sm:$0xff]  ;;  %v7678_v40 = vld [vmem:[#allocation147_spill] sm:$0xff] }
 0x82d   :  { %3613 = vmatprep.subr.bf16.mxu0 %v7668_v47  ;;  %3654 = vmatprep.subr.bf16.mxu1 %v7669_v62  ;;  %v7679_v47 = vld [vmem:[#allocation148_spill] sm:$0xff]  ;;  %v7680_v62 = vld [vmem:[#allocation18_spill] sm:$0xff] }
 0x830   :  { %3614 = vmatpush2.bf16.msra.mxu0 %v7670_v54  ;;  %3655 = vmatpush2.bf16.msra.mxu1 %v7671_v42  ;;  %v7681_v54 = vld [vmem:[#allocation19_spill] sm:$0xff] }
 0x831   :  { %3615 = vmatprep.subr.bf16.mxu0 %v7672_v39  ;;  %3656 = vmatprep.subr.bf16.mxu1 %v7673_v25  ;;  %v7682_v25 = vld [vmem:[#allocation21_spill] sm:$0xff]  ;;  %v7691_v39 = vld [vmem:[#allocation30_spill] sm:$0xff] }
 0x834   :  { %3616 = vmatpush2.bf16.msra.mxu0 %v7674_v23  ;;  %3657 = vmatpush2.bf16.msra.mxu1 %v7675_v35  ;;  %v7683_v23 = vld [vmem:[#allocation22_spill] sm:$0xff]  ;;  %v7684_v35 = vld [vmem:[#allocation23_spill] sm:$0xff] }
 0x835   :  { %3617 = vmatprep.subr.bf16.mxu0 %v7676_v34  ;;  %3658 = vmatprep.subr.bf16.mxu1 %v7677_v38  ;;  %v7685_v34 = vld [vmem:[#allocation24_spill] sm:$0xff]  ;;  %v7686_v38 = vld [vmem:[#allocation25_spill] sm:$0xff] }
 0x838   :  { %3618 = vmatpush2.bf16.msra.mxu0 %v7678_v40  ;;  %3659 = vmatpush2.bf16.msra.mxu1 %v7679_v47  ;;  %v7687_v40 = vld [vmem:[#allocation26_spill] sm:$0xff]  ;;  %v7688_v47 = vld [vmem:[#allocation27_spill] sm:$0xff] }
 0x839   :  { %3786 = vmatprep.subr.bf16.mxu0 %v7680_v62  ;;  %3827 = vmatprep.subr.bf16.mxu1 %v7681_v54  ;;  %v7689_v62 = vld [vmem:[#allocation28_spill] sm:$0xff]  ;;  %v7690_v54 = vld [vmem:[#allocation29_spill] sm:$0xff] }
 0x83b   :  { %3620 = vmatmul.mubr.bf16.vlgmr.msra.gmra.mxu0 %v6336_v58  ;;  %3661 = vmatmul.mubr.bf16.vlgmr.msra.gmra.mxu1 %v6336_v58  ;;  %v7692_v58 = vld [vmem:[#allocation31_spill] sm:$0xff] }
 0x83c   :  { %3787 = vmatpush1.bf16.msra.mxu0 %v7682_v25  ;;  %3828 = vmatpush1.bf16.msra.mxu1 %v7683_v23  ;;  %v7693_v25 = vld [vmem:[#allocation32_spill] sm:$0xff]  ;;  %v7694_v23 = vld [vmem:[#allocation33_spill] sm:$0xff] }
 0x83d   :  { %3788 = vmatprep.subr.bf16.mxu0 %v7684_v35  ;;  %3829 = vmatprep.subr.bf16.mxu1 %v7685_v34  ;;  %v7695_v35 = vld [vmem:[#allocation34_spill] sm:$0xff]  ;;  %v7696_v34 = vld [vmem:[#allocation35_spill] sm:$0xff] }
 0x840   :  { %3789 = vmatpush1.bf16.msra.mxu0 %v7686_v38  ;;  %3830 = vmatpush1.bf16.msra.mxu1 %v7687_v40  ;;  %v7697_v38 = vld [vmem:[#allocation36_spill] sm:$0xff]  ;;  %v7698_v40 = vld [vmem:[#allocation37_spill] sm:$0xff] }
 0x841   :  { %3790 = vmatprep.subr.bf16.mxu0 %v7688_v47  ;;  %3831 = vmatprep.subr.bf16.mxu1 %v7689_v62  ;;  %v7699_v47 = vld [vmem:[#allocation38_spill] sm:$0xff]  ;;  %v7700_v62 = vld [vmem:[#allocation39_spill] sm:$0xff] }
 0x844   :  { %3791 = vmatpush1.bf16.msra.mxu0 %v7690_v54  ;;  %3832 = vmatpush1.bf16.msra.mxu1 %v7691_v39  ;;  %v7701_v54 = vld [vmem:[#allocation40_spill] sm:$0xff]  ;;  %v7702_v39 = vld [vmem:[#allocation41_spill] sm:$0xff] }
 0x845   :  { %3792 = vmatprep.subr.bf16.mxu0 %v7692_v58  ;;  %3833 = vmatprep.subr.bf16.mxu1 %v7693_v25  ;;  %v7703_v58 = vld [vmem:[#allocation42_spill] sm:$0xff]  ;;  %v7704_v25 = vld [vmem:[#allocation43_spill] sm:$0xff] }
 0x848   :  { %3793 = vmatpush1.bf16.msra.mxu0 %v7694_v23  ;;  %3834 = vmatpush1.bf16.msra.mxu1 %v7695_v35  ;;  %v7705_v23 = vld [vmem:[#allocation44_spill] sm:$0xff]  ;;  %v7706_v35 = vld [vmem:[#allocation45_spill] sm:$0xff] }
 0x849   :  { %3794 = vmatprep.subr.bf16.mxu0 %v7696_v34  ;;  %3835 = vmatprep.subr.bf16.mxu1 %v7697_v38  ;;  %v7707_v34 = vld [vmem:[#allocation46_spill] sm:$0xff]  ;;  %v7708_v38 = vld [vmem:[#allocation47_spill] sm:$0xff] }
 0x84c   :  { %3795 = vmatpush1.bf16.msra.mxu0 %v7698_v40  ;;  %3836 = vmatpush1.bf16.msra.mxu1 %v7699_v47  ;;  %v7709_v40 = vld [vmem:[#allocation48_spill] sm:$0xff]  ;;  %v7710_v47 = vld [vmem:[#allocation49_spill] sm:$0xff] }
 0x84d   :  { %3796 = vmatprep.subr.bf16.mxu0 %v7700_v62  ;;  %3837 = vmatprep.subr.bf16.mxu1 %v7701_v54  ;;  %v7711_v62 = vld [vmem:[#allocation50_spill] sm:$0xff]  ;;  %v7712_v54 = vld [vmem:[#allocation51_spill] sm:$0xff] }
 0x850   :  { %3797 = vmatpush1.bf16.msra.mxu0 %v7702_v39  ;;  %3838 = vmatpush1.bf16.msra.mxu1 %v7703_v58  ;;  %v7713_v39 = vld [vmem:[#allocation52_spill] sm:$0xff]  ;;  %v7714_v58 = vld [vmem:[#allocation53_spill] sm:$0xff] }
 0x851   :  { %3798 = vmatprep.subr.bf16.mxu0 %v7704_v25  ;;  %3839 = vmatprep.subr.bf16.mxu1 %v7705_v23  ;;  %v7715_v25 = vld [vmem:[#allocation54_spill] sm:$0xff]  ;;  %v7716_v23 = vld [vmem:[#allocation55_spill] sm:$0xff] }
 0x854   :  { %3799 = vmatpush1.bf16.msra.mxu0 %v7706_v35  ;;  %3840 = vmatpush1.bf16.msra.mxu1 %v7707_v34  ;;  %v7717_v35 = vld [vmem:[#allocation56_spill] sm:$0xff]  ;;  %v7718_v34 = vld [vmem:[#allocation57_spill] sm:$0xff] }
 0x855   :  { %3800 = vmatprep.subr.bf16.mxu0 %v7708_v38  ;;  %3841 = vmatprep.subr.bf16.mxu1 %v7709_v40  ;;  %v7719_v38 = vld [vmem:[#allocation58_spill] sm:$0xff]  ;;  %v7720_v40 = vld [vmem:[#allocation59_spill] sm:$0xff] }
 0x858   :  { %3801 = vmatpush1.bf16.msra.mxu0 %v7710_v47  ;;  %3842 = vmatpush1.bf16.msra.mxu1 %v7711_v62  ;;  %v7721_v47 = vld [vmem:[#allocation60_spill] sm:$0xff]  ;;  %v7722_v62 = vld [vmem:[#allocation61_spill] sm:$0xff] }
 0x859   :  { %3802 = vmatprep.subr.bf16.mxu0 %v7712_v54  ;;  %3843 = vmatprep.subr.bf16.mxu1 %v7713_v39  ;;  %v7723_v54 = vld [vmem:[#allocation62_spill] sm:$0xff]  ;;  %v7724_v39 = vld [vmem:[#allocation63_spill] sm:$0xff] }
 0x85c   :  { %3803 = vmatpush2.bf16.msra.mxu0 %v7714_v58  ;;  %3844 = vmatpush2.bf16.msra.mxu1 %v7715_v25  ;;  %v7725_v58 = vld [vmem:[#allocation64_spill] sm:$0xff]  ;;  %v7726_v25 = vld [vmem:[#allocation65_spill] sm:$0xff] }
 0x85d   :  { %3804 = vmatprep.subr.bf16.mxu0 %v7716_v23  ;;  %3845 = vmatprep.subr.bf16.mxu1 %v7717_v35  ;;  %v7727_v23 = vld [vmem:[#allocation66_spill] sm:$0xff]  ;;  %v7728_v35 = vld [vmem:[#allocation67_spill] sm:$0xff] }
 0x860   :  { %3805 = vmatpush2.bf16.msra.mxu0 %v7718_v34  ;;  %3846 = vmatpush2.bf16.msra.mxu1 %v7719_v38  ;;  %v7729_v34 = vld [vmem:[#allocation68_spill] sm:$0xff]  ;;  %v7730_v38 = vld [vmem:[#allocation69_spill] sm:$0xff] }
 0x861   :  { %3806 = vmatprep.subr.bf16.mxu0 %v7720_v40  ;;  %3847 = vmatprep.subr.bf16.mxu1 %v7721_v47  ;;  %v7731_v40 = vld [vmem:[#allocation70_spill] sm:$0xff]  ;;  %v7732_v47 = vld [vmem:[#allocation71_spill] sm:$0xff] }
 0x864   :  { %3807 = vmatpush2.bf16.msra.mxu0 %v7722_v62  ;;  %3848 = vmatpush2.bf16.msra.mxu1 %v7723_v54  ;;  %v7733_v62 = vld [vmem:[#allocation72_spill] sm:$0xff]  ;;  %v7734_v54 = vld [vmem:[#allocation73_spill] sm:$0xff] }
 0x865   :  { %3808 = vmatprep.subr.bf16.mxu0 %v7724_v39  ;;  %3849 = vmatprep.subr.bf16.mxu1 %v7725_v58  ;;  %v7735_v39 = vld [vmem:[#allocation74_spill] sm:$0xff]  ;;  %v7736_v58 = vld [vmem:[#allocation75_spill] sm:$0xff] }
 0x868   :  { %3809 = vmatpush2.bf16.msra.mxu0 %v7726_v25  ;;  %3850 = vmatpush2.bf16.msra.mxu1 %v7727_v23  ;;  %v7737_v25 = vld [vmem:[#allocation76_spill] sm:$0xff]  ;;  %v7738_v23 = vld [vmem:[#allocation78_spill] sm:$0xff] }
 0x869   :  { %3810 = vmatprep.subr.bf16.mxu0 %v7728_v35  ;;  %3851 = vmatprep.subr.bf16.mxu1 %v7729_v34  ;;  %v7739_v35 = vld [vmem:[#allocation79_spill] sm:$0xff]  ;;  %v7740_v34 = vld [vmem:[#allocation80_spill] sm:$0xff] }
 0x86c   :  { %3811 = vmatpush2.bf16.msra.mxu0 %v7730_v38  ;;  %3852 = vmatpush2.bf16.msra.mxu1 %v7731_v40  ;;  %v7741_v38 = vld [vmem:[#allocation81_spill] sm:$0xff]  ;;  %v7742_v40 = vld [vmem:[#allocation83_spill] sm:$0xff] }
 0x86d   :  { %3812 = vmatprep.subr.bf16.mxu0 %v7732_v47  ;;  %3853 = vmatprep.subr.bf16.mxu1 %v7733_v62  ;;  %v7743_v47 = vld [vmem:[#allocation84_spill] sm:$0xff]  ;;  %v7744_v62 = vld [vmem:[#allocation85_spill] sm:$0xff] }
 0x870   :  { %3813 = vmatpush2.bf16.msra.mxu0 %v7734_v54  ;;  %3854 = vmatpush2.bf16.msra.mxu1 %v7735_v39  ;;  %v7745_v54 = vld [vmem:[#allocation86_spill] sm:$0xff] }
 0x871   :  { %3814 = vmatprep.subr.bf16.mxu0 %v7736_v58  ;;  %3855 = vmatprep.subr.bf16.mxu1 %v7737_v25 }
 0x874   :  { %3815 = vmatpush2.bf16.msra.mxu0 %v7738_v23  ;;  %3856 = vmatpush2.bf16.msra.mxu1 %v7739_v35 }
 0x875   :  { %3816 = vmatprep.subr.bf16.mxu0 %v7740_v34  ;;  %3857 = vmatprep.subr.bf16.mxu1 %v7741_v38 }
 0x878   :  { %3817 = vmatpush2.bf16.msra.mxu0 %v7742_v40  ;;  %3858 = vmatpush2.bf16.msra.mxu1 %v7743_v47 }
 0x879   :  { %3868 = vmatprep.subr.bf16.mxu0 %v7744_v62  ;;  %3909 = vmatprep.subr.bf16.mxu1 %v7745_v54 }
 0x8bb   :  { %v3539_v39 = vpop.f32.mrf.mxu0  ;;  %v3580_v58 = vpop.f32.mrf.mxu1 }
 0x8bc   :  { %v3679_v43 = vrot.slane %v3580_v58, 2  ;;  %v3677_v34 = vrot.slane %v3539_v39, 2 }
 0x8bd   :  { %v3541_v42 = vpop.f32.mrf.mxu0  ;;  %v3582_v25 = vpop.f32.mrf.mxu1 }
 0x8be   :  { %v3680_v5 = vrot.slane %v3582_v25, 2  ;;  %v3695_v38 = vadd.f32 %v3679_v43, %v5246_v6  ;;  %v3678_v40 = vrot.slane %v3541_v42, 2  ;;  %v3693_v47 = vadd.f32 %v3677_v34, %v5249_v4 }
 0x8bf   :  { %v3543_v37 = vpop.f32.mrf.mxu0  ;;  %v3584_v23 = vpop.f32.mrf.mxu1 }
 0x8c0   :  { %v3696_v62 = vadd.f32 %v3680_v5, %v5252_v19  ;;  %v3709_v36 = vmul.f32 0.5, %v3695_v38  ;;  %v3694_v54 = vadd.f32 %v3678_v40, %v7225_v17  ;;  %v3701_v49 = vmul.f32 0.5, %v3693_v47 }
 0x8c1   :  { %v3544_v61 = vpop.f32.mrf.mxu0  ;;  %v3585_v35 = vpop.f32.mrf.mxu1 }
 0x8c2   :  { %v3710_v31 = vmul.f32 0.5, %v3696_v62  ;;  %4518 = vtanh.f32 %v3709_v36  ;;  %v3702_v37 = vmul.f32 0.5, %v3694_v54 }
 0x8c3   :  { %4520 = vtanh.f32 %v3701_v49 }
 0x8c4   :  { %4522 = vtanh.f32 %v3710_v31 }
 0x8c5   :  { %4524 = vtanh.f32 %v3702_v37 }
 0x8cf   :  { %v4519_v49 = vpop.eup %4518 }
 0x8d0   :  { %v4521_v62 = vpop.eup %4520 }
 0x8d1   :  { %v4523_v37 = vpop.eup %4522 }
 0x8fb   :  { %v3621_v61 = vpop.f32.mrf.mxu0  ;;  %v3662_v39 = vpop.f32.mrf.mxu1 }
 0x8fc   :  { %v3681_v58 = vrot.slane %v3621_v61, 2  ;;  %v3683_v23 = vrot.slane %v3662_v39, 2  ;;  %v3713_v61 = vmul.f32 0.5, %v4519_v49 }
 0x8fd   :  { %v3623_v25 = vpop.f32.mrf.mxu0  ;;  %v3664_v43 = vpop.f32.mrf.mxu1 }
 0x8fe   :  { %v3697_v42 = vadd.f32 %v3681_v58, %v5265_v0  ;;  %v3682_v35 = vrot.slane %v3623_v25, 2  ;;  %v3684_v40 = vrot.slane %v3664_v43, 2  ;;  %v3699_v31 = vadd.f32 %v3683_v23, %v5270_v2  ;;  %v4525_v58 = vpop.eup %4524 }
 0x8ff   :  { %v3625_v5 = vpop.f32.mrf.mxu0  ;;  %v3666_v34 = vpop.f32.mrf.mxu1  ;;  %v3705_v25 = vmul.f32 0.5, %v4521_v62  ;;  %v3714_v43 = vmul.f32 0.5, %v4523_v37  ;;  %v3706_v23 = vmul.f32 0.5, %v4525_v58 }
 0x900   :  { %4526 = vtanh.f32 %v3697_v42  ;;  %v3698_v38 = vadd.f32 %v3682_v35, %v5267_v10  ;;  %v3700_v54 = vadd.f32 %v3684_v40, %v5273_v14  ;;  %v3719_v39 = vmul.f32 0.5, %v3699_v31 }
 0x901   :  { %v3626_v36 = vpop.f32.mrf.mxu0  ;;  %v3667_v47 = vpop.f32.mrf.mxu1  ;;  %v3715_v35 = vadd.f32 0.5, %v3713_v61  ;;  %v3707_v5 = vadd.f32 0.5, %v3705_v25  ;;  %v7746_v34 = vsel %vm6300_vm6, %v6304_v30, %v6290_v7  ;;  %v3746_v40 = vstv %s3745_s28 }
 0x902   :  { %4528 = vtanh.f32 %v3698_v38  ;;  %v3720_v42 = vmul.f32 0.5, %v3700_v54  ;;  %v6492_v38 = vrot.slane %v7746_v34, 7  ;;  %v3716_v47 = vadd.f32 0.5, %v3714_v43 }
 0x903   :  { %4530 = vtanh.f32 %v3719_v39  ;;  %v3708_v62 = vadd.f32 0.5, %v3706_v23  ;;  %v7747_v54 = vsel %vm6300_vm6, %v6312_v9, %v6298_v32  ;;  %vm6502_vm7 = vcmp.eq.s32.totalorder %v3746_v40, 1 }
 0x904   :  { %4532 = vtanh.f32 %v3720_v42  ;;  %v3733_v31 = vmul.f32 %v6492_v38, %v3715_v35  ;;  %v6500_v37 = vrot.slane %v7747_v54, 7  ;;  %v3748_v34 = vrot.slane %v6322_v44, 7 }
 0x906   :  { %v3734_v39 = vmul.f32 %v6500_v37, %v3716_v47 }
 0x90d   :  { %v4527_v36 = vpop.eup %4526 }
 0x90e   :  { %v3735_v49 = vmul.f32 %v4527_v36, %v3707_v5 }
 0x90f   :  { %v4529_v7 = vpop.eup %4528 }
 0x910   :  { %v6506_v30 = vadd.f32 %v3735_v49, %v3733_v31  ;;  %v3736_v58 = vmul.f32 %v4529_v7, %v3708_v62  ;;  %v4531_v25 = vpop.eup %4530  ;;  %v3749_v49 = vrot.slane %v6329_v57, 7 }
 0x911   :  { %v4533_v43 = vpop.eup %4532  ;;  %v3723_v42 = vmul.f32 0.5, %v4531_v25 }
 0x912   :  { %4534 = vtanh.f32 %v6506_v30  ;;  %v3754_v46 = vsel %vm6502_vm7, %v6506_v30, %v6492_v38  ;;  %v6514_v32 = vadd.f32 %v3736_v58, %v3734_v39  ;;  %v3724_v35 = vmul.f32 0.5, %v4533_v43 }
 0x913   :  { %v3725_v23 = vadd.f32 0.5, %v3723_v42 }
 0x914   :  { %4536 = vtanh.f32 %v6514_v32  ;;  %v3755_v9 = vsel %vm6502_vm7, %v6514_v32, %v6500_v37  ;;  %v3726_v36 = vadd.f32 0.5, %v3724_v35  ;;  %v7778_v35 = vld [vmem:[#allocation143_spill] sm:$0xff] }
 0x91f   :  { %v4535_v5 = vpop.eup %4534 }
 0x920   :  { %v3741_v40 = vmul.f32 %v4535_v5, %v3725_v23  ;;  %v7779_v23 = vld [vmem:[#allocation144_spill] sm:$0xff]  ;;  %v7780_v5 = vld [vmem:[#allocation145_spill] sm:$0xff] }
 0x921   :  { %v4537_v47 = vpop.eup %4536 }
 0x922   :  { %v6524_v31 = vsel %vm6502_vm7, %v3741_v40, %v3748_v34  ;;  %v3742_v62 = vmul.f32 %v4537_v47, %v3726_v36  ;;  %v7781_v34 = vld [vmem:[#allocation146_spill] sm:$0xff]  ;;  %v7782_v40 = vld [vmem:[#allocation147_spill] sm:$0xff]  ;;  %v7783_v36 = vld [vmem:[#allocation148_spill] sm:$0xff] }
 0x923   :  { %v3778_v7 = vpack.c.bf16 %v6524_v31, %v6524_v31 }
 0x924   :  { %v6529_v54 = vsel %vm6502_vm7, %v3742_v62, %v3749_v49 }
 0x925   :  { %v3779_v44 = vpack.c.bf16 %v6529_v54, %v6529_v54  ;;  %v3758_v39 = vcombine.high %v6524_v31, %v6529_v54  ;;  %v6538_v43 = vrot.slane %v3778_v7, 3 }
 0x927   :  { %v3783_v58 = vrot.slane %v3779_v44, 3  ;;  %v3765_v25 = vrot.slane %v3758_v39, %v5307_v8 }
 0x929   :  { %3818 = vmatprep.mubr.bf16.mxu0 %v3783_v58  ;;  %3859 = vmatprep.mubr.bf16.mxu1 %v3783_v58  ;;  %v3772_v57 = vrot.slane %v3765_v25, %v5307_v8 }
 0x92a   :  { %3819 = vmatmul.mubr.bf16.vlgmr.msra.gmra.mxu0 %v6538_v43  ;;  %3860 = vmatmul.mubr.bf16.vlgmr.msra.gmra.mxu1 %v6538_v43 }
 0x92b   :  { %v3773_v42 = vcombine.high %v3772_v57, %v3772_v57  ;;  %3869 = vmatpush1.bf16.msra.mxu0 %v7131_v33  ;;  %3910 = vmatpush1.bf16.msra.mxu1 %v7132_v12  ;;  %v7750_v33 = vld [vmem:[#allocation115_spill] sm:$0xff]  ;;  %v7751_v12 = vld [vmem:[#allocation116_spill] sm:$0xff] }
 0x92c   :  { %3900 = vmatprep.mubr.bf16.mxu0 %v3783_v58  ;;  %3941 = vmatprep.mubr.bf16.mxu1 %v3783_v58 }
 0x92d   :  { %4386 = vst.msk [vmem:[%s6673_s7 + $0x6] ss:$8 sm:$0x3] %vm4721_vm0, %v3773_v42  ;;  %3870 = vmatprep.subr.bf16.mxu0 %v7133_v63  ;;  %3911 = vmatprep.subr.bf16.mxu1 %v7231_v51  ;;  %v7752_v63 = vld [vmem:[#allocation117_spill] sm:$0xff]  ;;  %v7753_v51 = vld [vmem:[#allocation118_spill] sm:$0xff] }
 0x92f   :  { %3871 = vmatpush1.bf16.msra.mxu0 %v7232_v59  ;;  %3912 = vmatpush1.bf16.msra.mxu1 %v7233_v29  ;;  %v7754_v59 = vld [vmem:[#allocation119_spill] sm:$0xff]  ;;  %v7755_v29 = vld [vmem:[#allocation120_spill] sm:$0xff] }
 0x930   :  { %3872 = vmatprep.subr.bf16.mxu0 %v7234_v28  ;;  %3913 = vmatprep.subr.bf16.mxu1 %v7235_v26  ;;  %v7756_v28 = vld [vmem:[#allocation121_spill] sm:$0xff]  ;;  %v7757_v26 = vld [vmem:[#allocation122_spill] sm:$0xff] }
 0x933   :  { %3873 = vmatpush1.bf16.msra.mxu0 %v7236_v27  ;;  %3914 = vmatpush1.bf16.msra.mxu1 %v7334_v45  ;;  %v7758_v27 = vld [vmem:[#allocation123_spill] sm:$0xff] }
 0x934   :  { %3874 = vmatprep.subr.bf16.mxu0 %v7335_v41  ;;  %3915 = vmatprep.subr.bf16.mxu1 %v7336_v56  ;;  %v7762_v45 = vld [vmem:[#allocation127_spill] sm:$0xff]  ;;  %v7763_v41 = vld [vmem:[#allocation128_spill] sm:$0xff]  ;;  %v7764_v56 = vld [vmem:[#allocation129_spill] sm:$0xff] }
 0x937   :  { %3875 = vmatpush1.bf16.msra.mxu0 %v7337_v53  ;;  %3916 = vmatpush1.bf16.msra.mxu1 %v7338_v20  ;;  %v7765_v53 = vld [vmem:[#allocation130_spill] sm:$0xff]  ;;  %v7766_v20 = vld [vmem:[#allocation131_spill] sm:$0xff] }
 0x938   :  { %3876 = vmatprep.subr.bf16.mxu0 %v7339_v18  ;;  %3917 = vmatprep.subr.bf16.mxu1 %v7340_v21  ;;  %v7767_v18 = vld [vmem:[#allocation132_spill] sm:$0xff]  ;;  %v7768_v21 = vld [vmem:[#allocation133_spill] sm:$0xff] }
 0x93b   :  { %3877 = vmatpush1.bf16.msra.mxu0 %v7341_v24  ;;  %3918 = vmatpush1.bf16.msra.mxu1 %v7342_v55  ;;  %v7769_v24 = vld [vmem:[#allocation134_spill] sm:$0xff]  ;;  %v7770_v55 = vld [vmem:[#allocation135_spill] sm:$0xff] }
 0x93c   :  { %3878 = vmatprep.subr.bf16.mxu0 %v7343_v52  ;;  %3919 = vmatprep.subr.bf16.mxu1 %v7344_v60  ;;  %v7771_v52 = vld [vmem:[#allocation136_spill] sm:$0xff]  ;;  %v7772_v60 = vld [vmem:[#allocation137_spill] sm:$0xff] }
 0x93f   :  { %3879 = vmatpush1.bf16.msra.mxu0 %v7345_v3  ;;  %3920 = vmatpush1.bf16.msra.mxu1 %v7346_v1  ;;  %v7773_v3 = vld [vmem:[#allocation138_spill] sm:$0xff]  ;;  %v7774_v1 = vld [vmem:[#allocation139_spill] sm:$0xff] }
 0x940   :  { %3880 = vmatprep.subr.bf16.mxu0 %v7347_v22  ;;  %3921 = vmatprep.subr.bf16.mxu1 %v7348_v11  ;;  %v7775_v22 = vld [vmem:[#allocation140_spill] sm:$0xff]  ;;  %v7776_v11 = vld [vmem:[#allocation141_spill] sm:$0xff] }
 0x943   :  { %3881 = vmatpush1.bf16.msra.mxu0 %v7349_v15  ;;  %3922 = vmatpush1.bf16.msra.mxu1 %v7350_v48  ;;  %v7761_v48 = vld [vmem:[#allocation126_spill] sm:$0xff] }
 0x944   :  { %3882 = vmatprep.subr.bf16.mxu0 %v7254_v50  ;;  %3923 = vmatprep.subr.bf16.mxu1 %v7255_v16  ;;  %v7759_v50 = vld [vmem:[#allocation124_spill] sm:$0xff]  ;;  %v7760_v16 = vld [vmem:[#allocation125_spill] sm:$0xff]  ;;  %v7777_v15 = vld [vmem:[#allocation142_spill] sm:$0xff] }
 0x947   :  { %3883 = vmatpush1.bf16.msra.mxu0 %v7750_v33  ;;  %3924 = vmatpush1.bf16.msra.mxu1 %v7751_v12 }
 0x948   :  { %3884 = vmatprep.subr.bf16.mxu0 %v7752_v63  ;;  %3925 = vmatprep.subr.bf16.mxu1 %v7753_v51 }
 0x94b   :  { %3885 = vmatpush2.bf16.msra.mxu0 %v7754_v59  ;;  %3926 = vmatpush2.bf16.msra.mxu1 %v7755_v29 }
 0x94c   :  { %3886 = vmatprep.subr.bf16.mxu0 %v7756_v28  ;;  %3927 = vmatprep.subr.bf16.mxu1 %v7757_v26 }
 0x94f   :  { %3887 = vmatpush2.bf16.msra.mxu0 %v7758_v27  ;;  %3928 = vmatpush2.bf16.msra.mxu1 %v7759_v50 }
 0x950   :  { %3888 = vmatprep.subr.bf16.mxu0 %v7760_v16  ;;  %3929 = vmatprep.subr.bf16.mxu1 %v7761_v48 }
 0x953   :  { %3889 = vmatpush2.bf16.msra.mxu0 %v7762_v45  ;;  %3930 = vmatpush2.bf16.msra.mxu1 %v7763_v41 }
 0x954   :  { %3890 = vmatprep.subr.bf16.mxu0 %v7764_v56  ;;  %3931 = vmatprep.subr.bf16.mxu1 %v7765_v53 }
 0x957   :  { %3891 = vmatpush2.bf16.msra.mxu0 %v7766_v20  ;;  %3932 = vmatpush2.bf16.msra.mxu1 %v7767_v18 }
 0x958   :  { %3892 = vmatprep.subr.bf16.mxu0 %v7768_v21  ;;  %3933 = vmatprep.subr.bf16.mxu1 %v7769_v24 }
 0x95b   :  { %3893 = vmatpush2.bf16.msra.mxu0 %v7770_v55  ;;  %3934 = vmatpush2.bf16.msra.mxu1 %v7771_v52 }
 0x95c   :  { %3894 = vmatprep.subr.bf16.mxu0 %v7772_v60  ;;  %3935 = vmatprep.subr.bf16.mxu1 %v7773_v3 }
 0x95f   :  { %3895 = vmatpush2.bf16.msra.mxu0 %v7774_v1  ;;  %3936 = vmatpush2.bf16.msra.mxu1 %v7775_v22 }
 0x960   :  { %3896 = vmatprep.subr.bf16.mxu0 %v7776_v11  ;;  %3937 = vmatprep.subr.bf16.mxu1 %v7777_v15 }
 0x963   :  { %3897 = vmatpush2.bf16.msra.mxu0 %v7778_v35  ;;  %3938 = vmatpush2.bf16.msra.mxu1 %v7779_v23 }
 0x964   :  { %3898 = vmatprep.subr.bf16.mxu0 %v7780_v5  ;;  %3939 = vmatprep.subr.bf16.mxu1 %v7781_v34 }
 0x967   :  { %3899 = vmatpush2.bf16.msra.mxu0 %v7782_v40  ;;  %3940 = vmatpush2.bf16.msra.mxu1 %v7783_v36 }
 0x96a   :  { %3901 = vmatmul.mubr.bf16.vlgmr.msra.gmra.mxu0 %v6538_v43  ;;  %3942 = vmatmul.mubr.bf16.vlgmr.msra.gmra.mxu1 %v6538_v43 }
 0x9ea   :  { %v3820_v47 = vpop.f32.mrf.mxu0  ;;  %v3861_v49 = vpop.f32.mrf.mxu1 }
 0x9eb   :  { %v3960_v57 = vrot.slane %v3861_v49, 1  ;;  %v3958_v42 = vrot.slane %v3820_v47, 1  ;;  %v4011_v49 = vrot.slane %v3755_v9, 7 }
 0x9ec   :  { %v3822_v62 = vpop.f32.mrf.mxu0  ;;  %v3863_v7 = vpop.f32.mrf.mxu1 }
 0x9ed   :  { %v3961_v33 = vrot.slane %v3863_v7, 1  ;;  %v3976_v12 = vadd.f32 %v3960_v57, %v5246_v6  ;;  %v3959_v63 = vrot.slane %v3822_v62, 1  ;;  %v3974_v51 = vadd.f32 %v3958_v42, %v5249_v4 }
 0x9ee   :  { %v3824_v44 = vpop.f32.mrf.mxu0  ;;  %v3865_v39 = vpop.f32.mrf.mxu1  ;;  %v4027_v62 = vstv %s4026_s12 }
 0x9ef   :  { %v3977_v59 = vadd.f32 %v3961_v33, %v5252_v19  ;;  %v3990_v29 = vmul.f32 0.5, %v3976_v12  ;;  %v3975_v43 = vadd.f32 %v3959_v63, %v7225_v17  ;;  %v3982_v28 = vmul.f32 0.5, %v3974_v51 }
 0x9f0   :  { %v3825_v58 = vpop.f32.mrf.mxu0  ;;  %v3866_v25 = vpop.f32.mrf.mxu1  ;;  %vm6633_vm8 = vcmp.eq.s32.totalorder %v4027_v62, 1 }
 0x9f1   :  { %v3991_v26 = vmul.f32 0.5, %v3977_v59  ;;  %4538 = vtanh.f32 %v3990_v29  ;;  %v3983_v27 = vmul.f32 0.5, %v3975_v43  ;;  %v4029_v29 = vrot.slane %v6524_v31, 7 }
 0x9f2   :  { %4540 = vtanh.f32 %v3982_v28 }
 0x9f3   :  { %4542 = vtanh.f32 %v3991_v26 }
 0x9f4   :  { %4544 = vtanh.f32 %v3983_v27 }
 0x9fe   :  { %v4539_v55 = vpop.eup %4538 }
 0x9ff   :  { %v4541_v52 = vpop.eup %4540  ;;  %v3994_v1 = vmul.f32 0.5, %v4539_v55 }
 0xa00   :  { %v4543_v3 = vpop.eup %4542  ;;  %v3986_v11 = vmul.f32 0.5, %v4541_v52 }
 0xa01   :  { %v4545_v22 = vpop.eup %4544  ;;  %v3996_v35 = vadd.f32 0.5, %v3994_v1 }
 0xa02   :  { %v3987_v23 = vmul.f32 0.5, %v4545_v22 }
 0xa04   :  { %v3989_v47 = vadd.f32 0.5, %v3987_v23 }
 0xa2a   :  { %v3902_v50 = vpop.f32.mrf.mxu0  ;;  %v3943_v16 = vpop.f32.mrf.mxu1 }
 0xa2b   :  { %v3962_v48 = vrot.slane %v3902_v50, 1  ;;  %v3964_v4 = vrot.slane %v3943_v16, 1 }
 0xa2c   :  { %v3904_v45 = vpop.f32.mrf.mxu0  ;;  %v3945_v6 = vpop.f32.mrf.mxu1 }
 0xa2d   :  { %v3978_v41 = vadd.f32 %v3962_v48, %v5265_v0  ;;  %v3963_v56 = vrot.slane %v3904_v45, 1  ;;  %v3965_v20 = vrot.slane %v3945_v6, 1  ;;  %v3980_v24 = vadd.f32 %v3964_v4, %v5270_v2 }
 0xa2e   :  { %v3906_v19 = vpop.f32.mrf.mxu0  ;;  %v3947_v53 = vpop.f32.mrf.mxu1  ;;  %v3988_v2 = vadd.f32 0.5, %v3986_v11 }
 0xa2f   :  { %4546 = vtanh.f32 %v3978_v41  ;;  %v3979_v17 = vadd.f32 %v3963_v56, %v5267_v10  ;;  %v3981_v60 = vadd.f32 %v3965_v20, %v5273_v14  ;;  %v4000_v0 = vmul.f32 0.5, %v3980_v24 }
 0xa30   :  { %v3907_v18 = vpop.f32.mrf.mxu0  ;;  %v3948_v21 = vpop.f32.mrf.mxu1  ;;  %v3995_v10 = vmul.f32 0.5, %v4543_v3  ;;  %v4010_v14 = vrot.slane %v3754_v46, 7 }
 0xa31   :  { %4548 = vtanh.f32 %v3979_v17  ;;  %v4001_v15 = vmul.f32 0.5, %v3981_v60 }
 0xa32   :  { %4550 = vtanh.f32 %v4000_v0  ;;  %v3997_v34 = vadd.f32 0.5, %v3995_v10  ;;  %v4014_v40 = vmul.f32 %v4010_v14, %v3996_v35 }
 0xa33   :  { %4552 = vtanh.f32 %v4001_v15 }
 0xa34   :  { %v4015_v39 = vmul.f32 %v4011_v49, %v3997_v34 }
 0xa3c   :  { %v4547_v5 = vpop.eup %4546 }
 0xa3d   :  { %v4016_v36 = vmul.f32 %v4547_v5, %v3988_v2 }
 0xa3e   :  { %v4549_v7 = vpop.eup %4548 }
 0xa3f   :  { %v4018_v44 = vadd.f32 %v4016_v36, %v4014_v40  ;;  %v4017_v58 = vmul.f32 %v4549_v7, %v3989_v47  ;;  %v4551_v32 = vpop.eup %4550 }
 0xa40   :  { %v4553_v25 = vpop.eup %4552  ;;  %v4004_v57 = vmul.f32 0.5, %v4551_v32 }
 0xa41   :  { %4554 = vtanh.f32 %v4018_v44  ;;  %v4019_v30 = vadd.f32 %v4017_v58, %v4015_v39  ;;  %v4035_v46 = vsel %vm6633_vm8, %v4018_v44, %v4010_v14  ;;  %v4005_v12 = vmul.f32 0.5, %v4553_v25 }
 0xa42   :  { %v4006_v63 = vadd.f32 0.5, %v4004_v57 }
 0xa43   :  { %4556 = vtanh.f32 %v4019_v30  ;;  %v4036_v61 = vsel %vm6633_vm8, %v4019_v30, %v4011_v49  ;;  %v4007_v28 = vadd.f32 0.5, %v4005_v12 }
 0xa44   :  { %v4063_v37 = vcombine.high %v4035_v46, %v4036_v61 }
 0xa46   :  { %v4070_v9 = vrot.slane %v4063_v37, %v5307_v8 }
 0xa48   :  { %v4071_v42 = vcombine.high %v4070_v9, %v4070_v9 }
 0xa4a   :  { %v4078_v33 = vrot.slane %v4071_v42, %v5307_v8 }
 0xa4c   :  { %v4079_v51 = vcombine.high %v4078_v33, %v4078_v33 }
 0xa4e   :  { %v4555_v59 = vpop.eup %4554  ;;  %4081 = vst.msk [vmem:[#allocation10] sm:$0x3] %vm4721_vm0, %v4079_v51 }
 0xa4f   :  { %v4022_v43 = vmul.f32 %v4555_v59, %v4006_v63 }
 0xa50   :  { %4609 = shalt.err (!%p4606_p8)
}
 0xa51   :  { %4103 = dma.vmem_to_hbm [thread:$0]  %s4101_s13, 32, %s6675_s9, [#allocation11]   ;;  %v4557_v26 = vpop.eup %4556  ;;  %v4033_v31 = vsel %vm6633_vm8, %v4022_v43, %v4029_v29  ;;  %v4030_v27 = vrot.slane %v6529_v54, 7 }
 0xa52   :  { %v4023_v50 = vmul.f32 %v4557_v26, %v4007_v28  ;;  %s4652_s17 = smov [#allocation9]  }
 0xa53   :  { %s4090_s18 = sshll.u32 %s4652_s17, 4  ;;  %s4091_s18 = int_to_ptr.vmem [resolvable:$true] %s4090_s18 }
 0xa54   :  { %v4034_v16 = vsel %vm6633_vm8, %v4023_v50, %v4030_v27  ;;  %s4618_s20 = scalar_lea.vmem %s4091_s18, 32  ;;  %p4623_p10 = scmp.lt.s32.totalorder %s4091_s18, %s4091_s18 }
 0xa55   :  { %v4039_v48 = vcombine.high %v4033_v31, %v4034_v16  ;;  %p4619_p9 = scmp.ne.s32.totalorder %s4091_s18, %s4618_s20  ;;  %p4624_p11 = scmp.lt.s32.totalorder %s4618_s20, %s4618_s20 }
 0xa57   :  { %v4046_v45 = vrot.slane %v4039_v48, %v5307_v8  ;;  %p4625_p12 = por %p4624_p11, %p4623_p10 }
 0xa59   :  { %v4047_v6 = vcombine.high %v4046_v45, %v4046_v45  ;;  %p4626_p13 = pnand %p4625_p12, %p4619_p9 }
 0xa5b   :  { %v4054_v41 = vrot.slane %v4047_v6, %v5307_v8 }
 0xa5d   :  { %v4055_v4 = vcombine.high %v4054_v41, %v4054_v41 }
 0xa5f   :  { %4388 = vst.msk [vmem:[%s6673_s7 + $0x7] ss:$8 sm:$0x3] %vm4721_vm0, %v4055_v4  ;;  %4060 = vst.msk [vmem:[#allocation9] sm:$0x3] %vm4721_vm0, %v4055_v4 }
 0xa60   :  { %4629 = shalt.err (!%p4626_p13)
}
 0xa61   :  { %4093 = dma.vmem_to_hbm [thread:$0]  %s4091_s18, 32, %s6674_s8, [#allocation6]  }
 0xa62   :  { %4642 = dma.done.wait [#allocation6], 32  }
 0xa63   :  { %4643 = vsyncadd [#allocation6], 4294967264 }
 0xa64   :  { %4644 = dma.done.wait [#allocation11], 32  }
 0xa65   :  { %4645 = vsyncadd [#allocation11], 4294967264 }
 0xa66   :  { %4112 = vsyncpa [#allocation5], 1 }
 0xa67   :  { %4113 = vsyncpa [#allocation8], 1 }
 0xa68   :  { %4114 = vsyncpa [#allocation6], 1 }
 0xa69   :  { %4115 = vsyncpa [#allocation11], 1 }

</bundles_post_ra>
